<compile_context>
chip_gen: v5e
topology: v5e:2x2
jax: 0.10.0
libtpu: 0.0.40
codegen_flags: <defaults>
</compile_context>

<pallas_src>
import functools

import jax
import jax.numpy as jnp
from jax import lax
from jax.experimental import pallas as pl
from jax.experimental.pallas import tpu as pltpu

_LN_EPS = 1e-5  # PyTorch LayerNorm default


def _round_up(v, m):
    return ((v + m - 1) // m) * m


def _nonlocal_kernel(x_ref, wgtp_ref, bgtp_ref, wz_ref, bz_ref,
                     gamma_ref, beta_ref, o_ref, *, fp, n_real, c_real, eps):
    """Fused NonLocalBlock forward for one batch element.

    x_ref:          (HW, Cp)     padded input, channel-last
    wgtp_ref:       (Cp, 3*Fp)   concatenated [Wg | Wtheta | Wphi], zero-padded
    bgtp_ref:       (1, 3*Fp)    concatenated biases, zero-padded
    wz_ref:         (Fp, Cp)     W_z conv weight (in, out), zero-padded
    bz_ref:         (1, Cp)
    gamma/beta_ref: (HW, Cp)     LayerNorm affine, zero-padded channels
    o_ref:          (HW, Cp)
    """
    x = x_ref[...]                                                   # (HW, Cp)

    # All three 1x1 convolutions in a single channel matmul (MXU), then split.
    # Slice boundaries are multiples of 128 (Fp is lane-padded), so the splits
    # stay lane-tile aligned.
    gtp = jnp.dot(x, wgtp_ref[...],
                  preferred_element_type=jnp.float32) + bgtp_ref[...]
    g = gtp[:, 0 * fp:1 * fp]                                        # (HW, Fp)
    theta = gtp[:, 1 * fp:2 * fp]
    phi = gtp[:, 2 * fp:3 * fp]

    # f[i, j] = <theta_i, phi_j>  -- contract the filter axis of both operands
    # (trans_b form, no explicit transpose).  Padded filter columns are exact
    # zeros, so they do not perturb the contraction.
    f = lax.dot_general(theta, phi, (((1,), (1,)), ((), ())),
                        preferred_element_type=jnp.float32)          # (HW, HW)

    # Row softmax (no scaling in the reference module).
    m = jnp.max(f, axis=-1, keepdims=True)
    e = jnp.exp(f - m)
    attn = e / jnp.sum(e, axis=-1, keepdims=True)

    # Attention-weighted values, then W_z 1x1 conv.
    y = jnp.dot(attn, g, preferred_element_type=jnp.float32)         # (HW, Fp)
    z = jnp.dot(y, wz_ref[...], preferred_element_type=jnp.float32) + bz_ref[...]

    # LayerNorm over the *real* C*H*W elements.  Padded channels of z are exact
    # zeros, so a full-tile sum equals the sum over real elements; only the
    # centered term needs an explicit mask.
    mean = jnp.sum(z) / n_real
    col = lax.broadcasted_iota(jnp.int32, z.shape, 1)
    diff = jnp.where(col < c_real, z - mean, 0.0)
    var = jnp.sum(diff * diff) / n_real
    inv = lax.rsqrt(var + eps)
    zn = (z - mean) * inv

    # Affine + residual.  Padded channels: gamma=0, beta=0, x=0  =>  output 0.
    o_ref[...] = (zn * gamma_ref[...] + beta_ref[...] + x).astype(o_ref.dtype)


@jax.jit
def nonlocal_block(x, wg, bg, wt, bt, wp, bp, wz, bz, gamma, beta):
    """NonLocalBlock forward (mode='embedded', norm='layer').

    x:          (N, C, H, W) f32
    wg/wt/wp:   (F, C)  1x1-conv weights (conv1 / theta / phi),  bg/bt/bp: (F,)
    wz:         (C, F)  W_z conv weight,                         bz:       (C,)
    gamma/beta: (C, H, W)  LayerNorm affine params
    returns (N, C, H, W) f32
    """
    n, c, h, w = x.shape
    hw = h * w
    f_dim = wg.shape[0]
    assert hw % 8 == 0, "H*W must be a multiple of 8 for the (8,128) tiling"

    cp = _round_up(c, 128)
    fp = _round_up(f_dim, 128)

    # NCHW -> (N*HW, Cp), channel-last, zero-padded channels.
    x_flat = jnp.transpose(x, (0, 2, 3, 1)).reshape(n * hw, c)
    x_p = jnp.pad(x_flat, ((0, 0), (0, cp - c)))

    def pad_w(wmat, rows, cols):
        # (out, in) -> (in_padded, out_padded)
        return jnp.pad(jnp.transpose(wmat),
                       ((0, rows - wmat.shape[1]), (0, cols - wmat.shape[0])))

    # Concatenate the g / theta / phi projections along the output axis so the
    # kernel does one (HW, Cp) x (Cp, 3*Fp) matmul.
    w_gtp = jnp.concatenate(
        [pad_w(wg, cp, fp), pad_w(wt, cp, fp), pad_w(wp, cp, fp)], axis=1)
    b_gtp = jnp.concatenate(
        [jnp.pad(bg, (0, fp - f_dim)),
         jnp.pad(bt, (0, fp - f_dim)),
         jnp.pad(bp, (0, fp - f_dim))]).reshape(1, 3 * fp)

    wz_m = pad_w(wz, fp, cp)
    bz_m = jnp.pad(bz, (0, cp - c)).reshape(1, cp)
    gamma_m = jnp.pad(jnp.transpose(gamma, (1, 2, 0)).reshape(hw, c),
                      ((0, 0), (0, cp - c)))
    beta_m = jnp.pad(jnp.transpose(beta, (1, 2, 0)).reshape(hw, c),
                     ((0, 0), (0, cp - c)))

    kernel = functools.partial(_nonlocal_kernel, fp=fp,
                               n_real=float(c * hw), c_real=c, eps=_LN_EPS)

    flops = n * (2 * hw * cp * (3 * fp)     # fused g/theta/phi projections
                 + 2 * 2 * hw * hw * fp     # scores + attention @ g
                 + 2 * hw * fp * cp)        # W_z projection
    bytes_accessed = 4 * (2 * n * hw * cp            # x in, out
                          + 4 * cp * fp              # weights
                          + 2 * hw * cp)             # gamma / beta

    const2d = lambda b: (0, 0)  # weights/biases resident across the batch grid

    out_p = pl.pallas_call(
        kernel,
        out_shape=jax.ShapeDtypeStruct((n * hw, cp), jnp.float32),
        grid=(n,),
        in_specs=[
            pl.BlockSpec((hw, cp), lambda b: (b, 0)),     # x (per-sample block)
            pl.BlockSpec((cp, 3 * fp), const2d),          # [Wg|Wt|Wp]
            pl.BlockSpec((1, 3 * fp), const2d),           # [bg|bt|bp]
            pl.BlockSpec((fp, cp), const2d),              # Wz
            pl.BlockSpec((1, cp), const2d),               # bz
            pl.BlockSpec((hw, cp), const2d),              # gamma
            pl.BlockSpec((hw, cp), const2d),              # beta
        ],
        out_specs=pl.BlockSpec((hw, cp), lambda b: (b, 0)),
        compiler_params=pltpu.CompilerParams(
            dimension_semantics=("parallel",)),
        cost_estimate=pl.CostEstimate(flops=int(flops),
                                      transcendentals=int(n * hw * hw),
                                      bytes_accessed=int(bytes_accessed)),
    )(x_p, w_gtp, b_gtp, wz_m, bz_m, gamma_m, beta_m)

    out = out_p[:, :c].reshape(n, h, w, c)
    return jnp.transpose(out, (0, 3, 1, 2))


def _reference(x, wg, bg, wt, bt, wp, bp, wz, bz, gamma, beta):
    """Pure-JAX mirror of the PyTorch NonLocalBlock forward (embedded/layer)."""
    n, c, h, w = x.shape
    hw = h * w
    f_dim = wg.shape[0]

    def conv1x1(inp, wmat, b):
        return jnp.einsum('nchw,oc->nohw', inp, wmat) + b[None, :, None, None]

    g = conv1x1(x, wg, bg).reshape(n, f_dim, hw).transpose(0, 2, 1)
    theta = conv1x1(x, wt, bt).reshape(n, f_dim, hw).transpose(0, 2, 1)
    phi = conv1x1(x, wp, bp).reshape(n, f_dim, hw)
    f = jnp.matmul(theta, phi)
    f_div_c = jax.nn.softmax(f, axis=-1)
    y = jnp.matmul(f_div_c, g)                       # (N, HW, F)
    y = y.transpose(0, 2, 1).reshape(n, f_dim, h, w)
    z = conv1x1(y, wz, bz)                           # (N, C, H, W)
    mean = jnp.mean(z, axis=(1, 2, 3), keepdims=True)
    var = jnp.var(z, axis=(1, 2, 3), keepdims=True)  # biased, like LayerNorm
    zn = (z - mean) / jnp.sqrt(var + _LN_EPS)
    zn = zn * gamma[None] + beta[None]
    return zn + x


if __name__ == "__main__":
    N, C_IN, FILT, H, W = 2, 4, 8, 16, 16

    key = jax.random.PRNGKey(0)
    ks = jax.random.split(key, 11)

    x = jax.random.normal(ks[0], (N, C_IN, H, W), dtype=jnp.float32)

    def uinit(k, shape, fan_in):
        bound = 1.0 / (fan_in ** 0.5)
        return jax.random.uniform(k, shape, minval=-bound, maxval=bound,
                                  dtype=jnp.float32)

    # Conv2d(C_IN -> FILT, 1x1) params for conv1 / theta / phi.
    wg = uinit(ks[1], (FILT, C_IN), C_IN)
    bg = uinit(ks[2], (FILT,), C_IN)
    wt = uinit(ks[3], (FILT, C_IN), C_IN)
    bt = uinit(ks[4], (FILT,), C_IN)
    wp = uinit(ks[5], (FILT, C_IN), C_IN)
    bp = uinit(ks[6], (FILT,), C_IN)
    # W_z: Conv2d(FILT -> C_IN, 1x1) + LayerNorm([C_IN, H, W]).
    wz = uinit(ks[7], (C_IN, FILT), FILT)
    bz = uinit(ks[8], (C_IN,), FILT)
    # The module initializes LN weight/bias to zero (=> out == x); use random
    # affine params here so the test actually exercises the full path.
    gamma = jax.random.normal(ks[9], (C_IN, H, W), dtype=jnp.float32)
    beta = jax.random.normal(ks[10], (C_IN, H, W), dtype=jnp.float32)

    out = nonlocal_block(x, wg, bg, wt, bt, wp, bp, wz, bz, gamma, beta)
    out = jax.block_until_ready(out)

    ref = _reference(x, wg, bg, wt, bt, wp, bp, wz, bz, gamma, beta)
    assert out.shape == (N, C_IN, H, W), out.shape
    max_err = jnp.max(jnp.abs(out - ref))
    assert jnp.allclose(out, ref, atol=1e-4, rtol=1e-4), \
        f"max abs err {max_err}"

    print("KERNEL_OK")
</pallas_src>

<mosaic_0001>
module attributes {stable_mosaic.version = 11 : i64} {
  func.func @_nonlocal_kernel(%arg0: i32, %arg1: memref<256x128xf32, #tpu.memory_space<vmem>>, %arg2: memref<128x384xf32, #tpu.memory_space<vmem>>, %arg3: memref<1x384xf32, #tpu.memory_space<vmem>>, %arg4: memref<128x128xf32, #tpu.memory_space<vmem>>, %arg5: memref<1x128xf32, #tpu.memory_space<vmem>>, %arg6: memref<256x128xf32, #tpu.memory_space<vmem>>, %arg7: memref<256x128xf32, #tpu.memory_space<vmem>>, %arg8: memref<256x128xf32, #tpu.memory_space<vmem>>) attributes {dimension_semantics = [#tpu.dimension_semantics<parallel>], iteration_bounds = array<i64: 2>, scalar_prefetch = 0 : i64, scratch_operands = 0 : i64, tpu.core_type = #tpu.core_type<tc>, window_params = [{transform_indices = @transform_0, window_bounds = array<i64: 256, 128>}, {pipeline_mode = #tpu.pipeline_mode<synchronous>, transform_indices = @transform_1, window_bounds = array<i64: 128, 384>}, {pipeline_mode = #tpu.pipeline_mode<synchronous>, transform_indices = @transform_2, window_bounds = array<i64: 1, 384>}, {pipeline_mode = #tpu.pipeline_mode<synchronous>, transform_indices = @transform_3, window_bounds = array<i64: 128, 128>}, {pipeline_mode = #tpu.pipeline_mode<synchronous>, transform_indices = @transform_4, window_bounds = array<i64: 1, 128>}, {pipeline_mode = #tpu.pipeline_mode<synchronous>, transform_indices = @transform_5, window_bounds = array<i64: 256, 128>}, {pipeline_mode = #tpu.pipeline_mode<synchronous>, transform_indices = @transform_6, window_bounds = array<i64: 256, 128>}, {transform_indices = @transform_7, window_bounds = array<i64: 256, 128>}]} {
    %c0 = arith.constant 0 : index
    %c0_0 = arith.constant 0 : index
    %0 = vector.load %arg1[%c0, %c0_0] : memref<256x128xf32, #tpu.memory_space<vmem>>, vector<256x128xf32>
    %c0_1 = arith.constant 0 : index
    %c0_2 = arith.constant 0 : index
    %1 = vector.load %arg2[%c0_1, %c0_2] : memref<128x384xf32, #tpu.memory_space<vmem>>, vector<128x384xf32>
    %cst = arith.constant dense<0.000000e+00> : vector<256x384xf32>
    %2 = tpu.matmul %0, %1, %cst {dimension_numbers = #tpu.dot_dimension_numbers<[1], [0], [0], [1], [0, 0, 1, 1], [], []>} : vector<256x128xf32>, vector<128x384xf32>, vector<256x384xf32> -> vector<256x384xf32>
    %c0_3 = arith.constant 0 : index
    %c0_4 = arith.constant 0 : index
    %3 = vector.load %arg3[%c0_3, %c0_4] : memref<1x384xf32, #tpu.memory_space<vmem>>, vector<1x384xf32>
    %4 = vector.broadcast %3 : vector<1x384xf32> to vector<256x384xf32>
    %5 = arith.addf %2, %4 : vector<256x384xf32>
    %6 = vector.extract_strided_slice %5 {offsets = [0, 0], sizes = [256, 128], strides = [1, 1]} : vector<256x384xf32> to vector<256x128xf32>
    %7 = vector.extract_strided_slice %5 {offsets = [0, 128], sizes = [256, 128], strides = [1, 1]} : vector<256x384xf32> to vector<256x128xf32>
    %8 = vector.extract_strided_slice %5 {offsets = [0, 256], sizes = [256, 128], strides = [1, 1]} : vector<256x384xf32> to vector<256x128xf32>
    %cst_5 = arith.constant dense<0.000000e+00> : vector<256x256xf32>
    %9 = tpu.matmul %7, %8, %cst_5 {dimension_numbers = #tpu.dot_dimension_numbers<[1], [1], [0], [0], [0, 0, 1, 0], [], []>} : vector<256x128xf32>, vector<256x128xf32>, vector<256x256xf32> -> vector<256x256xf32>
    %cst_6 = arith.constant dense<0xFF800000> : vector<256xf32>
    %10 = vector.multi_reduction <maximumf>, %9, %cst_6 [1] : vector<256x256xf32> to vector<256xf32>
    %11 = vector.shape_cast %10 : vector<256xf32> to vector<256x1xf32>
    %12 = vector.broadcast %11 : vector<256x1xf32> to vector<256x256xf32>
    %13 = arith.subf %9, %12 : vector<256x256xf32>
    %14 = math.exp %13 : vector<256x256xf32>
    %cst_7 = arith.constant dense<0.000000e+00> : vector<256xf32>
    %15 = vector.multi_reduction <add>, %14, %cst_7 [1] : vector<256x256xf32> to vector<256xf32>
    %16 = vector.shape_cast %15 : vector<256xf32> to vector<256x1xf32>
    %17 = vector.broadcast %16 : vector<256x1xf32> to vector<256x256xf32>
    %18 = arith.divf %14, %17 : vector<256x256xf32>
    %cst_8 = arith.constant dense<0.000000e+00> : vector<256x128xf32>
    %19 = tpu.matmul %18, %6, %cst_8 {dimension_numbers = #tpu.dot_dimension_numbers<[1], [0], [0], [1], [0, 0, 1, 1], [], []>} : vector<256x256xf32>, vector<256x128xf32>, vector<256x128xf32> -> vector<256x128xf32>
    %c0_9 = arith.constant 0 : index
    %c0_10 = arith.constant 0 : index
    %20 = vector.load %arg4[%c0_9, %c0_10] : memref<128x128xf32, #tpu.memory_space<vmem>>, vector<128x128xf32>
    %cst_11 = arith.constant dense<0.000000e+00> : vector<256x128xf32>
    %21 = tpu.matmul %19, %20, %cst_11 {dimension_numbers = #tpu.dot_dimension_numbers<[1], [0], [0], [1], [0, 0, 1, 1], [], []>} : vector<256x128xf32>, vector<128x128xf32>, vector<256x128xf32> -> vector<256x128xf32>
    %c0_12 = arith.constant 0 : index
    %c0_13 = arith.constant 0 : index
    %22 = vector.load %arg5[%c0_12, %c0_13] : memref<1x128xf32, #tpu.memory_space<vmem>>, vector<1x128xf32>
    %23 = vector.broadcast %22 : vector<1x128xf32> to vector<256x128xf32>
    %24 = arith.addf %21, %23 : vector<256x128xf32>
    %25 = vector.shape_cast %24 : vector<256x128xf32> to vector<1x256x128xf32>
    %cst_14 = arith.constant dense<0.000000e+00> : vector<1xf32>
    %26 = vector.multi_reduction <add>, %25, %cst_14 [1, 2] : vector<1x256x128xf32> to vector<1xf32>
    %27 = vector.shape_cast %26 : vector<1xf32> to vector<1x1x1xf32>
    %28 = vector.extract %27[0, 0, 0] : f32 from vector<1x1x1xf32>
    %cst_15 = arith.constant 1.024000e+03 : f32
    %29 = arith.divf %28, %cst_15 : f32
    %30 = tpu.iota {dimensions = array<i32: 1>} : vector<256x128xi32>
    %c4_i32 = arith.constant 4 : i32
    %31 = vector.broadcast %c4_i32 : i32 to vector<256x128xi32>
    %32 = arith.cmpi slt, %30, %31 : vector<256x128xi32>
    %33 = vector.broadcast %29 : f32 to vector<256x128xf32>
    %34 = arith.subf %24, %33 : vector<256x128xf32>
    %cst_16 = arith.constant 0.000000e+00 : f32
    %35 = vector.broadcast %cst_16 : f32 to vector<256x128xf32>
    %36 = arith.select %32, %34, %35 : vector<256x128xi1>, vector<256x128xf32>
    %37 = arith.mulf %36, %36 : vector<256x128xf32>
    %38 = vector.shape_cast %37 : vector<256x128xf32> to vector<1x256x128xf32>
    %cst_17 = arith.constant dense<0.000000e+00> : vector<1xf32>
    %39 = vector.multi_reduction <add>, %38, %cst_17 [1, 2] : vector<1x256x128xf32> to vector<1xf32>
    %40 = vector.shape_cast %39 : vector<1xf32> to vector<1x1x1xf32>
    %41 = vector.extract %40[0, 0, 0] : f32 from vector<1x1x1xf32>
    %cst_18 = arith.constant 1.024000e+03 : f32
    %42 = arith.divf %41, %cst_18 : f32
    %cst_19 = arith.constant 9.99999974E-6 : f32
    %43 = arith.addf %42, %cst_19 : f32
    %44 = math.rsqrt %43 : f32
    %45 = vector.broadcast %29 : f32 to vector<256x128xf32>
    %46 = arith.subf %24, %45 : vector<256x128xf32>
    %47 = vector.broadcast %44 : f32 to vector<256x128xf32>
    %48 = arith.mulf %46, %47 : vector<256x128xf32>
    %c0_20 = arith.constant 0 : index
    %c0_21 = arith.constant 0 : index
    %49 = vector.load %arg6[%c0_20, %c0_21] : memref<256x128xf32, #tpu.memory_space<vmem>>, vector<256x128xf32>
    %50 = arith.mulf %48, %49 : vector<256x128xf32>
    %c0_22 = arith.constant 0 : index
    %c0_23 = arith.constant 0 : index
    %51 = vector.load %arg7[%c0_22, %c0_23] : memref<256x128xf32, #tpu.memory_space<vmem>>, vector<256x128xf32>
    %52 = arith.addf %50, %51 : vector<256x128xf32>
    %53 = arith.addf %52, %0 : vector<256x128xf32>
    %c0_24 = arith.constant 0 : index
    %c0_25 = arith.constant 0 : index
    %54 = vector.load %arg8[%c0_24, %c0_25] : memref<256x128xf32, #tpu.memory_space<vmem>>, vector<256x128xf32>
    tpu.vector_store %arg8[%c0_24, %c0_25], %53 {strides = array<i32>} : memref<256x128xf32, #tpu.memory_space<vmem>>, vector<256x128xf32>,
    return
  }
  func.func @transform_0(%arg0: i32) -> (i32, i32) {
    %c0_i32 = arith.constant 0 : i32
    %c0_i32_0 = arith.constant 0 : i32
    return %arg0, %c0_i32 : i32, i32
  }
  func.func @transform_1(%arg0: i32) -> (i32, i32) {
    %c0_i32 = arith.constant 0 : i32
    %c0_i32_0 = arith.constant 0 : i32
    %c0_i32_1 = arith.constant 0 : i32
    return %c0_i32, %c0_i32_0 : i32, i32
  }
  func.func @transform_2(%arg0: i32) -> (i32, i32) {
    %c0_i32 = arith.constant 0 : i32
    %c0_i32_0 = arith.constant 0 : i32
    %c0_i32_1 = arith.constant 0 : i32
    return %c0_i32, %c0_i32_0 : i32, i32
  }
  func.func @transform_3(%arg0: i32) -> (i32, i32) {
    %c0_i32 = arith.constant 0 : i32
    %c0_i32_0 = arith.constant 0 : i32
    %c0_i32_1 = arith.constant 0 : i32
    return %c0_i32, %c0_i32_0 : i32, i32
  }
  func.func @transform_4(%arg0: i32) -> (i32, i32) {
    %c0_i32 = arith.constant 0 : i32
    %c0_i32_0 = arith.constant 0 : i32
    %c0_i32_1 = arith.constant 0 : i32
    return %c0_i32, %c0_i32_0 : i32, i32
  }
  func.func @transform_5(%arg0: i32) -> (i32, i32) {
    %c0_i32 = arith.constant 0 : i32
    %c0_i32_0 = arith.constant 0 : i32
    %c0_i32_1 = arith.constant 0 : i32
    return %c0_i32, %c0_i32_0 : i32, i32
  }
  func.func @transform_6(%arg0: i32) -> (i32, i32) {
    %c0_i32 = arith.constant 0 : i32
    %c0_i32_0 = arith.constant 0 : i32
    %c0_i32_1 = arith.constant 0 : i32
    return %c0_i32, %c0_i32_0 : i32, i32
  }
  func.func @transform_7(%arg0: i32) -> (i32, i32) {
    %c0_i32 = arith.constant 0 : i32
    %c0_i32_0 = arith.constant 0 : i32
    return %arg0, %c0_i32 : i32, i32
  }
}

</mosaic_0001>

<bundles_post_ra>
// kernel: nonlocal_block.1
= control target key start
LH: loop header
LB: loop body
LE: loop exit
PB: predicated region body
PF: predicated region fallthrough
CT: control target
= control target key end

     0   :  { %s3036_s24 = smov 0   ;;  %s5080_s0 = inlined_call_operand.vmem [shape: f32[512,128], index: 0, kind: input, shape index: {}]   ;;  %s5081_s1 = inlined_call_operand.vmem [shape: f32[128,384], index: 1, kind: input, shape index: {}]   ;;  %s5082_s2 = inlined_call_operand.vmem [shape: f32[1,384], index: 2, kind: input, shape index: {}]   ;;  %s5083_s3 = inlined_call_operand.vmem [shape: f32[128,128], index: 3, kind: input, shape index: {}]   ;;  %s5084_s4 = inlined_call_operand.vmem [shape: f32[1,128], index: 4, kind: input, shape index: {}]   ;;  %s5085_s5 = inlined_call_operand.vmem [shape: f32[256,128], index: 5, kind: input, shape index: {}]   ;;  %s5086_s6 = inlined_call_operand.vmem [shape: f32[256,128], index: 6, kind: input, shape index: {}]   ;;  %s5087_s7 = inlined_call_operand.vmem [shape: f32[512,128], index: 7, kind: output, shape index: {}]  }
   0x1 LB: > { %s2682_s25 = sadd.s32 4294967295, %s2993_s24   ;;  %p2686_p0 = scmp.ge.s32.totalorder %s2993_s24, 1  ;;  %s2993_s24 = sphi %s3036_s24, %s17_s24  }
   0x2   : > { %p238_p1 = scmp.lt.s32.totalorder %s2993_s24, 3 }
   0x4   : > { %p239_p2 = pnand %p2686_p0, %p238_p1 }
   0x6   : > { %242 = sbr.rel (%p239_p2) target bundleno = 2164 (0x874), region = 48 }
   0xb   : > { %v361_v0 = vld [vmem:[%s5081_s1 + $0x178] sm:$0xff]  ;;  %v358_v1 = vld [vmem:[%s5081_s1 + $0x160] sm:$0xff]  ;;  %v355_v2 = vld [vmem:[%s5081_s1 + $0x148] sm:$0xff]  ;;  %s2687_s27 = sshll.u32 %s2682_s25, 5 }
   0xc   : > { %596 = vmatpush.msra.mxu2 %v361_v0  ;;  %v352_v3 = vld [vmem:[%s5081_s1 + $0x130] sm:$0xff]  ;;  %v349_v4 = vld [vmem:[%s5081_s1 + $0x118] sm:$0xff]  ;;  %v359_v5 = vld [vmem:[%s5081_s1 + $0x168] sm:$0xff]  ;;  %p271_p3 = scmp.lt.s32.totalorder %s2687_s27, 63 }
   0xd   : > { %v346_v6 = vld [vmem:[%s5081_s1 + $0x100] sm:$0xff]  ;;  %370 = vmatpush.msra.mxu0 %v359_v5  ;;  %v356_v7 = vld [vmem:[%s5081_s1 + $0x150] sm:$0xff]  ;;  %v343_v8 = vld [vmem:[%s5081_s1 + $0xe8] sm:$0xff] }
   0xe   : > { %597 = vmatpush.msra.mxu2 %v358_v1  ;;  %v353_v9 = vld [vmem:[%s5081_s1 + $0x138] sm:$0xff]  ;;  %v340_v10 = vld [vmem:[%s5081_s1 + $0xd0] sm:$0xff]  ;;  %v350_v11 = vld [vmem:[%s5081_s1 + $0x120] sm:$0xff]  ;;  %s5121_s27 = smov (!%p271_p3, %s2687_s27), 63 }
   0xf   : > { %371 = vmatpush.msra.mxu0 %v356_v7  ;;  %v337_v12 = vld [vmem:[%s5081_s1 + $0xb8] sm:$0xff]  ;;  %v347_v13 = vld [vmem:[%s5081_s1 + $0x108] sm:$0xff]  ;;  %v334_v14 = vld [vmem:[%s5081_s1 + $0xa0] sm:$0xff]  ;;  %s2688_s26 = sshll.u32 %s5121_s27, 3 }
  0x10   : > { %598 = vmatpush.msra.mxu2 %v355_v2  ;;  %v344_v15 = vld [vmem:[%s5081_s1 + $0xf0] sm:$0xff]  ;;  %v331_v16 = vld [vmem:[%s5081_s1 + $0x88] sm:$0xff]  ;;  %v341_v17 = vld [vmem:[%s5081_s1 + $0xd8] sm:$0xff]  ;;  %s3127_s14 = scalar_lea.vmem %s5080_s0, %s2688_s26  ;;  %s4843_s25 = scalar_lea.vmem %s5087_s7, %s2688_s26 }
  0x11   : > { %372 = vmatpush.msra.mxu0 %v353_v9  ;;  %v328_v18 = vld [vmem:[%s5081_s1 + $0x70] sm:$0xff]  ;;  %v338_v19 = vld [vmem:[%s5081_s1 + $0xc0] sm:$0xff]  ;;  %v325_v20 = vld [vmem:[%s5081_s1 + $0x58] sm:$0xff] }
  0x12   : > { %599 = vmatpush.msra.mxu2 %v352_v3  ;;  %v335_v21 = vld [vmem:[%s5081_s1 + $0xa8] sm:$0xff]  ;;  %v322_v22 = vld [vmem:[%s5081_s1 + $0x40] sm:$0xff]  ;;  %v332_v23 = vld [vmem:[%s5081_s1 + $0x90] sm:$0xff] }
  0x13   : > { %373 = vmatpush.msra.mxu0 %v350_v11  ;;  %v319_v24 = vld [vmem:[%s5081_s1 + $0x28] sm:$0xff]  ;;  %v329_v25 = vld [vmem:[%s5081_s1 + $0x78] sm:$0xff]  ;;  %v316_v26 = vld [vmem:[%s5081_s1 + $0x10] sm:$0xff] }
  0x14   : > { %600 = vmatpush.msra.mxu2 %v349_v4  ;;  %v3136_v27 = vld [vmem:[%s3127_s14] sm:$0xff]  ;;  %v323_v29 = vld [vmem:[%s5081_s1 + $0x48] sm:$0xff]  ;;  %v320_v30 = vld [vmem:[%s5081_s1 + $0x30] sm:$0xff] }
  0x15   : > { %374 = vmatpush.msra.mxu0 %v347_v13  ;;  %v326_v28 = vld [vmem:[%s5081_s1 + $0x60] sm:$0xff]  ;;  %v317_v31 = vld [vmem:[%s5081_s1 + $0x18] sm:$0xff]  ;;  %v3152_v32 = vld [vmem:[%s3127_s14 + $0x8] sm:$0xff] }
  0x16   : > { %601 = vmatpush.msra.mxu2 %v346_v6  ;;  %v314_v33 = vld [vmem:[%s5081_s1] sm:$0xff]  ;;  %v3160_v34 = vld [vmem:[%s3127_s14 + $0x10] sm:$0xff]  ;;  %v3165_v35 = vld [vmem:[%s3127_s14 + $0x18] sm:$0xff] }
  0x17   : > { %375 = vmatpush.msra.mxu0 %v344_v15  ;;  %v3170_v36 = vld [vmem:[%s3127_s14 + $0x20] sm:$0xff]  ;;  %v3175_v37 = vld [vmem:[%s3127_s14 + $0x28] sm:$0xff]  ;;  %v3180_v38 = vld [vmem:[%s3127_s14 + $0x30] sm:$0xff] }
  0x18   : > { %602 = vmatpush.msra.mxu2 %v343_v8  ;;  %v3185_v39 = vld [vmem:[%s3127_s14 + $0x38] sm:$0xff]  ;;  %v3190_v40 = vld [vmem:[%s3127_s14 + $0x40] sm:$0xff]  ;;  %v3195_v41 = vld [vmem:[%s3127_s14 + $0x48] sm:$0xff] }
  0x19   : > { %376 = vmatpush.msra.mxu0 %v341_v17  ;;  %v3200_v42 = vld [vmem:[%s3127_s14 + $0x50] sm:$0xff]  ;;  %v3205_v43 = vld [vmem:[%s3127_s14 + $0x58] sm:$0xff]  ;;  %v3210_v44 = vld [vmem:[%s3127_s14 + $0x60] sm:$0xff] }
  0x1a   : > { %603 = vmatpush.msra.mxu2 %v340_v10  ;;  %v3215_v45 = vld [vmem:[%s3127_s14 + $0x68] sm:$0xff]  ;;  %v3220_v46 = vld [vmem:[%s3127_s14 + $0x70] sm:$0xff]  ;;  %v3225_v47 = vld [vmem:[%s3127_s14 + $0x78] sm:$0xff] }
  0x1b   : > { %377 = vmatpush.msra.mxu0 %v338_v19  ;;  %v3230_v48 = vld [vmem:[%s3127_s14 + $0x80] sm:$0xff]  ;;  %v3239_v51 = vld [vmem:[%s3127_s14 + $0x88] sm:$0xff]  ;;  %v3248_v54 = vld [vmem:[%s3127_s14 + $0x90] sm:$0xff] }
  0x1c   : > { %604 = vmatpush.msra.mxu2 %v337_v12  ;;  %v3257_v57 = vld [vmem:[%s3127_s14 + $0x98] sm:$0xff]  ;;  %v3266_v60 = vld [vmem:[%s3127_s14 + $0xa0] sm:$0xff]  ;;  %v3275_v63 = vld [vmem:[%s3127_s14 + $0xa8] sm:$0xff] }
  0x1d   : > { %378 = vmatpush.msra.mxu0 %v335_v21  ;;  %5098 = vst [vmem:[#allocation2_spill] sm:$0xff] %v3275_v63  ;;  %v3284_v2 = vld [vmem:[%s3127_s14 + $0xb0] sm:$0xff]  ;;  %v3293_v5 = vld [vmem:[%s3127_s14 + $0xb8] sm:$0xff]  ;;  %v3302_v8 = vld [vmem:[%s3127_s14 + $0xc0] sm:$0xff] }
  0x1e   : > { %605 = vmatpush.msra.mxu2 %v334_v14  ;;  %5099 = vst [vmem:[#allocation3_spill] sm:$0xff] %v3284_v2  ;;  %v3311_v11 = vld [vmem:[%s3127_s14 + $0xc8] sm:$0xff]  ;;  %v3320_v14 = vld [vmem:[%s3127_s14 + $0xd0] sm:$0xff]  ;;  %v3329_v17 = vld [vmem:[%s3127_s14 + $0xd8] sm:$0xff] }
  0x1f   : > { %379 = vmatpush.msra.mxu0 %v332_v23  ;;  %5100 = vst [vmem:[#allocation4_spill] sm:$0xff] %v3293_v5  ;;  %v360_v21 = vld [vmem:[%s5081_s1 + $0x170] sm:$0xff] }
  0x20   : > { %606 = vmatpush.msra.mxu2 %v331_v16  ;;  %5101 = vst [vmem:[#allocation5_spill] sm:$0xff] %v3302_v8  ;;  %483 = vmatpush.msra.mxu1 %v360_v21 }
  0x21   : > { %380 = vmatpush.msra.mxu0 %v329_v25  ;;  %5102 = vst [vmem:[#allocation6_spill] sm:$0xff] %v3311_v11 }
  0x22   : > { %607 = vmatpush.msra.mxu2 %v328_v18  ;;  %5103 = vst [vmem:[#allocation7_spill] sm:$0xff] %v3320_v14 }
  0x23   : > { %381 = vmatpush.msra.mxu0 %v326_v28  ;;  %5104 = vst [vmem:[#allocation8_spill] sm:$0xff] %v3329_v17  ;;  %v351_v28 = vld [vmem:[%s5081_s1 + $0x128] sm:$0xff] }
  0x24   : > { %608 = vmatpush.msra.mxu2 %v325_v20  ;;  %v3338_v20 = vld [vmem:[%s3127_s14 + $0xe0] sm:$0xff] }
  0x25   : > { %382 = vmatpush.msra.mxu0 %v323_v29  ;;  %5105 = vst [vmem:[#allocation9_spill] sm:$0xff] %v3338_v20  ;;  %v348_v29 = vld [vmem:[%s5081_s1 + $0x110] sm:$0xff] }
  0x26   : > { %609 = vmatpush.msra.mxu2 %v322_v22  ;;  %v357_v22 = vld [vmem:[%s5081_s1 + $0x158] sm:$0xff] }
  0x27   : > { %383 = vmatpush.msra.mxu0 %v320_v30  ;;  %484 = vmatpush.msra.mxu1 %v357_v22  ;;  %v345_v30 = vld [vmem:[%s5081_s1 + $0xf8] sm:$0xff]  ;;  %v3371_v22 = vld [vmem:[%s3127_s14 + $0xf0] sm:$0xff] }
  0x28   : > { %610 = vmatpush.msra.mxu2 %v319_v24  ;;  %v354_v24 = vld [vmem:[%s5081_s1 + $0x140] sm:$0xff]  ;;  %5107 = vst [vmem:[#allocation11_spill] sm:$0xff] %v3371_v22 }
  0x29   : > { %384 = vmatpush.msra.mxu0 %v317_v31  ;;  %485 = vmatpush.msra.mxu1 %v354_v24  ;;  %v339_v24 = vld [vmem:[%s5081_s1 + $0xc8] sm:$0xff] }
  0x2a   : > { %611 = vmatpush.msra.mxu2 %v316_v26  ;;  %v3354_v26 = vld [vmem:[%s3127_s14 + $0xe8] sm:$0xff] }
  0x2b   : > { %612 = vmatmul.f32.vlgmr.msra.gmra.mxu2 %v3136_v27  ;;  %385 = vmatpush.msra.mxu0 %v314_v33  ;;  %5106 = vst [vmem:[#allocation10_spill] sm:$0xff] %v3354_v26  ;;  %v342_v33 = vld [vmem:[%s5081_s1 + $0xe0] sm:$0xff] }
  0x2c   : > { %386 = vmatmul.f32.vlgmr.msra.gmra.mxu0 %v3136_v27  ;;  %486 = vmatpush.msra.mxu1 %v351_v28  ;;  %v336_v28 = vld [vmem:[%s5081_s1 + $0xb0] sm:$0xff] }
  0x2e   : > { %487 = vmatpush.msra.mxu1 %v348_v29  ;;  %v333_v29 = vld [vmem:[%s5081_s1 + $0x98] sm:$0xff] }
  0x30   : > { %488 = vmatpush.msra.mxu1 %v345_v30 }
  0x32   : > { %489 = vmatpush.msra.mxu1 %v342_v33  ;;  %v330_v33 = vld [vmem:[%s5081_s1 + $0x80] sm:$0xff] }
  0x33   : > { %615 = vmatmul.f32.gmra.mxu2 %v3152_v32 }
  0x34   : > { %389 = vmatmul.f32.gmra.mxu0 %v3152_v32  ;;  %490 = vmatpush.msra.mxu1 %v339_v24 }
  0x36   : > { %491 = vmatpush.msra.mxu1 %v336_v28  ;;  %v3396_v28 = vld [vmem:[%s5082_s2] sm:$0x7] }
  0x38   : > { %492 = vmatpush.msra.mxu1 %v333_v29  ;;  %v324_v29 = vld [vmem:[%s5081_s1 + $0x50] sm:$0xff] }
  0x3a   : > { %493 = vmatpush.msra.mxu1 %v330_v33  ;;  %v321_v33 = vld [vmem:[%s5081_s1 + $0x38] sm:$0xff] }
  0x3b   : > { %618 = vmatmul.f32.gmra.mxu2 %v3160_v34 }
  0x3c   : > { %392 = vmatmul.f32.gmra.mxu0 %v3160_v34 }
  0x43   : > { %621 = vmatmul.f32.gmra.mxu2 %v3165_v35 }
  0x44   : > { %395 = vmatmul.f32.gmra.mxu0 %v3165_v35 }
  0x4b   : > { %624 = vmatmul.f32.gmra.mxu2 %v3170_v36 }
  0x4c   : > { %398 = vmatmul.f32.gmra.mxu0 %v3170_v36 }
  0x53   : > { %627 = vmatmul.f32.gmra.mxu2 %v3175_v37 }
  0x54   : > { %401 = vmatmul.f32.gmra.mxu0 %v3175_v37 }
  0x5b   : > { %630 = vmatmul.f32.gmra.mxu2 %v3180_v38 }
  0x5c   : > { %404 = vmatmul.f32.gmra.mxu0 %v3180_v38 }
  0x63   : > { %633 = vmatmul.f32.gmra.mxu2 %v3185_v39 }
  0x64   : > { %407 = vmatmul.f32.gmra.mxu0 %v3185_v39 }
  0x6b   : > { %636 = vmatmul.f32.gmra.mxu2 %v3190_v40 }
  0x6c   : > { %410 = vmatmul.f32.gmra.mxu0 %v3190_v40 }
  0x73   : > { %639 = vmatmul.f32.gmra.mxu2 %v3195_v41 }
  0x74   : > { %413 = vmatmul.f32.gmra.mxu0 %v3195_v41 }
  0x7b   : > { %642 = vmatmul.f32.gmra.mxu2 %v3200_v42 }
  0x7c   : > { %416 = vmatmul.f32.gmra.mxu0 %v3200_v42 }
  0x83   : > { %645 = vmatmul.f32.gmra.mxu2 %v3205_v43 }
  0x84   : > { %419 = vmatmul.f32.gmra.mxu0 %v3205_v43 }
  0x8b   : > { %648 = vmatmul.f32.gmra.mxu2 %v3210_v44 }
  0x8c   : > { %422 = vmatmul.f32.gmra.mxu0 %v3210_v44 }
  0x93   : > { %651 = vmatmul.f32.gmra.mxu2 %v3215_v45 }
  0x94   : > { %425 = vmatmul.f32.gmra.mxu0 %v3215_v45 }
  0x9b   : > { %654 = vmatmul.f32.gmra.mxu2 %v3220_v46 }
  0x9c   : > { %428 = vmatmul.f32.gmra.mxu0 %v3220_v46 }
  0xa3   : > { %657 = vmatmul.f32.gmra.mxu2 %v3225_v47 }
  0xa4   : > { %431 = vmatmul.f32.gmra.mxu0 %v3225_v47 }
  0xa9   : > { %v3236_v50 = vpop.f32.mrf.mxu0 }
  0xab   : > { %660 = vmatmul.f32.gmra.mxu2 %v3230_v48 }
  0xac   : > { %434 = vmatmul.f32.gmra.mxu0 %v3230_v48 }
  0xae   : > { %v3234_v49 = vpop.f32.mrf.mxu2 }
  0xb1   : > { %v3245_v53 = vpop.f32.mrf.mxu0 }
  0xb3   : > { %663 = vmatmul.f32.gmra.mxu2 %v3239_v51 }
  0xb4   : > { %437 = vmatmul.f32.gmra.mxu0 %v3239_v51 }
  0xb6   : > { %v3243_v52 = vpop.f32.mrf.mxu2 }
  0xb9   : > { %v3254_v56 = vpop.f32.mrf.mxu0 }
  0xbb   : > { %666 = vmatmul.f32.gmra.mxu2 %v3248_v54 }
  0xbc   : > { %440 = vmatmul.f32.gmra.mxu0 %v3248_v54 }
  0xbe   : > { %v3252_v55 = vpop.f32.mrf.mxu2 }
  0xc1   : > { %v3263_v59 = vpop.f32.mrf.mxu0 }
  0xc3   : > { %669 = vmatmul.f32.gmra.mxu2 %v3257_v57 }
  0xc4   : > { %443 = vmatmul.f32.gmra.mxu0 %v3257_v57 }
  0xc6   : > { %v3261_v58 = vpop.f32.mrf.mxu2 }
  0xc9   : > { %v3272_v62 = vpop.f32.mrf.mxu0 }
  0xcb   : > { %672 = vmatmul.f32.gmra.mxu2 %v3266_v60 }
  0xcc   : > { %446 = vmatmul.f32.gmra.mxu0 %v3266_v60 }
  0xce   : > { %v3270_v61 = vpop.f32.mrf.mxu2 }
  0xd1   : > { %v3281_v1 = vpop.f32.mrf.mxu0 }
  0xd3   : > { %675 = vmatmul.f32.gmra.mxu2 %v3275_v63 }
  0xd4   : > { %449 = vmatmul.f32.gmra.mxu0 %v3275_v63 }
  0xd6   : > { %v3279_v0 = vpop.f32.mrf.mxu2 }
  0xd9   : > { %v3290_v4 = vpop.f32.mrf.mxu0 }
  0xdb   : > { %678 = vmatmul.f32.gmra.mxu2 %v3284_v2 }
  0xdc   : > { %452 = vmatmul.f32.gmra.mxu0 %v3284_v2 }
  0xde   : > { %v3288_v3 = vpop.f32.mrf.mxu2 }
  0xe1   : > { %v3299_v7 = vpop.f32.mrf.mxu0 }
  0xe3   : > { %681 = vmatmul.f32.gmra.mxu2 %v3293_v5 }
  0xe4   : > { %455 = vmatmul.f32.gmra.mxu0 %v3293_v5 }
  0xe6   : > { %v3297_v6 = vpop.f32.mrf.mxu2 }
  0xe9   : > { %v3308_v10 = vpop.f32.mrf.mxu0 }
  0xeb   : > { %684 = vmatmul.f32.gmra.mxu2 %v3302_v8 }
  0xec   : > { %458 = vmatmul.f32.gmra.mxu0 %v3302_v8  ;;  %v315_v8 = vld [vmem:[%s5081_s1 + $0x8] sm:$0xff] }
  0xee   : > { %v3306_v9 = vpop.f32.mrf.mxu2 }
  0xf1   : > { %v3317_v13 = vpop.f32.mrf.mxu0 }
  0xf3   : > { %687 = vmatmul.f32.gmra.mxu2 %v3311_v11 }
  0xf4   : > { %461 = vmatmul.f32.gmra.mxu0 %v3311_v11  ;;  %v3413_v11 = vperm.slane %v3396_v28, 0 }
  0xf6   : > { %v3315_v12 = vpop.f32.mrf.mxu2 }
  0xf9   : > { %v3326_v16 = vpop.f32.mrf.mxu0 }
  0xfb   : > { %690 = vmatmul.f32.gmra.mxu2 %v3320_v14 }
  0xfc   : > { %464 = vmatmul.f32.gmra.mxu0 %v3320_v14  ;;  %v318_v14 = vld [vmem:[%s5081_s1 + $0x20] sm:$0xff] }
  0xfe   : > { %v3324_v15 = vpop.f32.mrf.mxu2 }
 0x101   : > { %v3335_v19 = vpop.f32.mrf.mxu0 }
 0x103   : > { %693 = vmatmul.f32.gmra.mxu2 %v3329_v17 }
 0x104   : > { %467 = vmatmul.f32.gmra.mxu0 %v3329_v17 }
 0x106   : > { %v3333_v18 = vpop.f32.mrf.mxu2 }
 0x109   : > { %v423_v25 = vpop.f32.mrf.mxu0 }
 0x10a   : > { %v424_v63 = vadd.f32 %v423_v25, %v3413_v11  ;;  %v415_v25 = vadd.f32 %v3317_v13, %v3413_v11  ;;  %v406_v13 = vadd.f32 %v3290_v4, %v3413_v11  ;;  %v397_v4 = vadd.f32 %v3263_v59, %v3413_v11 }
 0x10b   : > { %696 = vmatmul.f32.gmra.mxu2 %v3338_v20  ;;  %v388_v59 = vadd.f32 %v3236_v50, %v3413_v11 }
 0x10c   : > { %470 = vmatmul.f32.gmra.mxu0 %v3338_v20  ;;  %v3388_v20 = vld [vmem:[%s3127_s14 + $0xf8] sm:$0xff] }
 0x10e   : > { %v3348_v23 = vpop.f32.mrf.mxu2 }
 0x111   : > { %v426_v21 = vpop.f32.mrf.mxu0 }
 0x113   : > { %699 = vmatmul.f32.gmra.mxu2 %v3354_v26 }
 0x114   : > { %473 = vmatmul.f32.gmra.mxu0 %v3354_v26  ;;  %v327_v26 = vld [vmem:[%s5081_s1 + $0x68] sm:$0xff] }
 0x115   : > { %494 = vmatpush.msra.mxu1 %v327_v26  ;;  %v3407_v26 = vperm.slane %v3396_v28, 2 }
 0x116   : > { %v652_v31 = vpop.f32.mrf.mxu2 }
 0x117   : > { %495 = vmatpush.msra.mxu1 %v324_v29 }
 0x119   : > { %v429_v24 = vpop.f32.mrf.mxu0  ;;  %496 = vmatpush.msra.mxu1 %v321_v33 }
 0x11a   : > { %v430_v33 = vadd.f32 %v429_v24, %v3413_v11 }
 0x11b   : > { %702 = vmatmul.f32.gmra.mxu2 %v3371_v22  ;;  %497 = vmatpush.msra.mxu1 %v318_v14  ;;  %v427_v14 = vadd.f32 %v426_v21, %v3413_v11 }
 0x11c   : > { %476 = vmatmul.f32.gmra.mxu0 %v3371_v22 }
 0x11d   : > { %498 = vmatpush.msra.mxu1 %v315_v8 }
 0x11e   : > { %v655_v30 = vpop.f32.mrf.mxu2  ;;  %499 = vmatmul.f32.vlgmr.msra.gmra.mxu1 %v3136_v27  ;;  %v421_v27 = vadd.f32 %v3335_v19, %v3413_v11  ;;  %v412_v19 = vadd.f32 %v3308_v10, %v3413_v11  ;;  %v403_v10 = vadd.f32 %v3281_v1, %v3413_v11  ;;  %v394_v1 = vadd.f32 %v3254_v56, %v3413_v11 }
 0x11f   : > { %v656_v2 = vadd.f32 %v655_v30, %v3407_v26 }
 0x121   : > { %v432_v29 = vpop.f32.mrf.mxu0 }
 0x122   : > { %v433_v5 = vadd.f32 %v432_v29, %v3413_v11 }
 0x123   : > { %705 = vmatmul.f32.gmra.mxu2 %v3388_v20 }
 0x124   : > { %479 = vmatmul.f32.gmra.mxu0 %v3388_v20  ;;  %1831 = vmatpush.msrb.mxu1 %v433_v5  ;;  %v650_v5 = vadd.f32 %v3348_v23, %v3407_v26  ;;  %v644_v23 = vadd.f32 %v3324_v15, %v3407_v26  ;;  %v638_v15 = vadd.f32 %v3306_v9, %v3407_v26 }
 0x125   : > { %v629_v9 = vadd.f32 %v3279_v0, %v3407_v26  ;;  %v620_v0 = vadd.f32 %v3252_v55, %v3407_v26 }
 0x126   : > { %v658_v17 = vpop.f32.mrf.mxu2  ;;  %1832 = vmatpush.msrb.mxu1 %v430_v33 }
 0x127   : > { %v659_v22 = vadd.f32 %v658_v17, %v3407_v26  ;;  %502 = vmatmul.f32.gmra.mxu1 %v3152_v32  ;;  %v647_v32 = vadd.f32 %v3333_v18, %v3407_v26 }
 0x128   : > { %1833 = vmatpush.msrb.mxu1 %v427_v14 }
 0x129   : > { %709 = vmatpush.xpose.msra.mxu3 %v659_v22  ;;  %v653_v22 = vadd.f32 %v652_v31, %v3407_v26  ;;  %v3429_v8 = vpop.f32.mrf.mxu0 }
 0x12a   : > { %1834 = vmatpush.msrb.mxu1 %v424_v63 }
 0x12c   : > { %1835 = vmatpush.msrb.mxu1 %v421_v27 }
 0x12d   : > { %710 = vmatpush.xpose.msra.mxu3 %v656_v2  ;;  %v418_v2 = vadd.f32 %v3326_v16, %v3413_v11  ;;  %v409_v16 = vadd.f32 %v3299_v7, %v3413_v11  ;;  %v400_v7 = vadd.f32 %v3272_v62, %v3413_v11  ;;  %v391_v62 = vadd.f32 %v3245_v53, %v3413_v11 }
 0x12e   : > { %v3425_v17 = vpop.f32.mrf.mxu2  ;;  %v632_v53 = vadd.f32 %v3288_v3, %v3407_v26 }
 0x12f   : > { %1836 = vmatpush.msrb.mxu1 %v418_v2 }
 0x130   : > { %505 = vmatmul.f32.gmra.mxu1 %v3160_v34  ;;  %v641_v34 = vadd.f32 %v3315_v12, %v3407_v26 }
 0x131   : > { %711 = vmatpush.xpose.msra.mxu3 %v653_v22  ;;  %v3446_v63 = vpop.f32.mrf.mxu0  ;;  %1837 = vmatpush.msrb.mxu1 %v415_v25 }
 0x133   : > { %1838 = vmatpush.msrb.mxu1 %v412_v19 }
 0x135   : > { %712 = vmatpush.xpose.msra.mxu3 %v650_v5  ;;  %1839 = vmatpush.msrb.mxu1 %v409_v16 }
 0x136   : > { %v3440_v31 = vpop.f32.mrf.mxu2 }
 0x137   : > { %1840 = vmatpush.msrb.mxu1 %v406_v13 }
 0x138   : > { %508 = vmatmul.f32.gmra.mxu1 %v3165_v35  ;;  %v635_v35 = vadd.f32 %v3297_v6, %v3407_v26  ;;  %v626_v6 = vadd.f32 %v3270_v61, %v3407_v26 }
 0x139   : > { %713 = vmatpush.xpose.msra.mxu3 %v647_v32  ;;  %v3463_v21 = vpop.f32.mrf.mxu0  ;;  %1841 = vmatpush.msrb.mxu1 %v403_v10 }
 0x13b   : > { %1842 = vmatpush.msrb.mxu1 %v400_v7 }
 0x13d   : > { %714 = vmatpush.xpose.msra.mxu3 %v644_v23  ;;  %1843 = vmatpush.msrb.mxu1 %v397_v4 }
 0x13e   : > { %v3457_v18 = vpop.f32.mrf.mxu2 }
 0x13f   : > { %1844 = vmatpush.msrb.mxu1 %v394_v1 }
 0x140   : > { %511 = vmatmul.f32.gmra.mxu1 %v3170_v36  ;;  %v623_v36 = vadd.f32 %v3261_v58, %v3407_v26  ;;  %v614_v58 = vadd.f32 %v3234_v49, %v3407_v26 }
 0x141   : > { %715 = vmatpush.xpose.msra.mxu3 %v641_v34  ;;  %v3480_v30 = vpop.f32.mrf.mxu0  ;;  %1845 = vmatpush.msrb.mxu1 %v391_v62 }
 0x143   : > { %1846 = vmatpush.msrb.mxu1 %v388_v59 }
 0x145   : > { %716 = vmatpush.xpose.msra.mxu3 %v638_v15 }
 0x146   : > { %v3474_v12 = vpop.f32.mrf.mxu2 }
 0x148   : > { %514 = vmatmul.f32.gmra.mxu1 %v3175_v37  ;;  %v617_v37 = vadd.f32 %v3243_v52, %v3407_v26 }
 0x149   : > { %717 = vmatpush.xpose.msra.mxu3 %v635_v35  ;;  %v3489_v50 = vpop.f32.mrf.mxu0 }
 0x14d   : > { %718 = vmatpush.xpose.msra.mxu3 %v632_v53  ;;  %v3544_v53 = vperm.slane %v3396_v28, 1  ;;  %v442_v28 = vadd.f32 %v3463_v21, %v3413_v11 }
 0x14e   : > { %v3485_v56 = vpop.f32.mrf.mxu2 }
 0x150   : > { %517 = vmatmul.f32.gmra.mxu1 %v3180_v38 }
 0x151   : > { %719 = vmatpush.xpose.msra.mxu3 %v629_v9  ;;  %v3498_v3 = vpop.f32.mrf.mxu0  ;;  %v448_v9 = vadd.f32 %v3489_v50, %v3413_v11  ;;  %v439_v50 = vadd.f32 %v3446_v63, %v3413_v11 }
 0x152   : > { %v451_v59 = vadd.f32 %v3498_v3, %v3413_v11 }
 0x155   : > { %720 = vmatpush.xpose.msra.mxu3 %v626_v6 }
 0x156   : > { %v3494_v24 = vpop.f32.mrf.mxu2 }
 0x158   : > { %520 = vmatmul.f32.gmra.mxu1 %v3185_v39 }
 0x159   : > { %721 = vmatpush.xpose.msra.mxu3 %v623_v36  ;;  %v453_v61 = vpop.f32.mrf.mxu0  ;;  %v445_v36 = vadd.f32 %v3480_v30, %v3413_v11  ;;  %v436_v30 = vadd.f32 %v3429_v8, %v3413_v11  ;;  %v5108_v8 = vld [vmem:[#allocation2_spill] sm:$0xff] }
 0x15d   : > { %722 = vmatpush.xpose.msra.mxu3 %v620_v0 }
 0x15e   : > { %v3503_v29 = vpop.f32.mrf.mxu2 }
 0x15f   : > { %v680_v63 = vadd.f32 %v3503_v29, %v3407_v26 }
 0x160   : > { %523 = vmatmul.f32.gmra.mxu1 %v3190_v40 }
 0x161   : > { %723 = vmatpush.xpose.msra.mxu3 %v617_v37  ;;  %v456_v38 = vpop.f32.mrf.mxu0 }
 0x162   : > { %v457_v15 = vadd.f32 %v456_v38, %v3413_v11  ;;  %v5109_v38 = vld [vmem:[#allocation3_spill] sm:$0xff] }
 0x165   : > { %724 = vmatpush.xpose.msra.mxu3 %v614_v58  ;;  %v674_v58 = vadd.f32 %v3485_v56, %v3407_v26 }
 0x166   : > { %v3510_v33 = vpop.f32.mrf.mxu2 }
 0x167   : > { %v683_v37 = vadd.f32 %v3510_v33, %v3407_v26 }
 0x168   : > { %526 = vmatmul.f32.gmra.mxu1 %v3195_v41 }
 0x169   : > { %v459_v14 = vpop.f32.mrf.mxu0 }
 0x16a   : > { %v460_v4 = vadd.f32 %v459_v14, %v3413_v11  ;;  %v665_v14 = vadd.f32 %v3440_v31, %v3407_v26 }
 0x16e   : > { %v3513_v55 = vpop.f32.mrf.mxu2 }
 0x16f   : > { %v686_v3 = vadd.f32 %v3513_v55, %v3407_v26 }
 0x170   : > { %529 = vmatmul.f32.gmra.mxu1 %v3200_v42 }
 0x171   : > { %v462_v52 = vpop.f32.mrf.mxu0 }
 0x172   : > { %v463_v34 = vadd.f32 %v462_v52, %v3413_v11 }
 0x176   : > { %v688_v22 = vpop.f32.mrf.mxu2 }
 0x178   : > { %532 = vmatmul.f32.gmra.mxu1 %v3205_v43 }
 0x179   : > { %v465_v39 = vpop.f32.mrf.mxu0 }
 0x17e   : > { %v691_v27 = vpop.f32.mrf.mxu2 }
 0x17f   : > { %v692_v62 = vadd.f32 %v691_v27, %v3407_v26 }
 0x180   : > { %535 = vmatmul.f32.gmra.mxu1 %v3210_v44 }
 0x181   : > { %v468_v2 = vpop.f32.mrf.mxu0 }
 0x182   : > { %v469_v10 = vadd.f32 %v468_v2, %v3413_v11 }
 0x186   : > { %v694_v49 = vpop.f32.mrf.mxu2 }
 0x187   : > { %v695_v1 = vadd.f32 %v694_v49, %v3407_v26  ;;  %v5112_v49 = vld [vmem:[#allocation6_spill] sm:$0xff] }
 0x188   : > { %538 = vmatmul.f32.gmra.mxu1 %v3215_v45 }
 0x189   : > { %v471_v25 = vpop.f32.mrf.mxu0 }
 0x18e   : > { %v697_v5 = vpop.f32.mrf.mxu2 }
 0x18f   : > { %v698_v7 = vadd.f32 %v697_v5, %v3407_v26 }
 0x190   : > { %541 = vmatmul.f32.gmra.mxu1 %v3220_v46 }
 0x191   : > { %v474_v19 = vpop.f32.mrf.mxu0 }
 0x192   : > { %v475_v46 = vadd.f32 %v474_v19, %v3413_v11  ;;  %v5117_v19 = vld [vmem:[#allocation11_spill] sm:$0xff] }
 0x196   : > { %v700_v40 = vpop.f32.mrf.mxu2 }
 0x197   : > { %v701_v23 = vadd.f32 %v700_v40, %v3407_v26  ;;  %v5116_v40 = vld [vmem:[#allocation10_spill] sm:$0xff] }
 0x198   : > { %544 = vmatmul.f32.gmra.mxu1 %v3225_v47  ;;  %v472_v47 = vadd.f32 %v471_v25, %v3413_v11  ;;  %v5115_v25 = vld [vmem:[#allocation9_spill] sm:$0xff] }
 0x199   : > { %v477_v32 = vpop.f32.mrf.mxu0 }
 0x19a   : > { %v478_v44 = vadd.f32 %v477_v32, %v3413_v11 }
 0x19b   : > { %v500_v35 = vpop.f32.mrf.mxu1 }
 0x19c   : > { %v501_v6 = vadd.f32 %v500_v35, %v3544_v53 }
 0x19e   : > { %v703_v41 = vpop.f32.mrf.mxu2  ;;  %725 = vmatmul.f32.vlgmr.msra.gmra.mxu3 %v501_v6 }
 0x19f   : > { %v704_v45 = vadd.f32 %v703_v41, %v3407_v26 }
 0x1a0   : > { %547 = vmatmul.f32.gmra.mxu1 %v3230_v48  ;;  %v466_v48 = vadd.f32 %v465_v39, %v3413_v11 }
 0x1a1   : > { %v480_v43 = vpop.f32.mrf.mxu0 }
 0x1a2   : > { %v481_v13 = vadd.f32 %v480_v43, %v3413_v11 }
 0x1a4   : > { %1944 = vmatpush.msrb.mxu2 %v481_v13  ;;  %v503_v0 = vpop.f32.mrf.mxu1 }
 0x1a6   : > { %v706_v42 = vpop.f32.mrf.mxu2  ;;  %1945 = vmatpush.msrb.mxu2 %v478_v44 }
 0x1a7   : > { %v707_v16 = vadd.f32 %v706_v42, %v3407_v26 }
 0x1a8   : > { %1946 = vmatpush.msrb.mxu2 %v475_v46  ;;  %550 = vmatmul.f32.gmra.mxu1 %v3239_v51  ;;  %v454_v51 = vadd.f32 %v453_v61, %v3413_v11  ;;  %v677_v61 = vadd.f32 %v3494_v24, %v3407_v26  ;;  %v668_v24 = vadd.f32 %v3457_v18, %v3407_v26  ;;  %v5111_v18 = vld [vmem:[#allocation5_spill] sm:$0xff] }
 0x1a9   : > { %822 = vmatpush.xpose.msrb.mxu0 %v707_v16 }
 0x1aa   : > { %1947 = vmatpush.msrb.mxu2 %v472_v47 }
 0x1ac   : > { %1948 = vmatpush.msrb.mxu2 %v469_v10 }
 0x1ad   : > { %823 = vmatpush.xpose.msrb.mxu0 %v704_v45  ;;  %v506_v21 = vpop.f32.mrf.mxu1 }
 0x1ae   : > { %1949 = vmatpush.msrb.mxu2 %v466_v48  ;;  %v507_v11 = vadd.f32 %v506_v21, %v3544_v53 }
 0x1b0   : > { %1950 = vmatpush.msrb.mxu2 %v463_v34  ;;  %553 = vmatmul.f32.gmra.mxu1 %v3248_v54  ;;  %v689_v54 = vadd.f32 %v688_v22, %v3407_v26  ;;  %v5110_v22 = vld [vmem:[#allocation4_spill] sm:$0xff] }
 0x1b1   : > { %824 = vmatpush.xpose.msrb.mxu0 %v701_v23 }
 0x1b2   : > { %1951 = vmatpush.msrb.mxu2 %v460_v4 }
 0x1b4   : > { %1952 = vmatpush.msrb.mxu2 %v457_v15 }
 0x1b5   : > { %825 = vmatpush.xpose.msrb.mxu0 %v698_v7  ;;  %v509_v33 = vpop.f32.mrf.mxu1 }
 0x1b6   : > { %1953 = vmatpush.msrb.mxu2 %v454_v51  ;;  %v510_v29 = vadd.f32 %v509_v33, %v3544_v53 }
 0x1b8   : > { %1954 = vmatpush.msrb.mxu2 %v451_v59  ;;  %556 = vmatmul.f32.gmra.mxu1 %v3257_v57  ;;  %v504_v57 = vadd.f32 %v503_v0, %v3544_v53 }
 0x1b9   : > { %826 = vmatpush.xpose.msrb.mxu0 %v695_v1 }
 0x1ba   : > { %1955 = vmatpush.msrb.mxu2 %v448_v9  ;;  %728 = vmatmul.f32.gmra.mxu3 %v504_v57 }
 0x1bc   : > { %1956 = vmatpush.msrb.mxu2 %v445_v36 }
 0x1bd   : > { %827 = vmatpush.xpose.msrb.mxu0 %v692_v62  ;;  %v512_v55 = vpop.f32.mrf.mxu1 }
 0x1be   : > { %1957 = vmatpush.msrb.mxu2 %v442_v28  ;;  %v513_v56 = vadd.f32 %v512_v55, %v3544_v53 }
 0x1c0   : > { %1958 = vmatpush.msrb.mxu2 %v439_v50  ;;  %559 = vmatmul.f32.gmra.mxu1 %v3266_v60  ;;  %v671_v60 = vadd.f32 %v3474_v12, %v3407_v26  ;;  %v662_v12 = vadd.f32 %v3425_v17, %v3407_v26  ;;  %v5113_v26 = vld [vmem:[#allocation7_spill] sm:$0xff]  ;;  %v5114_v17 = vld [vmem:[#allocation8_spill] sm:$0xff] }
 0x1c1   : > { %828 = vmatpush.xpose.msrb.mxu0 %v689_v54 }
 0x1c2   : > { %1959 = vmatpush.msrb.mxu2 %v436_v30  ;;  %731 = vmatmul.f32.gmra.mxu3 %v507_v11 }
 0x1c5   : > { %829 = vmatpush.xpose.msrb.mxu0 %v686_v3  ;;  %v515_v52 = vpop.f32.mrf.mxu1 }
 0x1c6   : > { %v516_v27 = vadd.f32 %v515_v52, %v3544_v53 }
 0x1c8   : > { %562 = vmatmul.f32.gmra.mxu1 %v5108_v8 }
 0x1c9   : > { %830 = vmatpush.xpose.msrb.mxu0 %v683_v37 }
 0x1ca   : > { %734 = vmatmul.f32.gmra.mxu3 %v510_v29 }
 0x1cd   : > { %831 = vmatpush.xpose.msrb.mxu0 %v680_v63  ;;  %v518_v39 = vpop.f32.mrf.mxu1 }
 0x1ce   : > { %v519_v31 = vadd.f32 %v518_v39, %v3544_v53 }
 0x1d0   : > { %565 = vmatmul.f32.gmra.mxu1 %v5109_v38 }
 0x1d1   : > { %832 = vmatpush.xpose.msrb.mxu0 %v677_v61 }
 0x1d2   : > { %737 = vmatmul.f32.gmra.mxu3 %v513_v56 }
 0x1d5   : > { %833 = vmatpush.xpose.msrb.mxu0 %v674_v58  ;;  %v521_v2 = vpop.f32.mrf.mxu1 }
 0x1d6   : > { %v522_v5 = vadd.f32 %v521_v2, %v3544_v53 }
 0x1d8   : > { %568 = vmatmul.f32.gmra.mxu1 %v5110_v22 }
 0x1d9   : > { %834 = vmatpush.xpose.msrb.mxu0 %v671_v60 }
 0x1da   : > { %740 = vmatmul.f32.gmra.mxu3 %v516_v27 }
 0x1dd   : > { %835 = vmatpush.xpose.msrb.mxu0 %v668_v24  ;;  %v524_v41 = vpop.f32.mrf.mxu1 }
 0x1de   : > { %v525_v32 = vadd.f32 %v524_v41, %v3544_v53 }
 0x1e0   : > { %571 = vmatmul.f32.gmra.mxu1 %v5111_v18 }
 0x1e1   : > { %836 = vmatpush.xpose.msrb.mxu0 %v665_v14 }
 0x1e2   : > { %743 = vmatmul.f32.gmra.mxu3 %v519_v31 }
 0x1e5   : > { %837 = vmatpush.xpose.msrb.mxu0 %v662_v12  ;;  %v527_v42 = vpop.f32.mrf.mxu1 }
 0x1e6   : > { %v528_v16 = vadd.f32 %v527_v42, %v3544_v53 }
 0x1e8   : > { %838 = vmatmul.f32.vlgmr.msrb.gmra.mxu0 %v501_v6  ;;  %574 = vmatmul.f32.gmra.mxu1 %v5112_v49 }
 0x1ea   : > { %746 = vmatmul.f32.gmra.mxu3 %v522_v5 }
 0x1ed   : > { %v530_v43 = vpop.f32.mrf.mxu1 }
 0x1ee   : > { %v531_v13 = vadd.f32 %v530_v43, %v3544_v53 }
 0x1f0   : > { %841 = vmatmul.f32.gmra.mxu0 %v504_v57  ;;  %577 = vmatmul.f32.gmra.mxu1 %v5113_v26 }
 0x1f2   : > { %749 = vmatmul.f32.gmra.mxu3 %v525_v32 }
 0x1f5   : > { %v533_v45 = vpop.f32.mrf.mxu1 }
 0x1f8   : > { %844 = vmatmul.f32.gmra.mxu0 %v507_v11  ;;  %580 = vmatmul.f32.gmra.mxu1 %v5114_v17 }
 0x1fa   : > { %752 = vmatmul.f32.gmra.mxu3 %v528_v16 }
 0x1fd   : > { %v536_v47 = vpop.f32.mrf.mxu1 }
 0x1fe   : > { %v537_v23 = vadd.f32 %v536_v47, %v3544_v53 }
 0x200   : > { %847 = vmatmul.f32.gmra.mxu0 %v510_v29  ;;  %583 = vmatmul.f32.gmra.mxu1 %v5115_v25 }
 0x202   : > { %755 = vmatmul.f32.gmra.mxu3 %v531_v13 }
 0x205   : > { %v539_v34 = vpop.f32.mrf.mxu1 }
 0x206   : > { %v540_v4 = vadd.f32 %v539_v34, %v3544_v53 }
 0x208   : > { %850 = vmatmul.f32.gmra.mxu0 %v513_v56  ;;  %586 = vmatmul.f32.gmra.mxu1 %v5116_v40 }
 0x20d   : > { %v542_v51 = vpop.f32.mrf.mxu1 }
 0x20e   : > { %v543_v59 = vadd.f32 %v542_v51, %v3544_v53 }
 0x210   : > { %853 = vmatmul.f32.gmra.mxu0 %v516_v27  ;;  %589 = vmatmul.f32.gmra.mxu1 %v5117_v19 }
 0x215   : > { %v545_v54 = vpop.f32.mrf.mxu1 }
 0x216   : > { %v546_v6 = vadd.f32 %v545_v54, %v3544_v53 }
 0x218   : > { %856 = vmatmul.f32.gmra.mxu0 %v519_v31  ;;  %592 = vmatmul.f32.gmra.mxu1 %v3388_v20  ;;  %v534_v20 = vadd.f32 %v533_v45, %v3544_v53 }
 0x21a   : > { %758 = vmatmul.f32.gmra.mxu3 %v534_v20 }
 0x21d   : > { %v548_v33 = vpop.f32.mrf.mxu1 }
 0x21e   : > { %v549_v60 = vadd.f32 %v548_v33, %v3544_v53 }
 0x220   : > { %859 = vmatmul.f32.gmra.mxu0 %v522_v5 }
 0x221   : > { %v3599_v44 = vpop.f32.mrf.mxu3 }
 0x222   : > { %761 = vmatmul.f32.gmra.mxu3 %v537_v23 }
 0x225   : > { %v551_v29 = vpop.f32.mrf.mxu1 }
 0x226   : > { %v552_v38 = vadd.f32 %v551_v29, %v3544_v53 }
 0x228   : > { %862 = vmatmul.f32.gmra.mxu0 %v525_v32 }
 0x22a   : > { %764 = vmatmul.f32.gmra.mxu3 %v540_v4 }
 0x22d   : > { %v554_v56 = vpop.f32.mrf.mxu1 }
 0x22e   : > { %v555_v22 = vadd.f32 %v554_v56, %v3544_v53 }
 0x230   : > { %865 = vmatmul.f32.gmra.mxu0 %v528_v16 }
 0x232   : > { %767 = vmatmul.f32.gmra.mxu3 %v543_v59 }
 0x235   : > { %v557_v2 = vpop.f32.mrf.mxu1 }
 0x236   : > { %v558_v5 = vadd.f32 %v557_v2, %v3544_v53 }
 0x238   : > { %868 = vmatmul.f32.gmra.mxu0 %v531_v13 }
 0x23a   : > { %770 = vmatmul.f32.gmra.mxu3 %v546_v6 }
 0x23d   : > { %v3602_v46 = vpop.f32.mrf.mxu3  ;;  %v560_v13 = vpop.f32.mrf.mxu1 }
 0x240   : > { %871 = vmatmul.f32.gmra.mxu0 %v534_v20 }
 0x242   : > { %773 = vmatmul.f32.gmra.mxu3 %v549_v60 }
 0x245   : > { %v3606_v7 = vpop.f32.mrf.mxu3 }
 0x248   : > { %874 = vmatmul.f32.gmra.mxu0 %v537_v23 }
 0x24a   : > { %776 = vmatmul.f32.gmra.mxu3 %v552_v38 }
 0x24d   : > { %v3613_v62 = vpop.f32.mrf.mxu3 }
 0x250   : > { %877 = vmatmul.f32.gmra.mxu0 %v540_v4 }
 0x252   : > { %779 = vmatmul.f32.gmra.mxu3 %v555_v22 }
 0x255   : > { %v3623_v28 = vpop.f32.mrf.mxu3 }
 0x258   : > { %880 = vmatmul.f32.gmra.mxu0 %v543_v59 }
 0x25a   : > { %782 = vmatmul.f32.gmra.mxu3 %v558_v5 }
 0x25d   : > { %v3631_v30 = vpop.f32.mrf.mxu3 }
 0x260   : > { %883 = vmatmul.f32.gmra.mxu0 %v546_v6 }
 0x265   : > { %v839_v10 = vpop.f32.mrf.mxu0  ;;  %v3637_v63 = vpop.f32.mrf.mxu3 }
 0x266   : > { %v935_v48 = vmax.f32 %v3599_v44, %v839_v10 }
 0x268   : > { %936 = vmax.xlane.f32.xlu0 %v935_v48  ;;  %886 = vmatmul.f32.gmra.mxu0 %v549_v60 }
 0x26d   : > { %v3609_v1 = vpop.f32.mrf.mxu0  ;;  %v3643_v11 = vpop.f32.mrf.mxu3 }
 0x26e   : > { %v938_v15 = vmax.f32 %v3602_v46, %v3609_v1 }
 0x270   : > { %939 = vmax.xlane.f32.xlu0 %v938_v15  ;;  %889 = vmatmul.f32.gmra.mxu0 %v552_v38  ;;  %v563_v15 = vpop.f32.mrf.mxu1 }
 0x271   : > { %v564_v51 = vadd.f32 %v563_v15, %v3544_v53 }
 0x275   : > { %v3616_v35 = vpop.f32.mrf.mxu0  ;;  %v3653_v27 = vpop.f32.mrf.mxu3 }
 0x276   : > { %v941_v9 = vmax.f32 %v3606_v7, %v3616_v35 }
 0x278   : > { %942 = vmax.xlane.f32.xlu1 %v941_v9  ;;  %892 = vmatmul.f32.gmra.mxu0 %v555_v22 }
 0x27d   : > { %v3621_v36 = vpop.f32.mrf.mxu0  ;;  %v3666_v41 = vpop.f32.mrf.mxu3 }
 0x27e   : > { %v944_v3 = vmax.f32 %v3613_v62, %v3621_v36 }
 0x280   : > { %945 = vmax.xlane.f32.xlu1 %v944_v3  ;;  %895 = vmatmul.f32.gmra.mxu0 %v558_v5 }
 0x285   : > { %v3627_v50 = vpop.f32.mrf.mxu0  ;;  %v3681_v48 = vpop.f32.mrf.mxu3 }
 0x286   : > { %v947_v0 = vmax.f32 %v3623_v28, %v3627_v50 }
 0x288   : > { %948 = vmax.xlane.f32.xlu2 %v947_v0 }
 0x28d   : > { %v3633_v37 = vpop.f32.mrf.mxu0 }
 0x28e   : > { %v950_v57 = vmax.f32 %v3631_v30, %v3633_v37 }
 0x290   : > { %951 = vmax.xlane.f32.xlu2 %v950_v57  ;;  %v566_v57 = vpop.f32.mrf.mxu1 }
 0x291   : > { %v567_v33 = vadd.f32 %v566_v57, %v3544_v53 }
 0x295   : > { %v3639_v21 = vpop.f32.mrf.mxu0 }
 0x296   : > { %v953_v61 = vmax.f32 %v3637_v63, %v3639_v21 }
 0x298   : > { %954 = vmax.xlane.f32.xlu0 %v953_v61  ;;  %v569_v22 = vpop.f32.mrf.mxu1 }
 0x29d   : > { %v3645_v8 = vpop.f32.mrf.mxu0  ;;  %v3698_v61 = vpop.f32.mrf.mxu3 }
 0x29e   : > { %v956_v58 = vmax.f32 %v3643_v11, %v3645_v8 }
 0x2a0   : > { %957 = vmax.xlane.f32.xlu2 %v956_v58 }
 0x2a5   : > { %v3655_v18 = vpop.f32.mrf.mxu0  ;;  %v3718_v2 = vpop.f32.mrf.mxu3 }
 0x2ad   : > { %v3668_v32 = vpop.f32.mrf.mxu0 }
 0x2b5   : > { %v3683_v34 = vpop.f32.mrf.mxu0 }
 0x2bd   : > { %v3700_v58 = vpop.f32.mrf.mxu0 }
 0x2c5   : > { %v3720_v5 = vpop.f32.mrf.mxu0 }
 0x2db   : > { %v937_v24 = vpop.xlane.xlu0 %936 }
 0x2dc   : > { %v1031_v55 = vsub.f32 %v3599_v44, %v937_v24  ;;  %v1032_v14 = vsub.f32 %v839_v10, %v937_v24  ;;  %v561_v44 = vadd.f32 %v560_v13, %v3544_v53  ;;  %v959_v10 = vmax.f32 %v3653_v27, %v3655_v18 }
 0x2de   : > { %v1095_v12 = vmul.f32 1.442695, %v1031_v55  ;;  %v1097_v52 = vmul.f32 1.442695, %v1032_v14  ;;  %785 = vmatmul.f32.gmra.mxu3 %v561_v44  ;;  %898 = vmatmul.f32.gmra.mxu0 %v561_v44 }
 0x2e0   : > { %2759 = vpow2.f32 %v1095_v12  ;;  %v570_v12 = vadd.f32 %v569_v22, %v3544_v53 }
 0x2e1   : > { %2761 = vpow2.f32 %v1097_v52 }
 0x2e3   : > { %v940_v39 = vpop.xlane.xlu0 %939 }
 0x2e4   : > { %v1033_v31 = vsub.f32 %v3602_v46, %v940_v39  ;;  %v1034_v49 = vsub.f32 %v3609_v1, %v940_v39 }
 0x2e6   : > { %v3660_v26 = vpop.eup %2759  ;;  %v1099_v17 = vmul.f32 1.442695, %v1033_v31  ;;  %v1101_v25 = vmul.f32 1.442695, %v1034_v49  ;;  %788 = vmatmul.f32.gmra.mxu3 %v564_v51  ;;  %901 = vmatmul.f32.gmra.mxu0 %v564_v51 }
 0x2e7   : > { %v3662_v40 = vpop.eup %2761 }
 0x2e8   : > { %2763 = vpow2.f32 %v1099_v17  ;;  %v1223_v19 = vadd.f32 %v3662_v40, %v3660_v26 }
 0x2e9   : > { %2765 = vpow2.f32 %v1101_v25 }
 0x2ea   : > { %1224 = vadd.xlane.f32.xlu1 %v1223_v19 }
 0x2eb   : > { %v943_v42 = vpop.xlane.xlu1 %942 }
 0x2ec   : > { %v1035_v16 = vsub.f32 %v3606_v7, %v943_v42  ;;  %v1036_v43 = vsub.f32 %v3616_v35, %v943_v42 }
 0x2ee   : > { %v3673_v45 = vpop.eup %2763  ;;  %v1103_v20 = vmul.f32 1.442695, %v1035_v16  ;;  %v1105_v46 = vmul.f32 1.442695, %v1036_v43  ;;  %791 = vmatmul.f32.gmra.mxu3 %v567_v33  ;;  %904 = vmatmul.f32.gmra.mxu0 %v567_v33  ;;  %v572_v33 = vpop.f32.mrf.mxu1 }
 0x2ef   : > { %v3675_v47 = vpop.eup %2765 }
 0x2f0   : > { %2767 = vpow2.f32 %v1103_v20  ;;  %v1226_v23 = vadd.f32 %v3675_v47, %v3673_v45  ;;  %v971_v20 = vmax.f32 %v3718_v2, %v3720_v5 }
 0x2f1   : > { %2769 = vpow2.f32 %v1105_v46  ;;  %v3736_v46 = vpop.f32.mrf.mxu3 }
 0x2f2   : > { %1227 = vadd.xlane.f32.xlu0 %v1226_v23  ;;  %960 = vmax.xlane.f32.xlu1 %v959_v10  ;;  %v3738_v23 = vpop.f32.mrf.mxu0 }
 0x2f3   : > { %v946_v7 = vpop.xlane.xlu1 %945 }
 0x2f4   : > { %v1037_v4 = vsub.f32 %v3613_v62, %v946_v7  ;;  %v1038_v1 = vsub.f32 %v3621_v36, %v946_v7  ;;  %v962_v62 = vmax.f32 %v3666_v41, %v3668_v32 }
 0x2f6   : > { %v3688_v59 = vpop.eup %2767  ;;  %v1107_v35 = vmul.f32 1.442695, %v1037_v4  ;;  %v1109_v9 = vmul.f32 1.442695, %v1038_v1  ;;  %794 = vmatmul.f32.gmra.mxu3 %v570_v12  ;;  %907 = vmatmul.f32.gmra.mxu0 %v570_v12 }
 0x2f7   : > { %v3690_v54 = vpop.eup %2769 }
 0x2f8   : > { %2771 = vpow2.f32 %v1107_v35  ;;  %v1229_v6 = vadd.f32 %v3690_v54, %v3688_v59  ;;  %v974_v35 = vmax.f32 %v3736_v46, %v3738_v23 }
 0x2f9   : > { %2773 = vpow2.f32 %v1109_v9  ;;  %v3750_v9 = vpop.f32.mrf.mxu3 }
 0x2fa   : > { %1230 = vadd.xlane.f32.xlu2 %v1229_v6  ;;  %963 = vmax.xlane.f32.xlu0 %v962_v62 }
 0x2fb   : > { %v949_v36 = vpop.xlane.xlu2 %948 }
 0x2fc   : > { %v1039_v3 = vsub.f32 %v3623_v28, %v949_v36  ;;  %v1040_v0 = vsub.f32 %v3627_v50, %v949_v36  ;;  %v965_v50 = vmax.f32 %v3681_v48, %v3683_v34 }
 0x2fe   : > { %v3703_v60 = vpop.eup %2771  ;;  %v1111_v29 = vmul.f32 1.442695, %v1039_v3  ;;  %v1113_v38 = vmul.f32 1.442695, %v1040_v0 }
 0x2ff   : > { %v3705_v24 = vpop.eup %2773 }
 0x300   : > { %2775 = vpow2.f32 %v1111_v29  ;;  %v1232_v28 = vadd.f32 %v3705_v24, %v3703_v60  ;;  %v573_v29 = vadd.f32 %v572_v33, %v3544_v53 }
 0x301   : > { %2777 = vpow2.f32 %v1113_v38  ;;  %v3762_v3 = vpop.f32.mrf.mxu3 }
 0x302   : > { %1233 = vadd.xlane.f32.xlu1 %v1232_v28  ;;  %966 = vmax.xlane.f32.xlu2 %v965_v50  ;;  %v575_v28 = vpop.f32.mrf.mxu1 }
 0x303   : > { %v952_v55 = vpop.xlane.xlu2 %951  ;;  %797 = vmatmul.f32.gmra.mxu3 %v573_v29  ;;  %910 = vmatmul.f32.gmra.mxu0 %v573_v29  ;;  %v576_v50 = vadd.f32 %v575_v28, %v3544_v53 }
 0x304   : > { %v1041_v14 = vsub.f32 %v3631_v30, %v952_v55  ;;  %v1042_v56 = vsub.f32 %v3633_v37, %v952_v55  ;;  %v968_v37 = vmax.f32 %v3698_v61, %v3700_v58 }
 0x306   : > { %v3714_v52 = vpop.eup %2775  ;;  %v1115_v39 = vmul.f32 1.442695, %v1041_v14  ;;  %v1117_v31 = vmul.f32 1.442695, %v1042_v56 }
 0x307   : > { %v3716_v49 = vpop.eup %2777 }
 0x308   : > { %2779 = vpow2.f32 %v1115_v39  ;;  %v1235_v30 = vadd.f32 %v3716_v49, %v3714_v52 }
 0x309   : > { %2781 = vpow2.f32 %v1117_v31 }
 0x30a   : > { %1236 = vadd.xlane.f32.xlu0 %v1235_v30  ;;  %969 = vmax.xlane.f32.xlu1 %v968_v37  ;;  %v578_v39 = vpop.f32.mrf.mxu1 }
 0x30b   : > { %v955_v17 = vpop.xlane.xlu0 %954  ;;  %800 = vmatmul.f32.gmra.mxu3 %v576_v50  ;;  %913 = vmatmul.f32.gmra.mxu0 %v576_v50  ;;  %v579_v37 = vadd.f32 %v578_v39, %v3544_v53 }
 0x30c   : > { %v1043_v25 = vsub.f32 %v3637_v63, %v955_v17  ;;  %v1044_v19 = vsub.f32 %v3639_v21, %v955_v17 }
 0x30e   : > { %v3728_v42 = vpop.eup %2779  ;;  %v1119_v16 = vmul.f32 1.442695, %v1043_v25  ;;  %v1121_v43 = vmul.f32 1.442695, %v1044_v19  ;;  %v3776_v25 = vpop.f32.mrf.mxu3 }
 0x30f   : > { %v3730_v13 = vpop.eup %2781 }
 0x310   : > { %2783 = vpow2.f32 %v1119_v16  ;;  %v1238_v44 = vadd.f32 %v3730_v13, %v3728_v42 }
 0x311   : > { %2785 = vpow2.f32 %v1121_v43 }
 0x312   : > { %1239 = vadd.xlane.f32.xlu2 %v1238_v44  ;;  %972 = vmax.xlane.f32.xlu0 %v971_v20 }
 0x313   : > { %v958_v63 = vpop.xlane.xlu2 %957  ;;  %803 = vmatmul.f32.gmra.mxu3 %v579_v37  ;;  %916 = vmatmul.f32.gmra.mxu0 %v579_v37 }
 0x314   : > { %v1045_v21 = vsub.f32 %v3643_v11, %v958_v63  ;;  %v1046_v10 = vsub.f32 %v3645_v8, %v958_v63  ;;  %v3752_v11 = vpop.f32.mrf.mxu0 }
 0x315   : > { %v977_v36 = vmax.f32 %v3750_v9, %v3752_v11 }
 0x316   : > { %v3742_v7 = vpop.eup %2783  ;;  %v1123_v4 = vmul.f32 1.442695, %v1045_v21  ;;  %v1125_v1 = vmul.f32 1.442695, %v1046_v10  ;;  %v3797_v39 = vpop.f32.mrf.mxu3 }
 0x317   : > { %v3744_v15 = vpop.eup %2785 }
 0x318   : > { %2787 = vpow2.f32 %v1123_v4  ;;  %v1241_v51 = vadd.f32 %v3744_v15, %v3742_v7 }
 0x319   : > { %2789 = vpow2.f32 %v1125_v1 }
 0x31a   : > { %1242 = vadd.xlane.f32.xlu1 %v1241_v51  ;;  %975 = vmax.xlane.f32.xlu2 %v974_v35  ;;  %v581_v35 = vpop.f32.mrf.mxu1 }
 0x31c   : > { %v3764_v0 = vpop.f32.mrf.mxu0 }
 0x31d   : > { %v980_v57 = vmax.f32 %v3762_v3, %v3764_v0 }
 0x31e   : > { %v3754_v8 = vpop.eup %2787 }
 0x31f   : > { %v3756_v6 = vpop.eup %2789 }
 0x320   : > { %v1244_v62 = vadd.f32 %v3756_v6, %v3754_v8 }
 0x322   : > { %1245 = vadd.xlane.f32.xlu0 %v1244_v62  ;;  %978 = vmax.xlane.f32.xlu1 %v977_v36 }
 0x324   : > { %v3778_v19 = vpop.f32.mrf.mxu0 }
 0x32a   : > { %981 = vmax.xlane.f32.xlu0 %v980_v57 }
 0x35d   : > { %v1225_v38 = vpop.xlane.xlu1 %1224 }
 0x35e   : > { %2791 = vrcp.f32 %v1225_v38  ;;  %v1330_v43 = vand.u32 2147483648, %v1225_v38  ;;  %v1328_v20 = vand.u32 2147483647, %v1225_v38  ;;  %vm1324_vm1 = vweird.f32 %v1225_v38 }
 0x360   : > { %vm1329_vm3 = vcmp.eq.f32.partialorder %v1328_v20, 8.507059e+37 }
 0x364   : > { %v2792_v55 = vpop.eup %2791 }
 0x365   : > { %v1320_v14 = vmul.f32 %v2792_v55, %v1225_v38  ;;  %v3770_v56 = vpop.xlane.xlu0 %1227  ;;  %v961_v22 = vpop.xlane.xlu1 %960  ;;  %vm1325_vm0 = vweird.f32 %v2792_v55 }
 0x366   : > { %2793 = vrcp.f32 %v3770_v56  ;;  %v1047_v12 = vsub.f32 %v3653_v27, %v961_v22  ;;  %v1048_v30 = vsub.f32 %v3655_v18, %v961_v22  ;;  %vm1326_vm2 = vmor %vm1324_vm1, %vm1325_vm0  ;;  %v1331_v18 = vor.u32 1.1754944e-38, %v1330_v43 }
 0x367   : > { %v1321_v31 = vsub.f32 1.0, %v1320_v14  ;;  %v1346_v29 = vand.u32 2147483648, %v3770_v56  ;;  %vm1340_vm5 = vweird.f32 %v3770_v56 }
 0x368   : > { %v1127_v17 = vmul.f32 1.442695, %v1047_v12  ;;  %v1129_v44 = vmul.f32 1.442695, %v1048_v30  ;;  %v1344_v12 = vand.u32 2147483647, %v3770_v56 }
 0x369   : > { %v1322_v16 = vmul.f32 %v2792_v55, %v1321_v31  ;;  %v1347_v30 = vor.u32 1.1754944e-38, %v1346_v29 }
 0x36a   : > { %2795 = vpow2.f32 %v1127_v17  ;;  %vm1345_vm7 = vcmp.eq.f32.partialorder %v1344_v12, 8.507059e+37 }
 0x36b   : > { %v1323_v27 = vadd.f32 %v2792_v55, %v1322_v16  ;;  %2797 = vpow2.f32 %v1129_v44 }
 0x36c   : > { %v2794_v63 = vpop.eup %2793 }
 0x36d   : > { %v1336_v21 = vmul.f32 %v2794_v63, %v3770_v56  ;;  %v3781_v10 = vpop.xlane.xlu2 %1230  ;;  %v964_v4 = vpop.xlane.xlu0 %963  ;;  %v1327_v1 = vsel %vm1326_vm2, %v2792_v55, %v1323_v27  ;;  %vm1341_vm4 = vweird.f32 %v2794_v63 }
 0x36e   : > { %2799 = vrcp.f32 %v3781_v10  ;;  %v1049_v51 = vsub.f32 %v3666_v41, %v964_v4  ;;  %v1050_v36 = vsub.f32 %v3668_v32, %v964_v4  ;;  %v1332_v57 = vsel %vm1329_vm3, %v1331_v18, %v1327_v1  ;;  %vm1342_vm6 = vmor %vm1340_vm5, %vm1341_vm4  ;;  %v584_v56 = vpop.f32.mrf.mxu1 }
 0x36f   : > { %v1337_v62 = vsub.f32 1.0, %v1336_v21  ;;  %v1333_v28 = vmul.f32 %v3660_v26, %v1332_v57  ;;  %v1334_v50 = vmul.f32 %v3662_v40, %v1332_v57  ;;  %v582_v41 = vadd.f32 %v581_v35, %v3544_v53  ;;  %v3799_v26 = vpop.f32.mrf.mxu0 }
 0x370   : > { %v3786_v33 = vpop.eup %2795  ;;  %v1131_v38 = vmul.f32 1.442695, %v1049_v51  ;;  %v1133_v22 = vmul.f32 1.442695, %v1050_v36  ;;  %v1362_v4 = vand.u32 2147483648, %v3781_v10  ;;  %v983_v57 = vmax.f32 %v3776_v25, %v3778_v19 }
 0x371   : > { %v3791_v55 = vpop.eup %2797  ;;  %v1338_v14 = vmul.f32 %v2794_v63, %v1337_v62  ;;  %1847 = vmatmul.f32.vlgmr.msrb.gmra.mxu1 %v1333_v28  ;;  %1960 = vmatmul.f32.vlgmr.msrb.gmra.mxu2 %v1334_v50  ;;  %vm1356_vm9 = vweird.f32 %v3781_v10 }
 0x372   : > { %2801 = vpow2.f32 %v1131_v38  ;;  %v1247_v32 = vadd.f32 %v3791_v55, %v3786_v33  ;;  %806 = vmatmul.f32.gmra.mxu3 %v582_v41  ;;  %919 = vmatmul.f32.gmra.mxu0 %v582_v41  ;;  %v3824_v38 = vpop.f32.mrf.mxu3  ;;  %v1363_v50 = vor.u32 1.1754944e-38, %v1362_v4  ;;  %v986_v4 = vmax.f32 %v3797_v39, %v3799_v26 }
 0x373   : > { %2803 = vpow2.f32 %v1133_v22  ;;  %v1339_v40 = vadd.f32 %v2794_v63, %v1338_v14 }
 0x374   : > { %v2800_v31 = vpop.eup %2799  ;;  %1248 = vadd.xlane.f32.xlu2 %v1247_v32 }
 0x375   : > { %v1352_v37 = vmul.f32 %v2800_v31, %v3781_v10  ;;  %v3804_v17 = vpop.xlane.xlu1 %1233  ;;  %v967_v16 = vpop.xlane.xlu2 %966  ;;  %v1343_v43 = vsel %vm1342_vm6, %v2794_v63, %v1339_v40  ;;  %vm1357_vm8 = vweird.f32 %v2800_v31 }
 0x376   : > { %2805 = vrcp.f32 %v3804_v17  ;;  %v1051_v44 = vsub.f32 %v3681_v48, %v967_v16  ;;  %v1052_v27 = vsub.f32 %v3683_v34, %v967_v16  ;;  %v1348_v18 = vsel %vm1345_vm7, %v1347_v30, %v1343_v43  ;;  %vm1358_vm10 = vmor %vm1356_vm9, %vm1357_vm8  ;;  %v587_v12 = vpop.f32.mrf.mxu1 }
 0x377   : > { %v1353_v20 = vsub.f32 1.0, %v1352_v37  ;;  %v1349_v51 = vmul.f32 %v3673_v45, %v1348_v18  ;;  %v1350_v35 = vmul.f32 %v3675_v47, %v1348_v18  ;;  %v585_v48 = vadd.f32 %v584_v56, %v3544_v53  ;;  %v3826_v28 = vpop.f32.mrf.mxu0 }
 0x378   : > { %v3809_v21 = vpop.eup %2801  ;;  %v1135_v1 = vmul.f32 1.442695, %v1051_v44  ;;  %v1137_v36 = vmul.f32 1.442695, %v1052_v27  ;;  %v1360_v45 = vand.u32 2147483647, %v3781_v10  ;;  %vm1372_vm13 = vweird.f32 %v3804_v17 }
 0x379   : > { %v3814_v63 = vpop.eup %2803  ;;  %v1354_v62 = vmul.f32 %v2800_v31, %v1353_v20  ;;  %1850 = vmatmul.f32.gmra.mxu1 %v1349_v51  ;;  %1963 = vmatmul.f32.gmra.mxu2 %v1350_v35  ;;  %v1378_v43 = vand.u32 2147483648, %v3804_v17 }
 0x37a   : > { %2807 = vpow2.f32 %v1135_v1  ;;  %v1250_v34 = vadd.f32 %v3814_v63, %v3809_v21  ;;  %809 = vmatmul.f32.gmra.mxu3 %v585_v48  ;;  %922 = vmatmul.f32.gmra.mxu0 %v585_v48  ;;  %vm1361_vm11 = vcmp.eq.f32.partialorder %v1360_v45, 8.507059e+37 }
 0x37b   : > { %2809 = vpow2.f32 %v1137_v36  ;;  %v1355_v47 = vadd.f32 %v2800_v31, %v1354_v62  ;;  %v1379_v51 = vor.u32 1.1754944e-38, %v1378_v43  ;;  %v989_v43 = vmax.f32 %v3824_v38, %v3826_v28 }
 0x37c   : > { %v2806_v29 = vpop.eup %2805  ;;  %1251 = vadd.xlane.f32.xlu1 %v1250_v34  ;;  %984 = vmax.xlane.f32.xlu2 %v983_v57 }
 0x37d   : > { %v1368_v14 = vmul.f32 %v2806_v29, %v3804_v17  ;;  %v3829_v22 = vpop.xlane.xlu0 %1236  ;;  %v970_v41 = vpop.xlane.xlu1 %969  ;;  %v1359_v10 = vsel %vm1358_vm10, %v2800_v31, %v1355_v47  ;;  %vm1373_vm12 = vweird.f32 %v2806_v29 }
 0x37e   : > { %2811 = vrcp.f32 %v3829_v22  ;;  %v1053_v32 = vsub.f32 %v3698_v61, %v970_v41  ;;  %v1054_v30 = vsub.f32 %v3700_v58, %v970_v41  ;;  %v1364_v37 = vsel %vm1361_vm11, %v1363_v50, %v1359_v10  ;;  %vm1374_vm14 = vmor %vm1372_vm13, %vm1373_vm12  ;;  %v590_v34 = vpop.f32.mrf.mxu1  ;;  %v3855_v50 = vpop.f32.mrf.mxu3 }
 0x37f   : > { %v1369_v40 = vsub.f32 1.0, %v1368_v14  ;;  %v1365_v56 = vmul.f32 %v3688_v59, %v1364_v37  ;;  %v1366_v20 = vmul.f32 %v3690_v54, %v1364_v37  ;;  %v588_v61 = vadd.f32 %v587_v12, %v3544_v53  ;;  %v3857_v14 = vpop.f32.mrf.mxu0 }
 0x380   : > { %v3834_v16 = vpop.eup %2807  ;;  %v1139_v44 = vmul.f32 1.442695, %v1053_v32  ;;  %v1141_v18 = vmul.f32 1.442695, %v1054_v30  ;;  %v1376_v59 = vand.u32 2147483647, %v3804_v17  ;;  %vm1388_vm1 = vweird.f32 %v3829_v22 }
 0x381   : > { %v3839_v31 = vpop.eup %2809  ;;  %v1370_v27 = vmul.f32 %v2806_v29, %v1369_v40  ;;  %1853 = vmatmul.f32.gmra.mxu1 %v1365_v56  ;;  %1966 = vmatmul.f32.gmra.mxu2 %v1366_v20  ;;  %v1394_v10 = vand.u32 2147483648, %v3829_v22 }
 0x382   : > { %2813 = vpow2.f32 %v1139_v44  ;;  %v1253_v58 = vadd.f32 %v3839_v31, %v3834_v16  ;;  %812 = vmatmul.f32.gmra.mxu3 %v588_v61  ;;  %925 = vmatmul.f32.gmra.mxu0 %v588_v61  ;;  %vm1377_vm15 = vcmp.eq.f32.partialorder %v1376_v59, 8.507059e+37 }
 0x383   : > { %2815 = vpow2.f32 %v1141_v18  ;;  %v1371_v54 = vadd.f32 %v2806_v29, %v1370_v27  ;;  %v1395_v56 = vor.u32 1.1754944e-38, %v1394_v10 }
 0x384   : > { %v2812_v1 = vpop.eup %2811  ;;  %1254 = vadd.xlane.f32.xlu0 %v1253_v58  ;;  %987 = vmax.xlane.f32.xlu1 %v986_v4 }
 0x385   : > { %v1384_v35 = vmul.f32 %v2812_v1, %v3829_v22  ;;  %v3850_v62 = vpop.xlane.xlu2 %1239  ;;  %v973_v36 = vpop.xlane.xlu0 %972  ;;  %v1375_v48 = vsel %vm1374_vm14, %v2806_v29, %v1371_v54  ;;  %vm1389_vm0 = vweird.f32 %v2812_v1 }
 0x386   : > { %2817 = vrcp.f32 %v3850_v62  ;;  %v1055_v17 = vsub.f32 %v3718_v2, %v973_v36  ;;  %v1056_v45 = vsub.f32 %v3720_v5, %v973_v36  ;;  %v1380_v47 = vsel %vm1377_vm15, %v1379_v51, %v1375_v48  ;;  %vm1390_vm2 = vmor %vm1388_vm1, %vm1389_vm0  ;;  %v593_v58 = vpop.f32.mrf.mxu1 }
 0x387   : > { %v1385_v57 = vsub.f32 1.0, %v1384_v35  ;;  %v1381_v29 = vmul.f32 %v3703_v60, %v1380_v47  ;;  %v1382_v12 = vmul.f32 %v3705_v24, %v1380_v47  ;;  %v591_v5 = vadd.f32 %v590_v34, %v3544_v53 }
 0x388   : > { %v3859_v41 = vpop.eup %2813  ;;  %v1143_v32 = vmul.f32 1.442695, %v1055_v17  ;;  %v1145_v30 = vmul.f32 1.442695, %v1056_v45  ;;  %v1392_v60 = vand.u32 2147483647, %v3829_v22  ;;  %v3889_v45 = vpop.f32.mrf.mxu0  ;;  %vm1404_vm5 = vweird.f32 %v3850_v62 }
 0x389   : > { %v3864_v2 = vpop.eup %2815  ;;  %v1386_v40 = vmul.f32 %v2812_v1, %v1385_v57  ;;  %1856 = vmatmul.f32.gmra.mxu1 %v1381_v29  ;;  %1969 = vmatmul.f32.gmra.mxu2 %v1382_v12  ;;  %v1410_v35 = vand.u32 2147483648, %v3850_v62  ;;  %v2072_v29 = vld [vmem:[%s5083_s3 + $0x78] sm:$0xff] }
 0x38a   : > { %2819 = vpow2.f32 %v1143_v32  ;;  %v1256_v37 = vadd.f32 %v3864_v2, %v3859_v41  ;;  %815 = vmatmul.f32.gmra.mxu3 %v591_v5  ;;  %928 = vmatmul.f32.gmra.mxu0 %v591_v5  ;;  %vm1393_vm3 = vcmp.eq.f32.partialorder %v1392_v60, 8.507059e+37  ;;  %v2070_v60 = vld [vmem:[%s5083_s3 + $0x68] sm:$0xff] }
 0x38b   : > { %2821 = vpow2.f32 %v1145_v30  ;;  %v1387_v24 = vadd.f32 %v2812_v1, %v1386_v40  ;;  %v1411_v12 = vor.u32 1.1754944e-38, %v1410_v35  ;;  %2077 = vmatpush.msra.mxu0 %v2072_v29  ;;  %2695 = vmatpush.msrb.mxu3 %v2072_v29  ;;  %v2068_v35 = vld [vmem:[%s5083_s3 + $0x58] sm:$0xff] }
 0x38c   : > { %v2818_v44 = vpop.eup %2817  ;;  %1257 = vadd.xlane.f32.xlu2 %v1256_v37  ;;  %990 = vmax.xlane.f32.xlu0 %v989_v43 }
 0x38d   : > { %v1400_v20 = vmul.f32 %v2818_v44, %v3850_v62  ;;  %v3875_v27 = vpop.xlane.xlu1 %1242  ;;  %v976_v18 = vpop.xlane.xlu2 %975  ;;  %v1391_v61 = vsel %vm1390_vm2, %v2812_v1, %v1387_v24  ;;  %vm1405_vm4 = vweird.f32 %v2818_v44  ;;  %2693 = vmatpush.msra.mxu1 %v2072_v29  ;;  %2694 = vmatpush.msra.mxu2 %v2072_v29  ;;  %v2066_v29 = vld [vmem:[%s5083_s3 + $0x48] sm:$0xff] }
 0x38e   : > { %2823 = vrcp.f32 %v3875_v27  ;;  %v1057_v22 = vsub.f32 %v3736_v46, %v976_v18  ;;  %v1058_v59 = vsub.f32 %v3738_v23, %v976_v18  ;;  %v1396_v54 = vsel %vm1393_vm3, %v1395_v56, %v1391_v61  ;;  %v3887_v46 = vpop.f32.mrf.mxu3  ;;  %vm3901_vm6 = vmor %vm1404_vm5, %vm1405_vm4 }
 0x38f   : > { %v1401_v4 = vsub.f32 1.0, %v1400_v20  ;;  %v1397_v48 = vmul.f32 %v3714_v52, %v1396_v54  ;;  %v1398_v17 = vmul.f32 %v3716_v49, %v1396_v54  ;;  %v594_v23 = vadd.f32 %v593_v58, %v3544_v53  ;;  %v2069_v58 = vld [vmem:[%s5083_s3 + $0x60] sm:$0xff] }
 0x390   : > { %v3880_v51 = vpop.eup %2819  ;;  %v1147_v36 = vmul.f32 1.442695, %v1057_v22  ;;  %v1149_v57 = vmul.f32 1.442695, %v1058_v59  ;;  %v992_v52 = vmax.f32 %v3855_v50, %v3857_v14  ;;  %v1408_v49 = vand.u32 2147483647, %v3850_v62 }
 0x391   : > { %v3885_v1 = vpop.eup %2821  ;;  %v1402_v34 = vmul.f32 %v2818_v44, %v1401_v4  ;;  %1859 = vmatmul.f32.gmra.mxu1 %v1397_v48  ;;  %1972 = vmatmul.f32.gmra.mxu2 %v1398_v17  ;;  %v2071_v62 = vld [vmem:[%s5083_s3 + $0x70] sm:$0xff]  ;;  %v1426_v18 = vand.u32 2147483648, %v3875_v27  ;;  %v1424_v54 = vand.u32 2147483647, %v3875_v27  ;;  %vm1420_vm9 = vweird.f32 %v3875_v27  ;;  %v3946_v48 = vpop.f32.mrf.mxu0 }
 0x392   : > { %2825 = vpow2.f32 %v1147_v36  ;;  %v1259_v47 = vadd.f32 %v3885_v1, %v3880_v51  ;;  %818 = vmatmul.f32.gmra.mxu3 %v594_v23  ;;  %931 = vmatmul.f32.gmra.mxu0 %v594_v23  ;;  %vm1409_vm7 = vcmp.eq.f32.partialorder %v1408_v49, 8.507059e+37 }
 0x393   : > { %2827 = vpow2.f32 %v1149_v57  ;;  %v1403_v10 = vadd.f32 %v2818_v44, %v1402_v34  ;;  %2078 = vmatpush.msra.mxu0 %v2071_v62  ;;  %2698 = vmatpush.msrb.mxu3 %v2071_v62  ;;  %v1427_v57 = vor.u32 1.1754944e-38, %v1426_v18  ;;  %vm1425_vm11 = vcmp.eq.f32.partialorder %v1424_v54, 8.507059e+37 }
 0x394   : > { %v3898_v32 = vpop.eup %2823  ;;  %1260 = vadd.xlane.f32.xlu1 %v1259_v47  ;;  %993 = vmax.xlane.f32.xlu2 %v992_v52 }
 0x395   : > { %v1416_v40 = vmul.f32 %v3898_v32, %v3875_v27  ;;  %v3913_v30 = vpop.xlane.xlu0 %1245  ;;  %v979_v5 = vpop.xlane.xlu1 %978  ;;  %v1407_v37 = vsel %vm3901_vm6, %v2818_v44, %v1403_v10  ;;  %2696 = vmatpush.msra.mxu1 %v2071_v62  ;;  %2697 = vmatpush.msra.mxu2 %v2071_v62  ;;  %vm1421_vm8 = vweird.f32 %v3898_v32  ;;  %v2067_v27 = vld [vmem:[%s5083_s3 + $0x50] sm:$0xff] }
 0x396   : > { %2829 = vrcp.f32 %v3913_v30  ;;  %v1059_v43 = vsub.f32 %v3750_v9, %v979_v5  ;;  %v1060_v56 = vsub.f32 %v3752_v11, %v979_v5  ;;  %v1412_v20 = vsel %vm1409_vm7, %v1411_v12, %v1407_v37  ;;  %2079 = vmatpush.msra.mxu0 %v2070_v60  ;;  %2701 = vmatpush.msrb.mxu3 %v2070_v60  ;;  %v3944_v36 = vpop.f32.mrf.mxu3  ;;  %vm1422_vm10 = vmor %vm1420_vm9, %vm1421_vm8  ;;  %v2065_v37 = vld [vmem:[%s5083_s3 + $0x40] sm:$0xff] }
 0x397   : > { %v1417_v24 = vsub.f32 1.0, %v1416_v40  ;;  %v1413_v9 = vmul.f32 %v3728_v42, %v1412_v20  ;;  %v1414_v22 = vmul.f32 %v3730_v13, %v1412_v20  ;;  %v995_v13 = vmax.f32 %v3887_v46, %v3889_v45  ;;  %2699 = vmatpush.msra.mxu1 %v2070_v60  ;;  %2700 = vmatpush.msra.mxu2 %v2070_v60 }
 0x398   : > { %v3923_v44 = vpop.eup %2825  ;;  %v1151_v61 = vmul.f32 1.442695, %v1059_v43  ;;  %v1153_v59 = vmul.f32 1.442695, %v1060_v56  ;;  %2080 = vmatpush.msra.mxu0 %v2069_v58  ;;  %2704 = vmatpush.msrb.mxu3 %v2069_v58  ;;  %vm1436_vm13 = vweird.f32 %v3913_v30 }
 0x399   : > { %v3931_v4 = vpop.eup %2827  ;;  %v1418_v11 = vmul.f32 %v3898_v32, %v1417_v24  ;;  %1862 = vmatmul.f32.gmra.mxu1 %v1413_v9  ;;  %1975 = vmatmul.f32.gmra.mxu2 %v1414_v22  ;;  %v998_v24 = vmax.f32 %v3944_v36, %v3946_v48 }
 0x39a   : > { %2831 = vpow2.f32 %v1151_v61  ;;  %v1262_v42 = vadd.f32 %v3931_v4, %v3923_v44  ;;  %2081 = vmatpush.msra.mxu0 %v2068_v35  ;;  %2707 = vmatpush.msrb.mxu3 %v2068_v35  ;;  %v3980_v61 = vpop.f32.mrf.mxu0 }
 0x39b   : > { %2833 = vpow2.f32 %v1153_v59  ;;  %v1419_v17 = vadd.f32 %v3898_v32, %v1418_v11  ;;  %2702 = vmatpush.msra.mxu1 %v2069_v58  ;;  %2703 = vmatpush.msra.mxu2 %v2069_v58 }
 0x39c   : > { %v2830_v34 = vpop.eup %2829  ;;  %1263 = vadd.xlane.f32.xlu0 %v1262_v42  ;;  %996 = vmax.xlane.f32.xlu1 %v995_v13 }
 0x39d   : > { %v1432_v23 = vmul.f32 %v2830_v34, %v3913_v30  ;;  %v982_v47 = vpop.xlane.xlu0 %981  ;;  %v1423_v52 = vsel %vm1422_vm10, %v3898_v32, %v1419_v17  ;;  %2082 = vmatpush.msra.mxu0 %v2067_v27  ;;  %2710 = vmatpush.msrb.mxu3 %v2067_v27  ;;  %vm1437_vm12 = vweird.f32 %v2830_v34  ;;  %v2063_v17 = vld [vmem:[%s5083_s3 + $0x30] sm:$0xff] }
 0x39e   : > { %v1061_v49 = vsub.f32 %v3762_v3, %v982_v47  ;;  %v1062_v10 = vsub.f32 %v3764_v0, %v982_v47  ;;  %v1428_v53 = vsel %vm1425_vm11, %v1427_v57, %v1423_v52  ;;  %v1442_v3 = vand.u32 2147483648, %v3913_v30  ;;  %vm1438_vm14 = vmor %vm1436_vm13, %vm1437_vm12  ;;  %v3978_v18 = vpop.f32.mrf.mxu3  ;;  %2705 = vmatpush.msra.mxu1 %v2068_v35  ;;  %2706 = vmatpush.msra.mxu2 %v2068_v35  ;;  %v2064_v35 = vld [vmem:[%s5083_s3 + $0x38] sm:$0xff]  ;;  %v2061_v57 = vld [vmem:[%s5083_s3 + $0x20] sm:$0xff] }
 0x39f   : > { %v1433_v62 = vsub.f32 1.0, %v1432_v23  ;;  %v1429_v12 = vmul.f32 %v3742_v7, %v1428_v53  ;;  %v1430_v40 = vmul.f32 %v3744_v15, %v1428_v53  ;;  %v1440_v7 = vand.u32 2147483647, %v3913_v30  ;;  %2083 = vmatpush.msra.mxu0 %v2066_v29  ;;  %2713 = vmatpush.msrb.mxu3 %v2066_v29  ;;  %v2059_v23 = vld [vmem:[%s5083_s3 + $0x10] sm:$0xff]  ;;  %v2058_v47 = vld [vmem:[%s5083_s3 + $0x8] sm:$0xff]  ;;  %v2057_v52 = vld [vmem:[%s5083_s3] sm:$0xff] }
 0x3a0   : > { %v3963_v32 = vpop.eup %2831  ;;  %v1155_v5 = vmul.f32 1.442695, %v1061_v49  ;;  %v1157_v0 = vmul.f32 1.442695, %v1062_v10  ;;  %v1443_v20 = vor.u32 1.1754944e-38, %v1442_v3  ;;  %2708 = vmatpush.msra.mxu1 %v2067_v27  ;;  %2709 = vmatpush.msra.mxu2 %v2067_v27  ;;  %v1001_v42 = vmax.f32 %v3978_v18, %v3980_v61  ;;  %v2060_v27 = vld [vmem:[%s5083_s3 + $0x18] sm:$0xff] }
 0x3a1   : > { %v3969_v43 = vpop.eup %2833  ;;  %v1434_v60 = vmul.f32 %v2830_v34, %v1433_v62  ;;  %1865 = vmatmul.f32.gmra.mxu1 %v1429_v12  ;;  %1978 = vmatmul.f32.gmra.mxu2 %v1430_v40  ;;  %vm1441_vm15 = vcmp.eq.f32.partialorder %v1440_v7, 8.507059e+37 }
 0x3a2   : > { %2835 = vpow2.f32 %v1155_v5  ;;  %v1265_v15 = vadd.f32 %v3969_v43, %v3963_v32  ;;  %2084 = vmatpush.msra.mxu0 %v2065_v37  ;;  %2716 = vmatpush.msrb.mxu3 %v2065_v37 }
 0x3a3   : > { %2837 = vpow2.f32 %v1157_v0  ;;  %v1435_v56 = vadd.f32 %v2830_v34, %v1434_v60  ;;  %2711 = vmatpush.msra.mxu1 %v2066_v29  ;;  %2712 = vmatpush.msra.mxu2 %v2066_v29 }
 0x3a4   : > { %1266 = vadd.xlane.f32.xlu2 %v1265_v15  ;;  %999 = vmax.xlane.f32.xlu0 %v998_v24 }
 0x3a5   : > { %v1439_v9 = vsel %vm1438_vm14, %v2830_v34, %v1435_v56  ;;  %2714 = vmatpush.msra.mxu1 %v2065_v37  ;;  %2715 = vmatpush.msra.mxu2 %v2065_v37  ;;  %v2062_v34 = vld [vmem:[%s5083_s3 + $0x28] sm:$0xff] }
 0x3a6   : > { %v1444_v22 = vsel %vm1441_vm15, %v1443_v20, %v1439_v9  ;;  %2085 = vmatpush.msra.mxu0 %v2064_v35  ;;  %2719 = vmatpush.msrb.mxu3 %v2064_v35 }
 0x3a7   : > { %v1445_v30 = vmul.f32 %v3754_v8, %v1444_v22  ;;  %v1446_v58 = vmul.f32 %v3756_v6, %v1444_v22  ;;  %v3992_v8 = vpop.f32.mrf.mxu3  ;;  %v3994_v6 = vpop.f32.mrf.mxu0  ;;  %2717 = vmatpush.msra.mxu1 %v2064_v35  ;;  %2718 = vmatpush.msra.mxu2 %v2064_v35 }
 0x3a8   : > { %v3984_v11 = vpop.eup %2835  ;;  %v1004_v13 = vmax.f32 %v3992_v8, %v3994_v6  ;;  %2086 = vmatpush.msra.mxu0 %v2063_v17  ;;  %2722 = vmatpush.msrb.mxu3 %v2063_v17 }
 0x3a9   : > { %v3986_v59 = vpop.eup %2837  ;;  %1868 = vmatmul.f32.gmra.mxu1 %v1445_v30  ;;  %1981 = vmatmul.f32.gmra.mxu2 %v1446_v58 }
 0x3aa   : > { %v1268_v54 = vadd.f32 %v3986_v59, %v3984_v11  ;;  %2720 = vmatpush.msra.mxu1 %v2063_v17  ;;  %2721 = vmatpush.msra.mxu2 %v2063_v17 }
 0x3ab   : > { %2087 = vmatpush.msra.mxu0 %v2062_v34  ;;  %2725 = vmatpush.msrb.mxu3 %v2062_v34 }
 0x3ac   : > { %1269 = vadd.xlane.f32.xlu1 %v1268_v54  ;;  %1002 = vmax.xlane.f32.xlu2 %v1001_v42 }
 0x3ad   : > { %2723 = vmatpush.msra.mxu1 %v2062_v34  ;;  %2724 = vmatpush.msra.mxu2 %v2062_v34 }
 0x3ae   : > { %2088 = vmatpush.msra.mxu0 %v2061_v57  ;;  %2728 = vmatpush.msrb.mxu3 %v2061_v57 }
 0x3af   : > { %2726 = vmatpush.msra.mxu1 %v2061_v57  ;;  %2727 = vmatpush.msra.mxu2 %v2061_v57  ;;  %v4027_v37 = vpop.f32.mrf.mxu3  ;;  %v4029_v60 = vpop.f32.mrf.mxu0 }
 0x3b0   : > { %2089 = vmatpush.msra.mxu0 %v2060_v27  ;;  %2731 = vmatpush.msrb.mxu3 %v2060_v27 }
 0x3b1   : > { %2729 = vmatpush.msra.mxu1 %v2060_v27  ;;  %2730 = vmatpush.msra.mxu2 %v2060_v27 }
 0x3b2   : > { %2090 = vmatpush.msra.mxu0 %v2059_v23  ;;  %2734 = vmatpush.msrb.mxu3 %v2059_v23 }
 0x3b3   : > { %2732 = vmatpush.msra.mxu1 %v2059_v23  ;;  %2733 = vmatpush.msra.mxu2 %v2059_v23 }
 0x3b4   : > { %1005 = vmax.xlane.f32.xlu1 %v1004_v13  ;;  %2091 = vmatpush.msra.mxu0 %v2058_v47 }
 0x3b5   : > { %2737 = vmatpush.msrb.mxu3 %v2058_v47  ;;  %2735 = vmatpush.msra.mxu1 %v2058_v47 }
 0x3b6   : > { %2736 = vmatpush.msra.mxu2 %v2058_v47  ;;  %2092 = vmatpush.msra.mxu0 %v2057_v52 }
 0x3b7   : > { %2740 = vmatpush.msrb.mxu3 %v2057_v52  ;;  %2738 = vmatpush.msra.mxu1 %v2057_v52 }
 0x3b8   : > { %2739 = vmatpush.msra.mxu2 %v2057_v52 }
 0x3e7   : > { %v1249_v49 = vpop.xlane.xlu2 %1248 }
 0x3e8   : > { %2839 = vrcp.f32 %v1249_v49  ;;  %v1458_v15 = vand.u32 2147483648, %v1249_v49  ;;  %v1456_v56 = vand.u32 2147483647, %v1249_v49  ;;  %vm1452_vm1 = vweird.f32 %v1249_v49 }
 0x3ea   : > { %v1459_v30 = vor.u32 1.1754944e-38, %v1458_v15  ;;  %vm1457_vm3 = vcmp.eq.f32.partialorder %v1456_v56, 8.507059e+37 }
 0x3ee   : > { %v2840_v10 = vpop.eup %2839  ;;  %v1848_v40 = vpop.f32.mrf.mxu1 }
 0x3ef   : > { %v1448_v53 = vmul.f32 %v2840_v10, %v1249_v49  ;;  %v4022_v29 = vpop.xlane.xlu1 %1251  ;;  %v985_v62 = vpop.xlane.xlu2 %984  ;;  %vm1453_vm0 = vweird.f32 %v2840_v10 }
 0x3f0   : > { %2841 = vrcp.f32 %v4022_v29  ;;  %v1063_v12 = vsub.f32 %v3776_v25, %v985_v62  ;;  %v1064_v5 = vsub.f32 %v3778_v19, %v985_v62  ;;  %vm1454_vm2 = vmor %vm1452_vm1, %vm1453_vm0  ;;  %v1472_v62 = vand.u32 2147483647, %v4022_v29 }
 0x3f1   : > { %v1449_v3 = vsub.f32 1.0, %v1448_v53  ;;  %vm1468_vm5 = vweird.f32 %v4022_v29 }
 0x3f2   : > { %v1159_v0 = vmul.f32 1.442695, %v1063_v12  ;;  %v1161_v24 = vmul.f32 1.442695, %v1064_v5  ;;  %v4049_v12 = vpop.f32.mrf.mxu3  ;;  %vm1473_vm7 = vcmp.eq.f32.partialorder %v1472_v62, 8.507059e+37 }
 0x3f3   : > { %v1450_v7 = vmul.f32 %v2840_v10, %v1449_v3 }
 0x3f4   : > { %2843 = vpow2.f32 %v1159_v0  ;;  %v1961_v20 = vpop.f32.mrf.mxu2 }
 0x3f5   : > { %2845 = vpow2.f32 %v1161_v24  ;;  %v1451_v9 = vadd.f32 %v2840_v10, %v1450_v7  ;;  %v1962_v22 = vadd.f32 %v1961_v20, %v1848_v40 }
 0x3f6   : > { %v2842_v25 = vpop.eup %2841  ;;  %v4036_v35 = vpop.f32.mrf.mxu1 }
 0x3f7   : > { %v1464_v19 = vmul.f32 %v2842_v25, %v4022_v29  ;;  %v4032_v58 = vpop.xlane.xlu0 %1254  ;;  %v988_v54 = vpop.xlane.xlu1 %987  ;;  %v1455_v42 = vsel %vm1454_vm2, %v2840_v10, %v1451_v9  ;;  %2093 = vmatmul.f32.vlgmr.msra.gmra.mxu0 %v1962_v22  ;;  %vm1469_vm4 = vweird.f32 %v2842_v25 }
 0x3f8   : > { %2847 = vrcp.f32 %v4032_v58  ;;  %v1065_v13 = vsub.f32 %v3797_v39, %v988_v54  ;;  %v1066_v34 = vsub.f32 %v3799_v26, %v988_v54  ;;  %v1460_v57 = vsel %vm1457_vm3, %v1459_v30, %v1455_v42  ;;  %vm1470_vm6 = vmor %vm1468_vm5, %vm1469_vm4 }
 0x3f9   : > { %v1465_v17 = vsub.f32 1.0, %v1464_v19  ;;  %v1461_v47 = vmul.f32 %v3786_v33, %v1460_v57  ;;  %v1462_v52 = vmul.f32 %v3791_v55, %v1460_v57  ;;  %v1474_v39 = vand.u32 2147483648, %v4022_v29  ;;  %v4051_v33 = vpop.f32.mrf.mxu0 }
 0x3fa   : > { %v4039_v27 = vpop.eup %2843  ;;  %v1163_v23 = vmul.f32 1.442695, %v1065_v13  ;;  %v1165_v53 = vmul.f32 1.442695, %v1066_v34  ;;  %v1007_v34 = vmax.f32 %v4027_v37, %v4029_v60  ;;  %vm1484_vm9 = vweird.f32 %v4032_v58 }
 0x3fb   : > { %v4043_v49 = vpop.eup %2845  ;;  %v1466_v10 = vmul.f32 %v2842_v25, %v1465_v17  ;;  %1871 = vmatmul.f32.gmra.mxu1 %v1461_v47  ;;  %1984 = vmatmul.f32.gmra.mxu2 %v1462_v52  ;;  %v1475_v5 = vor.u32 1.1754944e-38, %v1474_v39  ;;  %v1490_v17 = vand.u32 2147483648, %v4032_v58  ;;  %v4079_v47 = vpop.f32.mrf.mxu3 }
 0x3fc   : > { %2849 = vpow2.f32 %v1163_v23  ;;  %v1271_v26 = vadd.f32 %v4043_v49, %v4039_v27  ;;  %v4054_v55 = vpop.f32.mrf.mxu2 }
 0x3fd   : > { %2851 = vpow2.f32 %v1165_v53  ;;  %v1467_v40 = vadd.f32 %v2842_v25, %v1466_v10  ;;  %v1491_v10 = vor.u32 1.1754944e-38, %v1490_v17 }
 0x3fe   : > { %v2848_v3 = vpop.eup %2847  ;;  %1272 = vadd.xlane.f32.xlu0 %v1271_v26  ;;  %v4061_v20 = vpop.f32.mrf.mxu1 }
 0x3ff   : > { %v1480_v0 = vmul.f32 %v2848_v3, %v4032_v58  ;;  %v4057_v7 = vpop.xlane.xlu2 %1257  ;;  %v991_v15 = vpop.xlane.xlu0 %990  ;;  %v1471_v24 = vsel %vm1470_vm6, %v2842_v25, %v1467_v40  ;;  %vm1485_vm8 = vweird.f32 %v2848_v3 }
 0x400   : > { %2853 = vrcp.f32 %v4057_v7  ;;  %v1067_v56 = vsub.f32 %v3824_v38, %v991_v15  ;;  %v1068_v9 = vsub.f32 %v3826_v28, %v991_v15  ;;  %v1476_v22 = vsel %vm1473_vm7, %v1475_v5, %v1471_v24  ;;  %vm1486_vm10 = vmor %vm1484_vm9, %vm1485_vm8 }
 0x401   : > { %v1481_v29 = vsub.f32 1.0, %v1480_v0  ;;  %v1477_v54 = vmul.f32 %v3809_v21, %v1476_v22  ;;  %v1478_v42 = vmul.f32 %v3814_v63, %v1476_v22  ;;  %v1488_v21 = vand.u32 2147483647, %v4032_v58  ;;  %v4081_v52 = vpop.f32.mrf.mxu0 }
 0x402   : > { %v4064_v30 = vpop.eup %2849  ;;  %v1167_v19 = vmul.f32 1.442695, %v1067_v56  ;;  %v1169_v38 = vmul.f32 1.442695, %v1068_v9  ;;  %vm1500_vm13 = vweird.f32 %v4057_v7 }
 0x403   : > { %v4068_v13 = vpop.eup %2851  ;;  %v1482_v25 = vmul.f32 %v2848_v3, %v1481_v29  ;;  %1874 = vmatmul.f32.gmra.mxu1 %v1477_v54  ;;  %1987 = vmatmul.f32.gmra.mxu2 %v1478_v42  ;;  %vm1489_vm11 = vcmp.eq.f32.partialorder %v1488_v21, 8.507059e+37 }
 0x404   : > { %2855 = vpow2.f32 %v1167_v19  ;;  %v1274_v28 = vadd.f32 %v4068_v13, %v4064_v30  ;;  %v4077_v63 = vpop.f32.mrf.mxu2  ;;  %v1506_v19 = vand.u32 2147483648, %v4057_v7 }
 0x405   : > { %2857 = vpow2.f32 %v1169_v38  ;;  %v1483_v57 = vadd.f32 %v2848_v3, %v1482_v25 }
 0x406   : > { %v2854_v23 = vpop.eup %2853  ;;  %1275 = vadd.xlane.f32.xlu2 %v1274_v28  ;;  %1008 = vmax.xlane.f32.xlu0 %v1007_v34  ;;  %v1857_v40 = vpop.f32.mrf.mxu1  ;;  %v1507_v38 = vor.u32 1.1754944e-38, %v1506_v19 }
 0x407   : > { %v1496_v39 = vmul.f32 %v2854_v23, %v4057_v7  ;;  %v4084_v53 = vpop.xlane.xlu1 %1260  ;;  %v994_v26 = vpop.xlane.xlu2 %993  ;;  %v1487_v62 = vsel %vm1486_vm10, %v2848_v3, %v1483_v57  ;;  %vm1501_vm12 = vweird.f32 %v2854_v23 }
 0x408   : > { %2859 = vrcp.f32 %v4084_v53  ;;  %v1069_v58 = vsub.f32 %v3855_v50, %v994_v26  ;;  %v1070_v0 = vsub.f32 %v3857_v14, %v994_v26  ;;  %v1492_v15 = vsel %vm1489_vm11, %v1491_v10, %v1487_v62  ;;  %vm1502_vm14 = vmor %vm1500_vm13, %vm1501_vm12 }
 0x409   : > { %v1497_v5 = vsub.f32 1.0, %v1496_v39  ;;  %v1493_v29 = vmul.f32 %v3834_v16, %v1492_v15  ;;  %v1494_v9 = vmul.f32 %v3839_v31, %v1492_v15  ;;  %v1010_v14 = vmax.f32 %v4049_v12, %v4051_v33  ;;  %v4108_v39 = vpop.f32.mrf.mxu0 }
 0x40a   : > { %v4089_v24 = vpop.eup %2855  ;;  %v1171_v56 = vmul.f32 1.442695, %v1069_v58  ;;  %v1173_v54 = vmul.f32 1.442695, %v1070_v0  ;;  %v1504_v16 = vand.u32 2147483647, %v4057_v7  ;;  %vm1516_vm1 = vweird.f32 %v4084_v53 }
 0x40b   : > { %v4093_v22 = vpop.eup %2857  ;;  %v1498_v3 = vmul.f32 %v2854_v23, %v1497_v5  ;;  %1877 = vmatmul.f32.gmra.mxu1 %v1493_v29  ;;  %1990 = vmatmul.f32.gmra.mxu2 %v1494_v9  ;;  %v1522_v29 = vand.u32 2147483648, %v4084_v53 }
 0x40c   : > { %2861 = vpow2.f32 %v1171_v56  ;;  %v1277_v50 = vadd.f32 %v4093_v22, %v4089_v24  ;;  %v1970_v31 = vpop.f32.mrf.mxu2  ;;  %vm1505_vm15 = vcmp.eq.f32.partialorder %v1504_v16, 8.507059e+37 }
 0x40d   : > { %2863 = vpow2.f32 %v1173_v54  ;;  %v1499_v42 = vadd.f32 %v2854_v23, %v1498_v3  ;;  %v1971_v17 = vadd.f32 %v1970_v31, %v1857_v40  ;;  %v4111_v40 = vpop.f32.mrf.mxu3  ;;  %v1013_v3 = vmax.f32 %v4079_v47, %v4081_v52 }
 0x40e   : > { %v2860_v25 = vpop.eup %2859  ;;  %1278 = vadd.xlane.f32.xlu1 %v1277_v50  ;;  %1011 = vmax.xlane.f32.xlu2 %v1010_v14  ;;  %v1860_v10 = vpop.f32.mrf.mxu1  ;;  %v1523_v14 = vor.u32 1.1754944e-38, %v1522_v29 }
 0x40f   : > { %v1512_v28 = vmul.f32 %v2860_v25, %v4084_v53  ;;  %v4104_v34 = vpop.xlane.xlu0 %1263  ;;  %v997_v21 = vpop.xlane.xlu1 %996  ;;  %v1503_v57 = vsel %vm1502_vm14, %v2854_v23, %v1499_v42  ;;  %2102 = vmatmul.f32.vlgmr.msrb.gmra.mxu3 %v1971_v17  ;;  %vm1517_vm0 = vweird.f32 %v2860_v25 }
 0x410   : > { %2865 = vrcp.f32 %v4104_v34  ;;  %v1071_v7 = vsub.f32 %v3887_v46, %v997_v21  ;;  %v1072_v62 = vsub.f32 %v3889_v45, %v997_v21  ;;  %v1508_v58 = vsel %vm1505_vm15, %v1507_v38, %v1503_v57  ;;  %vm1518_vm2 = vmor %vm1516_vm1, %vm1517_vm0 }
 0x411   : > { %v1513_v26 = vsub.f32 1.0, %v1512_v28  ;;  %v1509_v23 = vmul.f32 %v3859_v41, %v1508_v58  ;;  %v1510_v15 = vmul.f32 %v3864_v2, %v1508_v58  ;;  %v1520_v41 = vand.u32 2147483647, %v4084_v53  ;;  %v4137_v58 = vpop.f32.mrf.mxu0 }
 0x412   : > { %v4113_v5 = vpop.eup %2861  ;;  %v1175_v0 = vmul.f32 1.442695, %v1071_v7  ;;  %v1177_v9 = vmul.f32 1.442695, %v1072_v62  ;;  %vm1532_vm5 = vweird.f32 %v4104_v34 }
 0x413   : > { %v4117_v56 = vpop.eup %2863  ;;  %v1514_v46 = vmul.f32 %v2860_v25, %v1513_v26  ;;  %1880 = vmatmul.f32.gmra.mxu1 %v1509_v23  ;;  %1993 = vmatmul.f32.gmra.mxu2 %v1510_v15  ;;  %vm1521_vm3 = vcmp.eq.f32.partialorder %v1520_v41, 8.507059e+37 }
 0x414   : > { %2867 = vpow2.f32 %v1175_v0  ;;  %v1280_v45 = vadd.f32 %v4117_v56, %v4113_v5  ;;  %v1973_v2 = vpop.f32.mrf.mxu2 }
 0x415   : > { %2869 = vpow2.f32 %v1177_v9  ;;  %v1515_v19 = vadd.f32 %v2860_v25, %v1514_v46  ;;  %v1974_v50 = vadd.f32 %v1973_v2, %v1860_v10  ;;  %v4142_v15 = vpop.f32.mrf.mxu3 }
 0x416   : > { %v2866_v54 = vpop.eup %2865  ;;  %1281 = vadd.xlane.f32.xlu0 %v1280_v45  ;;  %1014 = vmax.xlane.f32.xlu1 %v1013_v3  ;;  %v1863_v21 = vpop.f32.mrf.mxu1 }
 0x417   : > { %v1528_v16 = vmul.f32 %v2866_v54, %v4104_v34  ;;  %v4128_v31 = vpop.xlane.xlu2 %1266  ;;  %v1000_v42 = vpop.xlane.xlu0 %999  ;;  %v1519_v17 = vsel %vm1518_vm2, %v2860_v25, %v1515_v19  ;;  %2105 = vmatmul.f32.gmra.mxu3 %v1974_v50  ;;  %vm1533_vm4 = vweird.f32 %v2866_v54 }
 0x418   : > { %2871 = vrcp.f32 %v4128_v31  ;;  %v1073_v53 = vsub.f32 %v3944_v36, %v1000_v42  ;;  %v1074_v28 = vsub.f32 %v3946_v48, %v1000_v42  ;;  %v1524_v57 = vsel %vm1521_vm3, %v1523_v14, %v1519_v17  ;;  %vm1534_vm6 = vmor %vm1532_vm5, %vm1533_vm4 }
 0x419   : > { %v1529_v38 = vsub.f32 1.0, %v1528_v16  ;;  %v1525_v26 = vmul.f32 %v3880_v51, %v1524_v57  ;;  %v1526_v62 = vmul.f32 %v3885_v1, %v1524_v57  ;;  %v1538_v36 = vand.u32 2147483648, %v4104_v34 }
 0x41a   : > { %v4133_v7 = vpop.eup %2867  ;;  %v1179_v10 = vmul.f32 1.442695, %v1073_v53  ;;  %v1181_v23 = vmul.f32 1.442695, %v1074_v28  ;;  %v1016_v51 = vmax.f32 %v4111_v40, %v4108_v39  ;;  %v1536_v1 = vand.u32 2147483647, %v4104_v34 }
 0x41b   : > { %v4139_v25 = vpop.eup %2869  ;;  %v1530_v0 = vmul.f32 %v2866_v54, %v1529_v38  ;;  %1883 = vmatmul.f32.gmra.mxu1 %v1525_v26  ;;  %1996 = vmatmul.f32.gmra.mxu2 %v1526_v62  ;;  %v1539_v3 = vor.u32 1.1754944e-38, %v1538_v36  ;;  %v1554_v53 = vand.u32 2147483648, %v4128_v31  ;;  %v1552_v26 = vand.u32 2147483647, %v4128_v31 }
 0x41c   : > { %2873 = vpow2.f32 %v1179_v10  ;;  %v1283_v48 = vadd.f32 %v4139_v25, %v4133_v7  ;;  %v1976_v46 = vpop.f32.mrf.mxu2  ;;  %vm1537_vm7 = vcmp.eq.f32.partialorder %v1536_v1, 8.507059e+37  ;;  %v1019_v62 = vmax.f32 %v4142_v15, %v4137_v58 }
 0x41d   : > { %2875 = vpow2.f32 %v1181_v23  ;;  %v1531_v29 = vadd.f32 %v2866_v54, %v1530_v0  ;;  %v1977_v45 = vadd.f32 %v1976_v46, %v1863_v21  ;;  %vm1548_vm9 = vweird.f32 %v4128_v31  ;;  %v4172_v0 = vpop.f32.mrf.mxu3 }
 0x41e   : > { %v2872_v9 = vpop.eup %2871  ;;  %1284 = vadd.xlane.f32.xlu2 %v1283_v48  ;;  %1017 = vmax.xlane.f32.xlu0 %v1016_v51  ;;  %v1555_v48 = vor.u32 1.1754944e-38, %v1554_v53  ;;  %vm1553_vm11 = vcmp.eq.f32.partialorder %v1552_v26, 8.507059e+37 }
 0x41f   : > { %v1544_v41 = vmul.f32 %v2872_v9, %v4128_v31  ;;  %v4152_v2 = vpop.xlane.xlu1 %1269  ;;  %v1003_v19 = vpop.xlane.xlu2 %1002  ;;  %v1535_v50 = vsel %vm1534_vm6, %v2866_v54, %v1531_v29  ;;  %2108 = vmatmul.f32.gmra.mxu3 %v1977_v45  ;;  %vm1549_vm8 = vweird.f32 %v2872_v9 }
 0x420   : > { %2877 = vrcp.f32 %v4152_v2  ;;  %v1075_v34 = vsub.f32 %v3978_v18, %v1003_v19  ;;  %v1076_v16 = vsub.f32 %v3980_v61, %v1003_v19  ;;  %v1540_v42 = vsel %vm1537_vm7, %v1539_v3, %v1535_v50  ;;  %v1866_v18 = vpop.f32.mrf.mxu1  ;;  %vm1550_vm10 = vmor %vm1548_vm9, %vm1549_vm8 }
 0x421   : > { %v1545_v14 = vsub.f32 1.0, %v1544_v41  ;;  %v1541_v28 = vmul.f32 %v3923_v44, %v1540_v42  ;;  %v1542_v21 = vmul.f32 %v3931_v4, %v1540_v42  ;;  %v4169_v44 = vpop.f32.mrf.mxu0  ;;  %vm1564_vm13 = vweird.f32 %v4152_v2 }
 0x422   : > { %v4157_v17 = vpop.eup %2873  ;;  %v1183_v38 = vmul.f32 1.442695, %v1075_v34  ;;  %v1185_v10 = vmul.f32 1.442695, %v1076_v16 }
 0x423   : > { %v4162_v54 = vpop.eup %2875  ;;  %v1546_v57 = vmul.f32 %v2872_v9, %v1545_v14  ;;  %1886 = vmatmul.f32.gmra.mxu1 %v1541_v28  ;;  %1999 = vmatmul.f32.gmra.mxu2 %v1542_v21  ;;  %v1570_v14 = vand.u32 2147483648, %v4152_v2 }
 0x424   : > { %2879 = vpow2.f32 %v1183_v38  ;;  %v1286_v61 = vadd.f32 %v4162_v54, %v4157_v17  ;;  %v1979_v4 = vpop.f32.mrf.mxu2 }
 0x425   : > { %2881 = vpow2.f32 %v1185_v10  ;;  %v1547_v36 = vadd.f32 %v2872_v9, %v1546_v57  ;;  %v1980_v51 = vadd.f32 %v1979_v4, %v1866_v18  ;;  %v1571_v21 = vor.u32 1.1754944e-38, %v1570_v14  ;;  %v4192_v10 = vpop.f32.mrf.mxu3 }
 0x426   : > { %v2878_v23 = vpop.eup %2877  ;;  %1287 = vadd.xlane.f32.xlu1 %v1286_v61  ;;  %1020 = vmax.xlane.f32.xlu2 %v1019_v62 }
 0x427   : > { %v1560_v1 = vmul.f32 %v2878_v23, %v4152_v2  ;;  %v1006_v46 = vpop.xlane.xlu1 %1005  ;;  %v1551_v29 = vsel %vm1550_vm10, %v2872_v9, %v1547_v36  ;;  %2111 = vmatmul.f32.gmra.mxu3 %v1980_v51  ;;  %vm1565_vm12 = vweird.f32 %v2878_v23 }
 0x428   : > { %v1077_v45 = vsub.f32 %v3992_v8, %v1006_v46  ;;  %v1078_v31 = vsub.f32 %v3994_v6, %v1006_v46  ;;  %v1556_v3 = vsel %vm1553_vm11, %v1555_v48, %v1551_v29  ;;  %v1568_v8 = vand.u32 2147483647, %v4152_v2  ;;  %v1869_v6 = vpop.f32.mrf.mxu1  ;;  %vm1566_vm14 = vmor %vm1564_vm13, %vm1565_vm12 }
 0x429   : > { %v1561_v41 = vsub.f32 1.0, %v1560_v1  ;;  %v1557_v19 = vmul.f32 %v3963_v32, %v1556_v3  ;;  %v1558_v50 = vmul.f32 %v3969_v43, %v1556_v3  ;;  %v1022_v43 = vmax.f32 %v4172_v0, %v4169_v44  ;;  %v4194_v18 = vpop.f32.mrf.mxu0 }
 0x42a   : > { %v4180_v34 = vpop.eup %2879  ;;  %v1187_v16 = vmul.f32 1.442695, %v1077_v45  ;;  %v1189_v42 = vmul.f32 1.442695, %v1078_v31  ;;  %vm1569_vm15 = vcmp.eq.f32.partialorder %v1568_v8, 8.507059e+37  ;;  %v1025_v51 = vmax.f32 %v4192_v10, %v4194_v18 }
 0x42b   : > { %v4183_v53 = vpop.eup %2881  ;;  %v1562_v9 = vmul.f32 %v2878_v23, %v1561_v41  ;;  %1889 = vmatmul.f32.gmra.mxu1 %v1557_v19  ;;  %2002 = vmatmul.f32.gmra.mxu2 %v1558_v50 }
 0x42c   : > { %2883 = vpow2.f32 %v1187_v16  ;;  %v1289_v32 = vadd.f32 %v4183_v53, %v4180_v34  ;;  %v1982_v38 = vpop.f32.mrf.mxu2 }
 0x42d   : > { %2885 = vpow2.f32 %v1189_v42  ;;  %v1563_v28 = vadd.f32 %v2878_v23, %v1562_v9  ;;  %v1983_v57 = vadd.f32 %v1982_v38, %v1869_v6 }
 0x42e   : > { %1290 = vadd.xlane.f32.xlu0 %v1289_v32  ;;  %1023 = vmax.xlane.f32.xlu1 %v1022_v43 }
 0x42f   : > { %v1567_v26 = vsel %vm1566_vm14, %v2878_v23, %v1563_v28  ;;  %2114 = vmatmul.f32.gmra.mxu3 %v1983_v57  ;;  %v4206_v23 = vpop.f32.mrf.mxu3 }
 0x430   : > { %v1572_v61 = vsel %vm1569_vm15, %v1571_v21, %v1567_v26 }
 0x431   : > { %v1573_v2 = vmul.f32 %v3984_v11, %v1572_v61  ;;  %v1574_v62 = vmul.f32 %v3986_v59, %v1572_v61  ;;  %v4208_v1 = vpop.f32.mrf.mxu0 }
 0x432   : > { %v4198_v4 = vpop.eup %2883  ;;  %v1028_v11 = vmax.f32 %v4206_v23, %v4208_v1 }
 0x433   : > { %v4200_v36 = vpop.eup %2885  ;;  %1892 = vmatmul.f32.gmra.mxu1 %v1573_v2  ;;  %2005 = vmatmul.f32.gmra.mxu2 %v1574_v62 }
 0x434   : > { %v1292_v48 = vadd.f32 %v4200_v36, %v4198_v4 }
 0x436   : > { %1293 = vadd.xlane.f32.xlu2 %v1292_v48  ;;  %1026 = vmax.xlane.f32.xlu0 %v1025_v51 }
 0x43e   : > { %1029 = vmax.xlane.f32.xlu2 %v1028_v11 }
 0x471   : > { %v1273_v59 = vpop.xlane.xlu0 %1272 }
 0x472   : > { %2887 = vrcp.f32 %v1273_v59  ;;  %v1586_v42 = vand.u32 2147483648, %v1273_v59  ;;  %v1584_v8 = vand.u32 2147483647, %v1273_v59  ;;  %vm1580_vm1 = vweird.f32 %v1273_v59 }
 0x474   : > { %v1587_v28 = vor.u32 1.1754944e-38, %v1586_v42  ;;  %vm1585_vm3 = vcmp.eq.f32.partialorder %v1584_v8, 8.507059e+37 }
 0x478   : > { %v2888_v46 = vpop.eup %2887  ;;  %v1872_v41 = vpop.f32.mrf.mxu1 }
 0x479   : > { %v1576_v29 = vmul.f32 %v2888_v46, %v1273_v59  ;;  %v4212_v45 = vpop.xlane.xlu2 %1275  ;;  %v1009_v31 = vpop.xlane.xlu0 %1008  ;;  %vm1581_vm0 = vweird.f32 %v2888_v46 }
 0x47a   : > { %2889 = vrcp.f32 %v4212_v45  ;;  %v1079_v3 = vsub.f32 %v4027_v37, %v1009_v31  ;;  %v1080_v50 = vsub.f32 %v4029_v60, %v1009_v31  ;;  %vm1582_vm2 = vmor %vm1580_vm1, %vm1581_vm0  ;;  %vm1596_vm5 = vweird.f32 %v4212_v45 }
 0x47b   : > { %v1577_v19 = vsub.f32 1.0, %v1576_v29 }
 0x47c   : > { %v1191_v14 = vmul.f32 1.442695, %v1079_v3  ;;  %v1193_v9 = vmul.f32 1.442695, %v1080_v50  ;;  %v1602_v3 = vand.u32 2147483648, %v4212_v45 }
 0x47d   : > { %v1578_v16 = vmul.f32 %v2888_v46, %v1577_v19 }
 0x47e   : > { %2891 = vpow2.f32 %v1191_v14  ;;  %v1985_v32 = vpop.f32.mrf.mxu2  ;;  %v1603_v14 = vor.u32 1.1754944e-38, %v1602_v3 }
 0x47f   : > { %2893 = vpow2.f32 %v1193_v9  ;;  %v1579_v43 = vadd.f32 %v2888_v46, %v1578_v16  ;;  %v1986_v38 = vadd.f32 %v1985_v32, %v1872_v41  ;;  %v1600_v41 = vand.u32 2147483647, %v4212_v45 }
 0x480   : > { %v2890_v6 = vpop.eup %2889  ;;  %v1875_v61 = vpop.f32.mrf.mxu1 }
 0x481   : > { %v1592_v37 = vmul.f32 %v2890_v6, %v4212_v45  ;;  %v4218_v21 = vpop.xlane.xlu1 %1278  ;;  %v1012_v60 = vpop.xlane.xlu2 %1011  ;;  %v1583_v57 = vsel %vm1582_vm2, %v2888_v46, %v1579_v43  ;;  %2117 = vmatmul.f32.gmra.mxu3 %v1986_v38  ;;  %vm1597_vm4 = vweird.f32 %v2890_v6  ;;  %vm1601_vm7 = vcmp.eq.f32.partialorder %v1600_v41, 8.507059e+37 }
 0x482   : > { %2895 = vrcp.f32 %v4218_v21  ;;  %v1081_v26 = vsub.f32 %v4049_v12, %v1012_v60  ;;  %v1082_v62 = vsub.f32 %v4051_v33, %v1012_v60  ;;  %v1588_v48 = vsel %vm1585_vm3, %v1587_v28, %v1583_v57  ;;  %vm1598_vm6 = vmor %vm1596_vm5, %vm1597_vm4 }
 0x483   : > { %v1593_v2 = vsub.f32 1.0, %v1592_v37  ;;  %v1589_v59 = vmul.f32 %v4039_v27, %v1588_v48  ;;  %v1590_v29 = vmul.f32 %v4043_v49, %v1588_v48  ;;  %vm1612_vm9 = vweird.f32 %v4218_v21 }
 0x484   : > { %v4223_v51 = vpop.eup %2891  ;;  %v1195_v11 = vmul.f32 1.442695, %v1081_v26  ;;  %v1197_v12 = vmul.f32 1.442695, %v1082_v62  ;;  %v1616_v62 = vand.u32 2147483647, %v4218_v21 }
 0x485   : > { %v4227_v31 = vpop.eup %2893  ;;  %v1594_v46 = vmul.f32 %v2890_v6, %v1593_v2  ;;  %1895 = vmatmul.f32.gmra.mxu1 %v1589_v59  ;;  %2008 = vmatmul.f32.gmra.mxu2 %v1590_v29  ;;  %v1618_v2 = vand.u32 2147483648, %v4218_v21 }
 0x486   : > { %2897 = vpow2.f32 %v1195_v11  ;;  %v1295_v33 = vadd.f32 %v4227_v31, %v4223_v51  ;;  %v1988_v27 = vpop.f32.mrf.mxu2  ;;  %vm1617_vm11 = vcmp.eq.f32.partialorder %v1616_v62, 8.507059e+37 }
 0x487   : > { %2899 = vpow2.f32 %v1197_v12  ;;  %v1595_v49 = vadd.f32 %v2890_v6, %v1594_v46  ;;  %v1989_v50 = vadd.f32 %v1988_v27, %v1875_v61  ;;  %v1619_v59 = vor.u32 1.1754944e-38, %v1618_v2 }
 0x488   : > { %v2896_v19 = vpop.eup %2895  ;;  %1296 = vadd.xlane.f32.xlu1 %v1295_v33  ;;  %v1878_v43 = vpop.f32.mrf.mxu1 }
 0x489   : > { %v1608_v16 = vmul.f32 %v2896_v19, %v4218_v21  ;;  %v4235_v42 = vpop.xlane.xlu0 %1281  ;;  %v1015_v9 = vpop.xlane.xlu1 %1014  ;;  %v1599_v8 = vsel %vm1598_vm6, %v2890_v6, %v1595_v49  ;;  %2120 = vmatmul.f32.gmra.mxu3 %v1989_v50  ;;  %vm1613_vm8 = vweird.f32 %v2896_v19 }
 0x48a   : > { %2901 = vrcp.f32 %v4235_v42  ;;  %v1083_v32 = vsub.f32 %v4079_v47, %v1015_v9  ;;  %v1084_v38 = vsub.f32 %v4081_v52, %v1015_v9  ;;  %v1604_v28 = vsel %vm1601_vm7, %v1603_v14, %v1599_v8  ;;  %vm1614_vm10 = vmor %vm1612_vm9, %vm1613_vm8 }
 0x48b   : > { %v1609_v45 = vsub.f32 1.0, %v1608_v16  ;;  %v1605_v57 = vmul.f32 %v4064_v30, %v1604_v28  ;;  %v1606_v26 = vmul.f32 %v4068_v13, %v1604_v28  ;;  %v1634_v14 = vand.u32 2147483648, %v4235_v42 }
 0x48c   : > { %v4240_v37 = vpop.eup %2897  ;;  %v1199_v60 = vmul.f32 1.442695, %v1083_v32  ;;  %v1201_v47 = vmul.f32 1.442695, %v1084_v38  ;;  %vm1628_vm13 = vweird.f32 %v4235_v42 }
 0x48d   : > { %v4244_v61 = vpop.eup %2899  ;;  %v1610_v6 = vmul.f32 %v2896_v19, %v1609_v45  ;;  %1898 = vmatmul.f32.gmra.mxu1 %v1605_v57  ;;  %2011 = vmatmul.f32.gmra.mxu2 %v1606_v26 }
 0x48e   : > { %2903 = vpow2.f32 %v1199_v60  ;;  %v1298_v52 = vadd.f32 %v4244_v61, %v4240_v37  ;;  %v1991_v30 = vpop.f32.mrf.mxu2  ;;  %v1635_v60 = vor.u32 1.1754944e-38, %v1634_v14 }
 0x48f   : > { %2905 = vpow2.f32 %v1201_v47  ;;  %v1611_v13 = vadd.f32 %v2896_v19, %v1610_v6  ;;  %v1992_v11 = vadd.f32 %v1991_v30, %v1878_v43  ;;  %v1632_v43 = vand.u32 2147483647, %v4235_v42 }
 0x490   : > { %v2902_v48 = vpop.eup %2901  ;;  %1299 = vadd.xlane.f32.xlu0 %v1298_v52  ;;  %v1881_v41 = vpop.f32.mrf.mxu1 }
 0x491   : > { %v1624_v29 = vmul.f32 %v2902_v48, %v4235_v42  ;;  %v4252_v46 = vpop.xlane.xlu2 %1284  ;;  %v1018_v3 = vpop.xlane.xlu0 %1017  ;;  %v1615_v12 = vsel %vm1614_vm10, %v2896_v19, %v1611_v13  ;;  %2123 = vmatmul.f32.gmra.mxu3 %v1992_v11  ;;  %vm1629_vm12 = vweird.f32 %v2902_v48  ;;  %vm1633_vm15 = vcmp.eq.f32.partialorder %v1632_v43, 8.507059e+37 }
 0x492   : > { %2907 = vrcp.f32 %v4252_v46  ;;  %v1085_v33 = vsub.f32 %v4111_v40, %v1018_v3  ;;  %v1086_v27 = vsub.f32 %v4108_v39, %v1018_v3  ;;  %v1620_v49 = vsel %vm1617_vm11, %v1619_v59, %v1615_v12  ;;  %vm1630_vm14 = vmor %vm1628_vm13, %vm1629_vm12 }
 0x493   : > { %v1625_v21 = vsub.f32 1.0, %v1624_v29  ;;  %v1621_v9 = vmul.f32 %v4089_v24, %v1620_v49  ;;  %v1622_v40 = vmul.f32 %v4093_v22, %v1620_v49  ;;  %v1650_v13 = vand.u32 2147483648, %v4252_v46 }
 0x494   : > { %v4257_v50 = vpop.eup %2903  ;;  %v1203_v16 = vmul.f32 1.442695, %v1085_v33  ;;  %v1205_v32 = vmul.f32 1.442695, %v1086_v27  ;;  %v1648_v12 = vand.u32 2147483647, %v4252_v46  ;;  %vm1644_vm1 = vweird.f32 %v4252_v46 }
 0x495   : > { %v4261_v8 = vpop.eup %2905  ;;  %v1626_v19 = vmul.f32 %v2902_v48, %v1625_v21  ;;  %1901 = vmatmul.f32.gmra.mxu1 %v1621_v9  ;;  %2014 = vmatmul.f32.gmra.mxu2 %v1622_v40  ;;  %v1651_v27 = vor.u32 1.1754944e-38, %v1650_v13 }
 0x496   : > { %2909 = vpow2.f32 %v1203_v16  ;;  %v1301_v39 = vadd.f32 %v4261_v8, %v4257_v50  ;;  %v1994_v45 = vpop.f32.mrf.mxu2  ;;  %vm1649_vm3 = vcmp.eq.f32.partialorder %v1648_v12, 8.507059e+37 }
 0x497   : > { %2911 = vpow2.f32 %v1205_v32  ;;  %v1627_v24 = vadd.f32 %v2902_v48, %v1626_v19  ;;  %v1995_v28 = vadd.f32 %v1994_v45, %v1881_v41 }
 0x498   : > { %v2908_v38 = vpop.eup %2907  ;;  %1302 = vadd.xlane.f32.xlu1 %v1301_v39  ;;  %v1884_v42 = vpop.f32.mrf.mxu1 }
 0x499   : > { %v1640_v22 = vmul.f32 %v2908_v38, %v4252_v46  ;;  %v4269_v57 = vpop.xlane.xlu1 %1287  ;;  %v1021_v26 = vpop.xlane.xlu2 %1020  ;;  %v1631_v6 = vsel %vm1630_vm14, %v2902_v48, %v1627_v24  ;;  %2126 = vmatmul.f32.gmra.mxu3 %v1995_v28  ;;  %vm1645_vm0 = vweird.f32 %v2908_v38 }
 0x49a   : > { %2913 = vrcp.f32 %v4269_v57  ;;  %v1087_v2 = vsub.f32 %v4142_v15, %v1021_v26  ;;  %v1088_v52 = vsub.f32 %v4137_v58, %v1021_v26  ;;  %v1636_v62 = vsel %vm1633_vm15, %v1635_v60, %v1631_v6  ;;  %vm1646_vm2 = vmor %vm1644_vm1, %vm1645_vm0 }
 0x49b   : > { %v1641_v47 = vsub.f32 1.0, %v1640_v22  ;;  %v1637_v59 = vmul.f32 %v4113_v5, %v1636_v62  ;;  %v1638_v15 = vmul.f32 %v4117_v56, %v1636_v62  ;;  %v1666_v43 = vand.u32 2147483648, %v4269_v57 }
 0x49c   : > { %v4274_v30 = vpop.eup %2909  ;;  %v1207_v11 = vmul.f32 1.442695, %v1087_v2  ;;  %v1209_v3 = vmul.f32 1.442695, %v1088_v52  ;;  %v1664_v22 = vand.u32 2147483647, %v4269_v57  ;;  %vm1660_vm5 = vweird.f32 %v4269_v57 }
 0x49d   : > { %v4278_v29 = vpop.eup %2911  ;;  %v1642_v48 = vmul.f32 %v2908_v38, %v1641_v47  ;;  %1904 = vmatmul.f32.gmra.mxu1 %v1637_v59  ;;  %2017 = vmatmul.f32.gmra.mxu2 %v1638_v15 }
 0x49e   : > { %2915 = vpow2.f32 %v1207_v11  ;;  %v1304_v58 = vadd.f32 %v4278_v29, %v4274_v30  ;;  %v1997_v33 = vpop.f32.mrf.mxu2  ;;  %vm1665_vm7 = vcmp.eq.f32.partialorder %v1664_v22, 8.507059e+37 }
 0x49f   : > { %2917 = vpow2.f32 %v1209_v3  ;;  %v1643_v5 = vadd.f32 %v2908_v38, %v1642_v48  ;;  %v1998_v21 = vadd.f32 %v1997_v33, %v1884_v42  ;;  %v1667_v42 = vor.u32 1.1754944e-38, %v1666_v43 }
 0x4a0   : > { %v2914_v41 = vpop.eup %2913  ;;  %1305 = vadd.xlane.f32.xlu2 %v1304_v58  ;;  %v1887_v32 = vpop.f32.mrf.mxu1 }
 0x4a1   : > { %v1656_v56 = vmul.f32 %v2914_v41, %v4269_v57  ;;  %v4286_v49 = vpop.xlane.xlu0 %1290  ;;  %v1024_v14 = vpop.xlane.xlu1 %1023  ;;  %v1647_v16 = vsel %vm1646_vm2, %v2908_v38, %v1643_v5  ;;  %2129 = vmatmul.f32.gmra.mxu3 %v1998_v21  ;;  %vm1661_vm4 = vweird.f32 %v2914_v41 }
 0x4a2   : > { %2919 = vrcp.f32 %v4286_v49  ;;  %v1089_v9 = vsub.f32 %v4172_v0, %v1024_v14  ;;  %v1090_v19 = vsub.f32 %v4169_v44, %v1024_v14  ;;  %v1652_v40 = vsel %vm1649_vm3, %v1651_v27, %v1647_v16  ;;  %vm1662_vm6 = vmor %vm1660_vm5, %vm1661_vm4 }
 0x4a3   : > { %v1657_v46 = vsub.f32 1.0, %v1656_v56  ;;  %v1653_v24 = vmul.f32 %v4133_v7, %v1652_v40  ;;  %v1654_v0 = vmul.f32 %v4139_v25, %v1652_v40  ;;  %v1682_v3 = vand.u32 2147483648, %v4286_v49 }
 0x4a4   : > { %v4291_v39 = vpop.eup %2915  ;;  %v1211_v45 = vmul.f32 1.442695, %v1089_v9  ;;  %v1213_v60 = vmul.f32 1.442695, %v1090_v19  ;;  %v1680_v12 = vand.u32 2147483647, %v4286_v49  ;;  %vm1676_vm9 = vweird.f32 %v4286_v49 }
 0x4a5   : > { %v4295_v28 = vpop.eup %2917  ;;  %v1658_v38 = vmul.f32 %v2914_v41, %v1657_v46  ;;  %1907 = vmatmul.f32.gmra.mxu1 %v1653_v24  ;;  %2020 = vmatmul.f32.gmra.mxu2 %v1654_v0  ;;  %v1683_v14 = vor.u32 1.1754944e-38, %v1682_v3 }
 0x4a6   : > { %2921 = vpow2.f32 %v1211_v45  ;;  %v1307_v44 = vadd.f32 %v4295_v28, %v4291_v39  ;;  %v2000_v26 = vpop.f32.mrf.mxu2  ;;  %vm1681_vm11 = vcmp.eq.f32.partialorder %v1680_v12, 8.507059e+37 }
 0x4a7   : > { %2923 = vpow2.f32 %v1213_v60  ;;  %v1659_v7 = vadd.f32 %v2914_v41, %v1658_v38  ;;  %v2001_v2 = vadd.f32 %v2000_v26, %v1887_v32 }
 0x4a8   : > { %v2920_v6 = vpop.eup %2919  ;;  %1308 = vadd.xlane.f32.xlu0 %v1307_v44 }
 0x4a9   : > { %v1672_v25 = vmul.f32 %v2920_v6, %v4286_v49  ;;  %v4303_v47 = vpop.xlane.xlu2 %1293  ;;  %v1027_v52 = vpop.xlane.xlu0 %1026  ;;  %v1663_v62 = vsel %vm1662_vm6, %v2914_v41, %v1659_v7  ;;  %2132 = vmatmul.f32.gmra.mxu3 %v2001_v2  ;;  %vm1677_vm8 = vweird.f32 %v2920_v6 }
 0x4aa   : > { %2925 = vrcp.f32 %v4303_v47  ;;  %v1091_v13 = vsub.f32 %v4192_v10, %v1027_v52  ;;  %v1092_v11 = vsub.f32 %v4194_v18, %v1027_v52  ;;  %v1668_v59 = vsel %vm1665_vm7, %v1667_v42, %v1663_v62  ;;  %v1890_v10 = vpop.f32.mrf.mxu1  ;;  %vm1678_vm10 = vmor %vm1676_vm9, %vm1677_vm8 }
 0x4ab   : > { %v1673_v57 = vsub.f32 1.0, %v1672_v25  ;;  %v1669_v58 = vmul.f32 %v4157_v17, %v1668_v59  ;;  %v1670_v21 = vmul.f32 %v4162_v54, %v1668_v59  ;;  %v1698_v38 = vand.u32 2147483648, %v4303_v47 }
 0x4ac   : > { %v4308_v48 = vpop.eup %2921  ;;  %v1215_v15 = vmul.f32 1.442695, %v1091_v13  ;;  %v1217_v41 = vmul.f32 1.442695, %v1092_v11  ;;  %vm1692_vm13 = vweird.f32 %v4303_v47 }
 0x4ad   : > { %v4313_v33 = vpop.eup %2923  ;;  %v1674_v5 = vmul.f32 %v2920_v6, %v1673_v57  ;;  %1910 = vmatmul.f32.gmra.mxu1 %v1669_v58  ;;  %2023 = vmatmul.f32.gmra.mxu2 %v1670_v21  ;;  %v1699_v7 = vor.u32 1.1754944e-38, %v1698_v38 }
 0x4ae   : > { %2927 = vpow2.f32 %v1215_v15  ;;  %v1310_v18 = vadd.f32 %v4313_v33, %v4308_v48  ;;  %v2003_v17 = vpop.f32.mrf.mxu2 }
 0x4af   : > { %2929 = vpow2.f32 %v1217_v41  ;;  %v1675_v27 = vadd.f32 %v2920_v6, %v1674_v5  ;;  %v2004_v16 = vadd.f32 %v2003_v17, %v1890_v10 }
 0x4b0   : > { %v2926_v56 = vpop.eup %2925  ;;  %1311 = vadd.xlane.f32.xlu1 %v1310_v18 }
 0x4b1   : > { %v1688_v9 = vmul.f32 %v2926_v56, %v4303_v47  ;;  %v1030_v54 = vpop.xlane.xlu2 %1029  ;;  %v1679_v46 = vsel %vm1678_vm10, %v2920_v6, %v1675_v27  ;;  %2135 = vmatmul.f32.gmra.mxu3 %v2004_v16  ;;  %vm1693_vm12 = vweird.f32 %v2926_v56 }
 0x4b2   : > { %v1093_v19 = vsub.f32 %v4206_v23, %v1030_v54  ;;  %v1094_v32 = vsub.f32 %v4208_v1, %v1030_v54  ;;  %v1684_v49 = vsel %vm1681_vm11, %v1683_v14, %v1679_v46  ;;  %v1696_v23 = vand.u32 2147483647, %v4303_v47  ;;  %vm1694_vm14 = vmor %vm1692_vm13, %vm1693_vm12 }
 0x4b3   : > { %v1689_v40 = vsub.f32 1.0, %v1688_v9  ;;  %v1685_v43 = vmul.f32 %v4180_v34, %v1684_v49  ;;  %v1686_v45 = vmul.f32 %v4183_v53, %v1684_v49  ;;  %v1893_v34 = vpop.f32.mrf.mxu1 }
 0x4b4   : > { %v4324_v24 = vpop.eup %2927  ;;  %v1219_v60 = vmul.f32 1.442695, %v1093_v19  ;;  %v1221_v0 = vmul.f32 1.442695, %v1094_v32  ;;  %vm1697_vm15 = vcmp.eq.f32.partialorder %v1696_v23, 8.507059e+37 }
 0x4b5   : > { %v4327_v44 = vpop.eup %2929  ;;  %v1690_v22 = vmul.f32 %v2926_v56, %v1689_v40  ;;  %1913 = vmatmul.f32.gmra.mxu1 %v1685_v43  ;;  %2026 = vmatmul.f32.gmra.mxu2 %v1686_v45 }
 0x4b6   : > { %2931 = vpow2.f32 %v1219_v60  ;;  %v1313_v1 = vadd.f32 %v4327_v44, %v4324_v24  ;;  %v2006_v53 = vpop.f32.mrf.mxu2 }
 0x4b7   : > { %2933 = vpow2.f32 %v1221_v0  ;;  %v1691_v26 = vadd.f32 %v2926_v56, %v1690_v22  ;;  %v2007_v6 = vadd.f32 %v2006_v53, %v1893_v34 }
 0x4b8   : > { %1314 = vadd.xlane.f32.xlu2 %v1313_v1 }
 0x4b9   : > { %v1695_v2 = vsel %vm1694_vm14, %v2926_v56, %v1691_v26  ;;  %2138 = vmatmul.f32.gmra.mxu3 %v2007_v6 }
 0x4ba   : > { %v1700_v42 = vsel %vm1697_vm15, %v1699_v7, %v1695_v2 }
 0x4bb   : > { %v1701_v25 = vmul.f32 %v4198_v4, %v1700_v42  ;;  %v1702_v52 = vmul.f32 %v4200_v36, %v1700_v42 }
 0x4bc   : > { %v4335_v62 = vpop.eup %2931 }
 0x4bd   : > { %v4337_v47 = vpop.eup %2933  ;;  %1916 = vmatmul.f32.gmra.mxu1 %v1701_v25  ;;  %2029 = vmatmul.f32.gmra.mxu2 %v1702_v52 }
 0x4be   : > { %v1316_v13 = vadd.f32 %v4337_v47, %v4335_v62 }
 0x4c0   : > { %1317 = vadd.xlane.f32.xlu0 %v1316_v13 }
 0x4fb   : > { %v1297_v57 = vpop.xlane.xlu1 %1296 }
 0x4fc   : > { %2935 = vrcp.f32 %v1297_v57  ;;  %v1714_v58 = vand.u32 2147483648, %v1297_v57  ;;  %v1712_v12 = vand.u32 2147483647, %v1297_v57  ;;  %vm1708_vm1 = vweird.f32 %v1297_v57 }
 0x4fe   : > { %v1715_v21 = vor.u32 1.1754944e-38, %v1714_v58  ;;  %vm1713_vm3 = vcmp.eq.f32.partialorder %v1712_v12, 8.507059e+37 }
 0x502   : > { %v2936_v11 = vpop.eup %2935  ;;  %v1896_v15 = vpop.f32.mrf.mxu1 }
 0x503   : > { %v1704_v59 = vmul.f32 %v2936_v11, %v1297_v57  ;;  %v1300_v3 = vpop.xlane.xlu0 %1299  ;;  %vm1709_vm0 = vweird.f32 %v2936_v11 }
 0x504   : > { %2937 = vrcp.f32 %v1300_v3  ;;  %vm1710_vm2 = vmor %vm1708_vm1, %vm1709_vm0  ;;  %v1730_v19 = vand.u32 2147483648, %v1300_v3  ;;  %v1728_v49 = vand.u32 2147483647, %v1300_v3  ;;  %vm1724_vm5 = vweird.f32 %v1300_v3 }
 0x505   : > { %v1705_v4 = vsub.f32 1.0, %v1704_v59 }
 0x506   : > { %v1731_v38 = vor.u32 1.1754944e-38, %v1730_v19  ;;  %vm1729_vm7 = vcmp.eq.f32.partialorder %v1728_v49, 8.507059e+37 }
 0x507   : > { %v1706_v36 = vmul.f32 %v2936_v11, %v1705_v4 }
 0x508   : > { %v2009_v5 = vpop.f32.mrf.mxu2 }
 0x509   : > { %v1707_v41 = vadd.f32 %v2936_v11, %v1706_v36  ;;  %v2010_v18 = vadd.f32 %v2009_v5, %v1896_v15 }
 0x50a   : > { %v2938_v10 = vpop.eup %2937  ;;  %v1899_v56 = vpop.f32.mrf.mxu1 }
 0x50b   : > { %v1720_v17 = vmul.f32 %v2938_v10, %v1300_v3  ;;  %v1303_v27 = vpop.xlane.xlu1 %1302  ;;  %v1711_v14 = vsel %vm1710_vm2, %v2936_v11, %v1707_v41  ;;  %2141 = vmatmul.f32.gmra.mxu3 %v2010_v18  ;;  %vm1725_vm4 = vweird.f32 %v2938_v10 }
 0x50c   : > { %2939 = vrcp.f32 %v1303_v27  ;;  %v1716_v16 = vsel %vm1713_vm3, %v1715_v21, %v1711_v14  ;;  %vm1726_vm6 = vmor %vm1724_vm5, %vm1725_vm4  ;;  %v1746_v26 = vand.u32 2147483648, %v1303_v27  ;;  %v1744_v6 = vand.u32 2147483647, %v1303_v27 }
 0x50d   : > { %v1721_v9 = vsub.f32 1.0, %v1720_v17  ;;  %v1717_v54 = vmul.f32 %v4223_v51, %v1716_v16  ;;  %v1718_v46 = vmul.f32 %v4227_v31, %v1716_v16  ;;  %vm1740_vm9 = vweird.f32 %v1303_v27 }
 0x50e   : > { %v1747_v25 = vor.u32 1.1754944e-38, %v1746_v26  ;;  %vm1745_vm11 = vcmp.eq.f32.partialorder %v1744_v6, 8.507059e+37 }
 0x50f   : > { %v1722_v32 = vmul.f32 %v2938_v10, %v1721_v9  ;;  %1919 = vmatmul.f32.gmra.mxu1 %v1717_v54  ;;  %2032 = vmatmul.f32.gmra.mxu2 %v1718_v46 }
 0x510   : > { %v2012_v40 = vpop.f32.mrf.mxu2 }
 0x511   : > { %v1723_v43 = vadd.f32 %v2938_v10, %v1722_v32  ;;  %v2013_v60 = vadd.f32 %v2012_v40, %v1899_v56 }
 0x512   : > { %v2940_v45 = vpop.eup %2939  ;;  %v1902_v23 = vpop.f32.mrf.mxu1 }
 0x513   : > { %v1736_v0 = vmul.f32 %v2940_v45, %v1303_v27  ;;  %v1306_v22 = vpop.xlane.xlu2 %1305  ;;  %v1727_v1 = vsel %vm1726_vm6, %v2938_v10, %v1723_v43  ;;  %2144 = vmatmul.f32.gmra.mxu3 %v2013_v60  ;;  %vm1741_vm8 = vweird.f32 %v2940_v45 }
 0x514   : > { %2941 = vrcp.f32 %v1306_v22  ;;  %v1732_v51 = vsel %vm1729_vm7, %v1731_v38, %v1727_v1  ;;  %vm1742_vm10 = vmor %vm1740_vm9, %vm1741_vm8  ;;  %v1762_v58 = vand.u32 2147483648, %v1306_v22  ;;  %v1760_v12 = vand.u32 2147483647, %v1306_v22 }
 0x515   : > { %v1737_v31 = vsub.f32 1.0, %v1736_v0  ;;  %v1733_v34 = vmul.f32 %v4240_v37, %v1732_v51  ;;  %v1734_v53 = vmul.f32 %v4244_v61, %v1732_v51  ;;  %vm1756_vm13 = vweird.f32 %v1306_v22 }
 0x516   : > { %v1763_v10 = vor.u32 1.1754944e-38, %v1762_v58  ;;  %vm1761_vm15 = vcmp.eq.f32.partialorder %v1760_v12, 8.507059e+37 }
 0x517   : > { %v1738_v7 = vmul.f32 %v2940_v45, %v1737_v31  ;;  %1922 = vmatmul.f32.gmra.mxu1 %v1733_v34  ;;  %2035 = vmatmul.f32.gmra.mxu2 %v1734_v53 }
 0x518   : > { %v2015_v52 = vpop.f32.mrf.mxu2 }
 0x519   : > { %v1739_v2 = vadd.f32 %v2940_v45, %v1738_v7  ;;  %v2016_v57 = vadd.f32 %v2015_v52, %v1902_v23 }
 0x51a   : > { %v2942_v42 = vpop.eup %2941  ;;  %v1905_v59 = vpop.f32.mrf.mxu1 }
 0x51b   : > { %v1752_v13 = vmul.f32 %v2942_v42, %v1306_v22  ;;  %v1309_v11 = vpop.xlane.xlu0 %1308  ;;  %v1743_v3 = vsel %vm1742_vm10, %v2940_v45, %v1739_v2  ;;  %2147 = vmatmul.f32.gmra.mxu3 %v2016_v57  ;;  %vm1757_vm12 = vweird.f32 %v2942_v42 }
 0x51c   : > { %2943 = vrcp.f32 %v1309_v11  ;;  %v1748_v37 = vsel %vm1745_vm11, %v1747_v25, %v1743_v3  ;;  %vm1758_vm14 = vmor %vm1756_vm13, %vm1757_vm12  ;;  %v1778_v54 = vand.u32 2147483648, %v1309_v11  ;;  %v1776_v19 = vand.u32 2147483647, %v1309_v11 }
 0x51d   : > { %v1753_v61 = vsub.f32 1.0, %v1752_v13  ;;  %v1749_v15 = vmul.f32 %v4257_v50, %v1748_v37  ;;  %v1750_v4 = vmul.f32 %v4261_v8, %v1748_v37  ;;  %vm1772_vm1 = vweird.f32 %v1309_v11 }
 0x51e   : > { %v1779_v40 = vor.u32 1.1754944e-38, %v1778_v54  ;;  %vm1777_vm3 = vcmp.eq.f32.partialorder %v1776_v19, 8.507059e+37  ;;  %v4357_v54 = vpop.f32.mrf.mxu3  ;;  %v1968_v19 = vadd.f32 %v4077_v63, %v4061_v20 }
 0x51f   : > { %v1754_v36 = vmul.f32 %v2942_v42, %v1753_v61  ;;  %1925 = vmatmul.f32.gmra.mxu1 %v1749_v15  ;;  %2038 = vmatmul.f32.gmra.mxu2 %v1750_v4 }
 0x520   : > { %v2018_v21 = vpop.f32.mrf.mxu2 }
 0x521   : > { %v1755_v5 = vadd.f32 %v2942_v42, %v1754_v36  ;;  %v2019_v17 = vadd.f32 %v2018_v21, %v1905_v59 }
 0x522   : > { %v2944_v41 = vpop.eup %2943  ;;  %v1908_v50 = vpop.f32.mrf.mxu1 }
 0x523   : > { %v1768_v18 = vmul.f32 %v2944_v41, %v1309_v11  ;;  %v1312_v27 = vpop.xlane.xlu1 %1311  ;;  %v1759_v56 = vsel %vm1758_vm14, %v2942_v42, %v1755_v5  ;;  %2150 = vmatmul.f32.gmra.mxu3 %v2019_v17  ;;  %vm1773_vm0 = vweird.f32 %v2944_v41 }
 0x524   : > { %2945 = vrcp.f32 %v1312_v27  ;;  %v1764_v8 = vsel %vm1761_vm15, %v1763_v10, %v1759_v56  ;;  %vm1774_vm2 = vmor %vm1772_vm1, %vm1773_vm0  ;;  %v1794_v31 = vand.u32 2147483648, %v1312_v27  ;;  %v1792_v34 = vand.u32 2147483647, %v1312_v27 }
 0x525   : > { %v1769_v14 = vsub.f32 1.0, %v1768_v18  ;;  %v1765_v16 = vmul.f32 %v4274_v30, %v1764_v8  ;;  %v1766_v9 = vmul.f32 %v4278_v29, %v1764_v8  ;;  %vm1788_vm5 = vweird.f32 %v1312_v27 }
 0x526   : > { %v1795_v6 = vor.u32 1.1754944e-38, %v1794_v31  ;;  %vm1793_vm7 = vcmp.eq.f32.partialorder %v1792_v34, 8.507059e+37 }
 0x527   : > { %v1770_v46 = vmul.f32 %v2944_v41, %v1769_v14  ;;  %1928 = vmatmul.f32.gmra.mxu1 %v1765_v16  ;;  %2041 = vmatmul.f32.gmra.mxu2 %v1766_v9 }
 0x528   : > { %v2021_v43 = vpop.f32.mrf.mxu2 }
 0x529   : > { %v1771_v32 = vadd.f32 %v2944_v41, %v1770_v46  ;;  %v2022_v38 = vadd.f32 %v2021_v43, %v1908_v50  ;;  %v1965_v46 = vadd.f32 %v4054_v55, %v4036_v35 }
 0x52a   : > { %v2946_v49 = vpop.eup %2945  ;;  %v1911_v1 = vpop.f32.mrf.mxu1 }
 0x52b   : > { %v1784_v45 = vmul.f32 %v2946_v49, %v1312_v27  ;;  %v1315_v60 = vpop.xlane.xlu2 %1314  ;;  %v1775_v0 = vsel %vm1774_vm2, %v2944_v41, %v1771_v32  ;;  %2153 = vmatmul.f32.gmra.mxu3 %v2022_v38  ;;  %vm1789_vm4 = vweird.f32 %v2946_v49  ;;  %v2106_v32 = vpop.f32.mrf.mxu3 }
 0x52c   : > { %2947 = vrcp.f32 %v1315_v60  ;;  %v1780_v30 = vsel %vm1777_vm3, %v1779_v40, %v1775_v0  ;;  %vm1790_vm6 = vmor %vm1788_vm5, %vm1789_vm4  ;;  %v1810_v13 = vand.u32 2147483648, %v1315_v60  ;;  %v1808_v3 = vand.u32 2147483647, %v1315_v60 }
 0x52d   : > { %v1785_v29 = vsub.f32 1.0, %v1784_v45  ;;  %v1781_v22 = vmul.f32 %v4291_v39, %v1780_v30  ;;  %v1782_v23 = vmul.f32 %v4295_v28, %v1780_v30  ;;  %vm1804_vm9 = vweird.f32 %v1315_v60 }
 0x52e   : > { %v1811_v4 = vor.u32 1.1754944e-38, %v1810_v13  ;;  %vm1809_vm11 = vcmp.eq.f32.partialorder %v1808_v3, 8.507059e+37 }
 0x52f   : > { %v1786_v51 = vmul.f32 %v2946_v49, %v1785_v29  ;;  %1931 = vmatmul.f32.gmra.mxu1 %v1781_v22  ;;  %2044 = vmatmul.f32.gmra.mxu2 %v1782_v23 }
 0x530   : > { %v2024_v7 = vpop.f32.mrf.mxu2 }
 0x531   : > { %v1787_v53 = vadd.f32 %v2946_v49, %v1786_v51  ;;  %v2025_v42 = vadd.f32 %v2024_v7, %v1911_v1 }
 0x532   : > { %v2948_v26 = vpop.eup %2947  ;;  %v1914_v37 = vpop.f32.mrf.mxu1 }
 0x533   : > { %v1800_v2 = vmul.f32 %v2948_v26, %v1315_v60  ;;  %v1318_v25 = vpop.xlane.xlu0 %1317  ;;  %v1791_v52 = vsel %vm1790_vm6, %v2946_v49, %v1787_v53  ;;  %2156 = vmatmul.f32.gmra.mxu3 %v2025_v42  ;;  %vm1805_vm8 = vweird.f32 %v2948_v26  ;;  %v2109_v49 = vpop.f32.mrf.mxu3 }
 0x534   : > { %2949 = vrcp.f32 %v1318_v25  ;;  %v1796_v28 = vsel %vm1793_vm7, %v1795_v6, %v1791_v52  ;;  %vm1806_vm10 = vmor %vm1804_vm9, %vm1805_vm8  ;;  %v1826_v21 = vand.u32 2147483648, %v1318_v25  ;;  %v1824_v17 = vand.u32 2147483647, %v1318_v25 }
 0x535   : > { %v1801_v39 = vsub.f32 1.0, %v1800_v2  ;;  %v1797_v57 = vmul.f32 %v4308_v48, %v1796_v28  ;;  %v1798_v59 = vmul.f32 %v4313_v33, %v1796_v28  ;;  %vm1820_vm13 = vweird.f32 %v1318_v25 }
 0x536   : > { %v1827_v56 = vor.u32 1.1754944e-38, %v1826_v21  ;;  %vm1825_vm15 = vcmp.eq.f32.partialorder %v1824_v17, 8.507059e+37 }
 0x537   : > { %v1802_v11 = vmul.f32 %v2948_v26, %v1801_v39  ;;  %1934 = vmatmul.f32.gmra.mxu1 %v1797_v57  ;;  %2047 = vmatmul.f32.gmra.mxu2 %v1798_v59 }
 0x538   : > { %v2027_v58 = vpop.f32.mrf.mxu2 }
 0x539   : > { %v1803_v61 = vadd.f32 %v2948_v26, %v1802_v11  ;;  %v2028_v12 = vadd.f32 %v2027_v58, %v1914_v37  ;;  %v4378_v58 = vld [vmem:[%s5084_s4] ss:$0 sm:$0xff] }
 0x53a   : > { %v2950_v15 = vpop.eup %2949  ;;  %v1917_v50 = vpop.f32.mrf.mxu1 }
 0x53b   : > { %v1816_v36 = vmul.f32 %v2950_v15, %v1318_v25  ;;  %v1807_v5 = vsel %vm1806_vm10, %v2948_v26, %v1803_v61  ;;  %2159 = vmatmul.f32.gmra.mxu3 %v2028_v12  ;;  %vm1821_vm12 = vweird.f32 %v2950_v15  ;;  %v4363_v40 = vpop.f32.mrf.mxu3 }
 0x53c   : > { %v1812_v41 = vsel %vm1809_vm11, %v1811_v4, %v1807_v5  ;;  %vm1822_vm14 = vmor %vm1820_vm13, %vm1821_vm12 }
 0x53d   : > { %v1817_v48 = vsub.f32 1.0, %v1816_v36  ;;  %v1813_v33 = vmul.f32 %v4324_v24, %v1812_v41  ;;  %v1814_v10 = vmul.f32 %v4327_v44, %v1812_v41  ;;  %v2094_v36 = vpop.f32.mrf.mxu0 }
 0x53e   : > { %v4384_v41 = vadd.f32 %v4378_v58, %v2094_v36 }
 0x53f   : > { %v1818_v18 = vmul.f32 %v2950_v15, %v1817_v48  ;;  %1937 = vmatmul.f32.gmra.mxu1 %v1813_v33  ;;  %2050 = vmatmul.f32.gmra.mxu2 %v1814_v10 }
 0x540   : > { %v2030_v8 = vpop.f32.mrf.mxu2 }
 0x541   : > { %v1819_v27 = vadd.f32 %v2950_v15, %v1818_v18  ;;  %v2031_v14 = vadd.f32 %v2030_v8, %v1917_v50  ;;  %v4394_v18 = vadd.f32 %v4378_v58, %v4357_v54  ;;  %v4402_v50 = vadd.f32 %v4378_v58, %v2109_v49 }
 0x543   : > { %v1823_v16 = vsel %vm1822_vm14, %v2950_v15, %v1819_v27  ;;  %2162 = vmatmul.f32.gmra.mxu3 %v2031_v14  ;;  %v4365_v43 = vpop.f32.mrf.mxu3  ;;  %v4398_v27 = vadd.f32 %v4378_v58, %v2106_v32 }
 0x544   : > { %v1828_v9 = vsel %vm1825_vm15, %v1827_v56, %v1823_v16  ;;  %v4407_v16 = vadd.f32 %v4378_v58, %v4363_v40 }
 0x545   : > { %v1829_v24 = vmul.f32 %v4335_v62, %v1828_v9  ;;  %v1830_v44 = vmul.f32 %v4337_v47, %v1828_v9 }
 0x547   : > { %1940 = vmatmul.f32.gmra.mxu1 %v1829_v24  ;;  %2053 = vmatmul.f32.gmra.mxu2 %v1830_v44  ;;  %v4412_v24 = vadd.f32 %v4378_v58, %v4365_v43 }
 0x54b   : > { %v4367_v62 = vpop.f32.mrf.mxu3 }
 0x54f   : > { %2096 = vmatmul.f32.vlgmr.msra.gmra.mxu1 %v1965_v46  ;;  %2099 = vmatmul.f32.vlgmr.msra.gmra.mxu2 %v1968_v19  ;;  %v4417_v46 = vadd.f32 %v4378_v58, %v4367_v62 }
 0x553   : > { %v4369_v47 = vpop.f32.mrf.mxu3 }
 0x554   : > { %v4422_v32 = vadd.f32 %v4378_v58, %v4369_v47 }
 0x55b   : > { %v4371_v38 = vpop.f32.mrf.mxu3 }
 0x55c   : > { %v4427_v40 = vadd.f32 %v4378_v58, %v4371_v38 }
 0x563   : > { %v4373_v20 = vpop.f32.mrf.mxu3 }
 0x56b   : > { %v2130_v23 = vpop.f32.mrf.mxu3 }
 0x573   : > { %v2133_v34 = vpop.f32.mrf.mxu3 }
 0x57b   : > { %v2136_v6 = vpop.f32.mrf.mxu3 }
 0x583   : > { %v2139_v52 = vpop.f32.mrf.mxu3 }
 0x58c   : > { %v1920_v45 = vpop.f32.mrf.mxu1 }
 0x58e   : > { %v2142_v57 = vpop.f32.mrf.mxu3 }
 0x592   : > { %v2033_v60 = vpop.f32.mrf.mxu2 }
 0x593   : > { %v2034_v35 = vadd.f32 %v2033_v60, %v1920_v45  ;;  %v4432_v60 = vadd.f32 %v4378_v58, %v4373_v20 }
 0x594   : > { %v1923_v55 = vpop.f32.mrf.mxu1 }
 0x595   : > { %2165 = vmatmul.f32.gmra.mxu3 %v2034_v35  ;;  %v4436_v35 = vadd.f32 %v4378_v58, %v2130_v23  ;;  %v4452_v23 = vadd.f32 %v4378_v58, %v2142_v57 }
 0x596   : > { %v2145_v37 = vpop.f32.mrf.mxu3 }
 0x59a   : > { %v2036_v63 = vpop.f32.mrf.mxu2 }
 0x59b   : > { %v2037_v0 = vadd.f32 %v2036_v63, %v1923_v55  ;;  %v4440_v63 = vadd.f32 %v4378_v58, %v2133_v34 }
 0x59c   : > { %v1926_v30 = vpop.f32.mrf.mxu1 }
 0x59d   : > { %2168 = vmatmul.f32.gmra.mxu3 %v2037_v0  ;;  %v4444_v0 = vadd.f32 %v4378_v58, %v2136_v6 }
 0x59e   : > { %v2148_v61 = vpop.f32.mrf.mxu3 }
 0x5a2   : > { %v2039_v29 = vpop.f32.mrf.mxu2 }
 0x5a3   : > { %v2040_v22 = vadd.f32 %v2039_v29, %v1926_v30  ;;  %v4448_v29 = vadd.f32 %v4378_v58, %v2139_v52 }
 0x5a4   : > { %v1929_v1 = vpop.f32.mrf.mxu1 }
 0x5a5   : > { %2171 = vmatmul.f32.gmra.mxu3 %v2040_v22 }
 0x5a6   : > { %v2151_v15 = vpop.f32.mrf.mxu3 }
 0x5a7   : > { %v4464_v6 = vadd.f32 %v4378_v58, %v2151_v15 }
 0x5aa   : > { %v2042_v51 = vpop.f32.mrf.mxu2 }
 0x5ab   : > { %v2043_v31 = vadd.f32 %v2042_v51, %v1929_v1 }
 0x5ac   : > { %v1932_v53 = vpop.f32.mrf.mxu1 }
 0x5ad   : > { %2174 = vmatmul.f32.gmra.mxu3 %v2043_v31  ;;  %v4456_v31 = vadd.f32 %v4378_v58, %v2145_v37 }
 0x5ae   : > { %v2154_v21 = vpop.f32.mrf.mxu3 }
 0x5b2   : > { %v2045_v26 = vpop.f32.mrf.mxu2 }
 0x5b3   : > { %v2046_v7 = vadd.f32 %v2045_v26, %v1932_v53  ;;  %v4460_v53 = vadd.f32 %v4378_v58, %v2148_v61 }
 0x5b4   : > { %v1935_v2 = vpop.f32.mrf.mxu1 }
 0x5b5   : > { %2177 = vmatmul.f32.gmra.mxu3 %v2046_v7 }
 0x5b6   : > { %v2157_v8 = vpop.f32.mrf.mxu3 }
 0x5ba   : > { %v2048_v42 = vpop.f32.mrf.mxu2 }
 0x5bb   : > { %v2049_v25 = vadd.f32 %v2048_v42, %v1935_v2  ;;  %v4468_v42 = vadd.f32 %v4378_v58, %v2154_v21 }
 0x5bc   : > { %v1938_v39 = vpop.f32.mrf.mxu1 }
 0x5bd   : > { %2180 = vmatmul.f32.gmra.mxu3 %v2049_v25 }
 0x5be   : > { %v2160_v54 = vpop.f32.mrf.mxu3 }
 0x5c2   : > { %v2051_v28 = vpop.f32.mrf.mxu2 }
 0x5c3   : > { %v2052_v13 = vadd.f32 %v2051_v28, %v1938_v39  ;;  %v4472_v39 = vadd.f32 %v4378_v58, %v2157_v8 }
 0x5c4   : > { %v1941_v11 = vpop.f32.mrf.mxu1 }
 0x5c5   : > { %2183 = vmatmul.f32.gmra.mxu3 %v2052_v13  ;;  %v4476_v13 = vadd.f32 %v4378_v58, %v2160_v54 }
 0x5c6   : > { %v2163_v43 = vpop.f32.mrf.mxu3 }
 0x5ca   : > { %v2054_v59 = vpop.f32.mrf.mxu2 }
 0x5cb   : > { %v2055_v3 = vadd.f32 %v2054_v59, %v1941_v11  ;;  %v4480_v59 = vadd.f32 %v4378_v58, %v2163_v43  ;;  %v2995_v43 = vmov 1024.0  }
 0x5cc   : > { %v2097_v4 = vpop.f32.mrf.mxu1  ;;  %2951 = vrcp.f32 %v2995_v43 }
 0x5cd   : > { %2186 = vmatmul.f32.gmra.mxu3 %v2055_v3  ;;  %v4381_v5 = vadd.f32 %v4378_v58, %v2097_v4 }
 0x5cf   : > { %v2190_v33 = vadd.f32 %v4381_v5, %v4384_v41 }
 0x5d2   : > { %v2100_v12 = vpop.f32.mrf.mxu2 }
 0x5d3   : > { %v4387_v48 = vadd.f32 %v4378_v58, %v2100_v12 }
 0x5d5   : > { %v2191_v10 = vadd.f32 %v2190_v33, %v4387_v48 }
 0x5d7   : > { %v2192_v17 = vadd.f32 %v2191_v10, %v4394_v18 }
 0x5d9   : > { %v2193_v56 = vadd.f32 %v2192_v17, %v4398_v27 }
 0x5db   : > { %v2194_v14 = vadd.f32 %v2193_v56, %v4402_v50 }
 0x5dd   : > { %v2195_v9 = vadd.f32 %v2194_v14, %v4407_v16 }
 0x5df   : > { %v2196_v44 = vadd.f32 %v2195_v9, %v4412_v24 }
 0x5e1   : > { %v2197_v19 = vadd.f32 %v2196_v44, %v4417_v46 }
 0x5e3   : > { %v2198_v49 = vadd.f32 %v2197_v19, %v4422_v32 }
 0x5e5   : > { %v2199_v45 = vadd.f32 %v2198_v49, %v4427_v40 }
 0x5e7   : > { %v2200_v62 = vadd.f32 %v2199_v45, %v4432_v60  ;;  %v2952_v45 = vpop.eup %2951 }
 0x5e8   : > { %vm2235_vm0 = vweird.f32 %v2952_v45 }
 0x5e9   : > { %v2201_v55 = vadd.f32 %v2200_v62, %v4436_v35  ;;  %v2231_v62 = vmul.f32 1024.0, %v2952_v45 }
 0x5eb   : > { %v2202_v38 = vadd.f32 %v2201_v55, %v4440_v63 }
 0x5ed   : > { %v2203_v20 = vadd.f32 %v2202_v38, %v4444_v0 }
 0x5ef   : > { %v2204_v22 = vadd.f32 %v2203_v20, %v4448_v29 }
 0x5f1   : > { %v2205_v51 = vadd.f32 %v2204_v22, %v4452_v23 }
 0x5f3   : > { %v2206_v34 = vadd.f32 %v2205_v51, %v4456_v31 }
 0x5f5   : > { %v2207_v7 = vadd.f32 %v2206_v34, %v4460_v53 }
 0x5f7   : > { %v2208_v2 = vadd.f32 %v2207_v7, %v4464_v6  ;;  %v2239_v7 = vlaneseq }
 0x5f9   : > { %v2209_v52 = vadd.f32 %v2208_v2, %v4468_v42  ;;  %v4518_v2 = vand.u32 127, %v2239_v7 }
 0x5fb   : > { %v2210_v28 = vadd.f32 %v2209_v52, %v4472_v39  ;;  %vm2241_vm1 = vcmp.lt.s32.totalorder %v4518_v2, 4 }
 0x5fd   : > { %v2211_v57 = vadd.f32 %v2210_v28, %v4476_v13 }
 0x5ff   : > { %v2212_v37 = vadd.f32 %v2211_v57, %v4480_v59 }
 0x618   : > { %v2166_v47 = vpop.f32.mrf.mxu3 }
 0x619   : > { %v4483_v3 = vadd.f32 %v4378_v58, %v2166_v47  ;;  %v2232_v47 = vsub.f32 1.0, %v2231_v62 }
 0x61b   : > { %v2213_v15 = vadd.f32 %v2212_v37, %v4483_v3  ;;  %v2233_v20 = vmul.f32 %v2952_v45, %v2232_v47 }
 0x61d   : > { %v2234_v51 = vadd.f32 %v2952_v45, %v2233_v20 }
 0x620   : > { %v2169_v30 = vpop.f32.mrf.mxu3 }
 0x621   : > { %v4487_v61 = vadd.f32 %v4378_v58, %v2169_v30 }
 0x623   : > { %v2214_v36 = vadd.f32 %v2213_v15, %v4487_v61 }
 0x628   : > { %v2172_v1 = vpop.f32.mrf.mxu3 }
 0x629   : > { %v4491_v4 = vadd.f32 %v4378_v58, %v2172_v1 }
 0x62b   : > { %v2215_v10 = vadd.f32 %v2214_v36, %v4491_v4 }
 0x630   : > { %v2175_v26 = vpop.f32.mrf.mxu3 }
 0x631   : > { %v4495_v12 = vadd.f32 %v4378_v58, %v2175_v26 }
 0x633   : > { %v2216_v17 = vadd.f32 %v2215_v10, %v4495_v12 }
 0x638   : > { %v2178_v25 = vpop.f32.mrf.mxu3 }
 0x639   : > { %v4499_v21 = vadd.f32 %v4378_v58, %v2178_v25 }
 0x63b   : > { %v2217_v8 = vadd.f32 %v2216_v17, %v4499_v21 }
 0x640   : > { %v2181_v11 = vpop.f32.mrf.mxu3 }
 0x641   : > { %v4503_v56 = vadd.f32 %v4378_v58, %v2181_v11 }
 0x643   : > { %v2218_v9 = vadd.f32 %v2217_v8, %v4503_v56 }
 0x648   : > { %v2184_v33 = vpop.f32.mrf.mxu3 }
 0x649   : > { %v4507_v14 = vadd.f32 %v4378_v58, %v2184_v33 }
 0x64b   : > { %v2219_v54 = vadd.f32 %v2218_v9, %v4507_v14 }
 0x650   : > { %v2187_v44 = vpop.f32.mrf.mxu3 }
 0x651   : > { %v4512_v19 = vadd.f32 %v4378_v58, %v2187_v44  ;;  %v2236_v58 = vsel %vm2235_vm0, %v2952_v45, %v2234_v51 }
 0x653   : > { %v2220_v49 = vadd.f32 %v2219_v54, %v4512_v19 }
 0x655   : > { %2221 = vadd.xlane.f32.xlu1 %v2220_v49 }
 0x6c8   : > { %v2222_v55 = vpop.xlane.xlu1 %2221 }
 0x6c9   : > { %v2223_v38 = vrot.slane %v2222_v55, 4 }
 0x6cb   : > { %v2224_v30 = vadd.f32 %v2223_v38, %v2222_v55 }
 0x6cd   : > { %v2225_v22 = vrot.slane %v2224_v30, 2 }
 0x6cf   : > { %v2226_v1 = vadd.f32 %v2225_v22, %v2224_v30 }
 0x6d1   : > { %v2227_v34 = vrot.slane %v2226_v1, 1 }
 0x6d3   : > { %v2228_v26 = vadd.f32 %v2227_v34, %v2226_v1 }
 0x6d5   : > { %2741 = vpush %v2228_v26 }
 0x6d6   : > { %2743 = vpush %v2236_v58 }
 0x706   : > { %s2742_s21 = spop %2741 }
 0x707   : > { %s4515_s22 = spop %2743 }
 0x708   : > { %s2238_s23 = smul.f32 %s4515_s22, %s2742_s21 }
 0x70a   : > { %v4520_v25 = vstv %s2238_s23 }
 0x70b   : > { %v4524_v52 = vsub.f32 %v4384_v41, %v4520_v25  ;;  %v4528_v28 = vsub.f32 %v4381_v5, %v4520_v25  ;;  %v4533_v57 = vsub.f32 %v4387_v48, %v4520_v25  ;;  %v4543_v41 = vsub.f32 %v4394_v18, %v4520_v25 }
 0x70c   : > { %v4547_v36 = vsub.f32 %v4398_v27, %v4520_v25  ;;  %v4554_v33 = vsub.f32 %v4402_v50, %v4520_v25  ;;  %v4561_v8 = vsub.f32 %v4407_v16, %v4520_v25  ;;  %v4568_v50 = vsub.f32 %v4412_v24, %v4520_v25 }
 0x70d   : > { %v2275_v11 = vsel %vm2241_vm1, %v4524_v52, 0.0  ;;  %v2276_v37 = vsel %vm2241_vm1, %v4528_v28, 0.0  ;;  %v2277_v48 = vsel %vm2241_vm1, %v4533_v57, 0.0  ;;  %v2278_v10 = vsel %vm2241_vm1, %v4543_v41, 0.0 }
 0x70e   : > { %v2307_v5 = vmul.f32 %v2275_v11, %v2275_v11  ;;  %v2308_v15 = vmul.f32 %v2276_v37, %v2276_v37  ;;  %v2309_v18 = vmul.f32 %v2277_v48, %v2277_v48  ;;  %v2279_v27 = vsel %vm2241_vm1, %v4547_v36, 0.0 }
 0x70f   : > { %v2310_v9 = vmul.f32 %v2278_v10, %v2278_v10  ;;  %v2280_v54 = vsel %vm2241_vm1, %v4554_v33, 0.0  ;;  %v2311_v49 = vmul.f32 %v2279_v27, %v2279_v27  ;;  %v4575_v16 = vsub.f32 %v4417_v46, %v4520_v25 }
 0x710   : > { %v2339_v17 = vadd.f32 %v2308_v15, %v2307_v5  ;;  %v2281_v45 = vsel %vm2241_vm1, %v4561_v8, 0.0  ;;  %v2312_v62 = vmul.f32 %v2280_v54, %v2280_v54  ;;  %v4582_v24 = vsub.f32 %v4422_v32, %v4520_v25 }
 0x711   : > { %v2282_v55 = vsel %vm2241_vm1, %v4568_v50, 0.0  ;;  %v2313_v38 = vmul.f32 %v2281_v45, %v2281_v45  ;;  %v4589_v46 = vsub.f32 %v4427_v40, %v4520_v25  ;;  %v2283_v20 = vsel %vm2241_vm1, %v4575_v16, 0.0 }
 0x712   : > { %v2340_v44 = vadd.f32 %v2339_v17, %v2309_v18  ;;  %v2314_v22 = vmul.f32 %v2282_v55, %v2282_v55  ;;  %v4596_v32 = vsub.f32 %v4432_v60, %v4520_v25  ;;  %v2284_v51 = vsel %vm2241_vm1, %v4582_v24, 0.0 }
 0x713   : > { %v2315_v34 = vmul.f32 %v2283_v20, %v2283_v20  ;;  %v4603_v40 = vsub.f32 %v4436_v35, %v4520_v25  ;;  %v2285_v58 = vsel %vm2241_vm1, %v4589_v46, 0.0  ;;  %v2316_v7 = vmul.f32 %v2284_v51, %v2284_v51 }
 0x714   : > { %v2341_v43 = vadd.f32 %v2340_v44, %v2310_v9  ;;  %v4610_v60 = vsub.f32 %v4440_v63, %v4520_v25  ;;  %v2286_v37 = vsel %vm2241_vm1, %v4596_v32, 0.0  ;;  %v2317_v5 = vmul.f32 %v2285_v58, %v2285_v58 }
 0x715   : > { %v4617_v35 = vsub.f32 %v4444_v0, %v4520_v25  ;;  %v2287_v48 = vsel %vm2241_vm1, %v4603_v40, 0.0  ;;  %v2318_v10 = vmul.f32 %v2286_v37, %v2286_v37  ;;  %v4624_v63 = vsub.f32 %v4448_v29, %v4520_v25 }
 0x716   : > { %v2342_v47 = vadd.f32 %v2341_v43, %v2311_v49  ;;  %v2288_v17 = vsel %vm2241_vm1, %v4610_v60, 0.0  ;;  %v2319_v27 = vmul.f32 %v2287_v48, %v2287_v48  ;;  %v4631_v0 = vsub.f32 %v4452_v23, %v4520_v25 }
 0x717   : > { %v2289_v44 = vsel %vm2241_vm1, %v4617_v35, 0.0  ;;  %v2320_v54 = vmul.f32 %v2288_v17, %v2288_v17  ;;  %v4638_v29 = vsub.f32 %v4456_v31, %v4520_v25  ;;  %v2290_v43 = vsel %vm2241_vm1, %v4624_v63, 0.0 }
 0x718   : > { %v2343_v30 = vadd.f32 %v2342_v47, %v2312_v62  ;;  %v2321_v45 = vmul.f32 %v2289_v44, %v2289_v44  ;;  %v4645_v23 = vsub.f32 %v4460_v53, %v4520_v25  ;;  %v2291_v47 = vsel %vm2241_vm1, %v4631_v0, 0.0 }
 0x719   : > { %v2322_v55 = vmul.f32 %v2290_v43, %v2290_v43  ;;  %v4652_v31 = vsub.f32 %v4464_v6, %v4520_v25  ;;  %v2323_v20 = vmul.f32 %v2291_v47, %v2291_v47  ;;  %v4659_v53 = vsub.f32 %v4468_v42, %v4520_v25 }
 0x71a   : > { %v2344_v1 = vadd.f32 %v2343_v30, %v2313_v38  ;;  %v2292_v30 = vsel %vm2241_vm1, %v4638_v29, 0.0  ;;  %v4666_v6 = vsub.f32 %v4472_v39, %v4520_v25  ;;  %v4673_v42 = vsub.f32 %v4476_v13, %v4520_v25 }
 0x71b   : > { %v2324_v51 = vmul.f32 %v2292_v30, %v2292_v30  ;;  %v4680_v39 = vsub.f32 %v4480_v59, %v4520_v25  ;;  %v4687_v13 = vsub.f32 %v4483_v3, %v4520_v25  ;;  %v4694_v59 = vsub.f32 %v4487_v61, %v4520_v25 }
 0x71c   : > { %v2345_v26 = vadd.f32 %v2344_v1, %v2314_v22  ;;  %v2293_v1 = vsel %vm2241_vm1, %v4645_v23, 0.0  ;;  %v4701_v3 = vsub.f32 %v4491_v4, %v4520_v25  ;;  %v4708_v61 = vsub.f32 %v4495_v12, %v4520_v25 }
 0x71d   : > { %v2325_v58 = vmul.f32 %v2293_v1, %v2293_v1  ;;  %v4715_v4 = vsub.f32 %v4499_v21, %v4520_v25  ;;  %v4722_v12 = vsub.f32 %v4503_v56, %v4520_v25  ;;  %v4729_v21 = vsub.f32 %v4507_v14, %v4520_v25 }
 0x71e   : > { %v2346_v11 = vadd.f32 %v2345_v26, %v2315_v34  ;;  %v2294_v26 = vsel %vm2241_vm1, %v4652_v31, 0.0  ;;  %v4736_v56 = vsub.f32 %v4512_v19, %v4520_v25 }
 0x71f   : > { %v2326_v37 = vmul.f32 %v2294_v26, %v2294_v26  ;;  %v2305_v14 = vsel %vm2241_vm1, %v4729_v21, 0.0 }
 0x720   : > { %v2347_v15 = vadd.f32 %v2346_v11, %v2316_v7  ;;  %v2295_v11 = vsel %vm2241_vm1, %v4659_v53, 0.0 }
 0x721   : > { %v2327_v48 = vmul.f32 %v2295_v11, %v2295_v11 }
 0x722   : > { %v2348_v18 = vadd.f32 %v2347_v15, %v2317_v5  ;;  %v2296_v15 = vsel %vm2241_vm1, %v4666_v6, 0.0 }
 0x723   : > { %v2328_v17 = vmul.f32 %v2296_v15, %v2296_v15 }
 0x724   : > { %v2349_v9 = vadd.f32 %v2348_v18, %v2318_v10  ;;  %v2297_v18 = vsel %vm2241_vm1, %v4673_v42, 0.0 }
 0x725   : > { %v2329_v44 = vmul.f32 %v2297_v18, %v2297_v18 }
 0x726   : > { %v2350_v49 = vadd.f32 %v2349_v9, %v2319_v27  ;;  %v2298_v9 = vsel %vm2241_vm1, %v4680_v39, 0.0 }
 0x727   : > { %v2330_v43 = vmul.f32 %v2298_v9, %v2298_v9 }
 0x728   : > { %v2351_v62 = vadd.f32 %v2350_v49, %v2320_v54  ;;  %v2299_v49 = vsel %vm2241_vm1, %v4687_v13, 0.0 }
 0x729   : > { %v2331_v47 = vmul.f32 %v2299_v49, %v2299_v49 }
 0x72a   : > { %v2352_v38 = vadd.f32 %v2351_v62, %v2321_v45  ;;  %v2300_v62 = vsel %vm2241_vm1, %v4694_v59, 0.0 }
 0x72b   : > { %v2332_v30 = vmul.f32 %v2300_v62, %v2300_v62 }
 0x72c   : > { %v2353_v22 = vadd.f32 %v2352_v38, %v2322_v55  ;;  %v2301_v38 = vsel %vm2241_vm1, %v4701_v3, 0.0 }
 0x72d   : > { %v2333_v1 = vmul.f32 %v2301_v38, %v2301_v38 }
 0x72e   : > { %v2354_v34 = vadd.f32 %v2353_v22, %v2323_v20  ;;  %v2302_v22 = vsel %vm2241_vm1, %v4708_v61, 0.0 }
 0x72f   : > { %v2334_v26 = vmul.f32 %v2302_v22, %v2302_v22 }
 0x730   : > { %v2355_v7 = vadd.f32 %v2354_v34, %v2324_v51  ;;  %v2303_v34 = vsel %vm2241_vm1, %v4715_v4, 0.0 }
 0x731   : > { %v2335_v11 = vmul.f32 %v2303_v34, %v2303_v34 }
 0x732   : > { %v2356_v5 = vadd.f32 %v2355_v7, %v2325_v58  ;;  %v2304_v7 = vsel %vm2241_vm1, %v4722_v12, 0.0 }
 0x734   : > { %v2357_v10 = vadd.f32 %v2356_v5, %v2326_v37  ;;  %v2336_v5 = vmul.f32 %v2304_v7, %v2304_v7  ;;  %v2434_v7 = vld [vmem:[%s5085_s5] sm:$0xff] }
 0x736   : > { %v2358_v27 = vadd.f32 %v2357_v10, %v2327_v48  ;;  %v2306_v48 = vsel %vm2241_vm1, %v4736_v56, 0.0  ;;  %v2337_v10 = vmul.f32 %v2305_v14, %v2305_v14 }
 0x737   : > { %v2338_v25 = vmul.f32 %v2306_v48, %v2306_v48 }
 0x738   : > { %v2359_v54 = vadd.f32 %v2358_v27, %v2328_v17 }
 0x73a   : > { %v2360_v45 = vadd.f32 %v2359_v54, %v2329_v44 }
 0x73c   : > { %v2361_v55 = vadd.f32 %v2360_v45, %v2330_v43 }
 0x73e   : > { %v2362_v20 = vadd.f32 %v2361_v55, %v2331_v47 }
 0x740   : > { %v2363_v51 = vadd.f32 %v2362_v20, %v2332_v30 }
 0x742   : > { %v2364_v58 = vadd.f32 %v2363_v51, %v2333_v1 }
 0x744   : > { %v2365_v37 = vadd.f32 %v2364_v58, %v2334_v26 }
 0x746   : > { %v2366_v15 = vadd.f32 %v2365_v37, %v2335_v11  ;;  %v2435_v11 = vld [vmem:[%s5085_s5 + $0x8] sm:$0xff]  ;;  %v2438_v37 = vld [vmem:[%s5085_s5 + $0x20] sm:$0xff] }
 0x748   : > { %v2367_v19 = vadd.f32 %v2366_v15, %v2336_v5  ;;  %v2439_v5 = vld [vmem:[%s5085_s5 + $0x28] sm:$0xff] }
 0x74a   : > { %v2368_v18 = vadd.f32 %v2367_v19, %v2337_v10 }
 0x74c   : > { %v2369_v17 = vadd.f32 %v2368_v18, %v2338_v25  ;;  %v2498_v25 = vld [vmem:[%s5086_s6] sm:$0xff]  ;;  %v2500_v18 = vld [vmem:[%s5086_s6 + $0x10] sm:$0xff] }
 0x74e   : > { %2370 = vadd.xlane.f32.xlu2 %v2369_v17 }
 0x7c1   : > { %v2371_v27 = vpop.xlane.xlu2 %2370 }
 0x7c2   : > { %v2372_v9 = vrot.slane %v2371_v27, 4 }
 0x7c4   : > { %v2373_v44 = vadd.f32 %v2372_v9, %v2371_v27  ;;  %v2501_v9 = vld [vmem:[%s5086_s6 + $0x18] sm:$0xff] }
 0x7c6   : > { %v2374_v54 = vrot.slane %v2373_v44, 2 }
 0x7c8   : > { %v2375_v49 = vadd.f32 %v2374_v54, %v2373_v44 }
 0x7ca   : > { %v2376_v43 = vrot.slane %v2375_v49, 1 }
 0x7cc   : > { %v2377_v45 = vadd.f32 %v2376_v43, %v2375_v49  ;;  %v2442_v49 = vld [vmem:[%s5085_s5 + $0x40] sm:$0xff] }
 0x7cd   : > { %v2502_v43 = vld [vmem:[%s5086_s6 + $0x20] sm:$0xff] }
 0x7ce   : > { %2745 = vpush %v2377_v45  ;;  %v2443_v45 = vld [vmem:[%s5085_s5 + $0x48] sm:$0xff] }
 0x7ff   : > { %s2746_s28 = spop %2745 }
 0x800   : > { %s2387_s29 = smul.f32 %s2746_s28, %s4515_s22 }
 0x802   : > { %s2388_s30 = sadd.f32 1e-05, %s2387_s29 }
 0x804   : > { %v2389_v2 = vstv %s2388_s30 }
 0x805   : > { %2953 = vrsqrt.f32 %v2389_v2  ;;  %vm2396_vm3 = vweird.f32 %v2389_v2 }
 0x80b   : > { %v2954_v62 = vpop.eup %2953 }
 0x80c   : > { %v2391_v47 = vmul.f32 %v2954_v62, %v2389_v2  ;;  %vm2397_vm2 = vweird.f32 %v2954_v62 }
 0x80d   : > { %vm2398_vm4 = vmor %vm2396_vm3, %vm2397_vm2 }
 0x80e   : > { %v2392_v55 = vmul.f32 %v2954_v62, %v2391_v47 }
 0x810   : > { %v2393_v38 = vmul.f32 0.5, %v2392_v55 }
 0x812   : > { %v2394_v30 = vsub.f32 1.5, %v2393_v38 }
 0x814   : > { %v2395_v20 = vmul.f32 %v2954_v62, %v2394_v30 }
 0x816   : > { %v2399_v22 = vsel %vm2398_vm4, %v2954_v62, %v2395_v20  ;;  %v2504_v20 = vld [vmem:[%s5086_s6 + $0x30] sm:$0xff] }
 0x817   : > { %2747 = vpush %v2399_v22 }
 0x848   : > { %s2748_s8 = spop %2747 }
 0x849   : > { %v4748_v1 = vstv %s2748_s8 }
 0x84a   : > { %v2402_v51 = vmul.f32 %v4748_v1, %v4524_v52  ;;  %v2403_v34 = vmul.f32 %v4748_v1, %v4528_v28  ;;  %v2404_v26 = vmul.f32 %v4748_v1, %v4533_v57  ;;  %v2405_v58 = vmul.f32 %v4748_v1, %v4543_v41  ;;  %v2436_v52 = vld [vmem:[%s5085_s5 + $0x10] sm:$0xff]  ;;  %v2437_v57 = vld [vmem:[%s5085_s5 + $0x18] sm:$0xff] }
 0x84b   : > { %v2406_v28 = vmul.f32 %v4748_v1, %v4547_v36  ;;  %v2407_v41 = vmul.f32 %v4748_v1, %v4554_v33  ;;  %v2408_v14 = vmul.f32 %v4748_v1, %v4561_v8  ;;  %v2440_v36 = vld [vmem:[%s5085_s5 + $0x30] sm:$0xff]  ;;  %v2409_v33 = vmul.f32 %v4748_v1, %v4568_v50  ;;  %v2499_v8 = vld [vmem:[%s5086_s6 + $0x8] sm:$0xff]  ;;  %v2441_v50 = vld [vmem:[%s5085_s5 + $0x38] sm:$0xff] }
 0x84c   : > { %v2466_v15 = vmul.f32 %v2434_v7, %v2402_v51  ;;  %v2467_v48 = vmul.f32 %v2435_v11, %v2403_v34  ;;  %v2468_v10 = vmul.f32 %v2436_v52, %v2404_v26  ;;  %v2469_v19 = vmul.f32 %v2437_v57, %v2405_v58  ;;  %v2445_v26 = vld [vmem:[%s5085_s5 + $0x58] sm:$0xff] }
 0x84d   : > { %v2410_v17 = vmul.f32 %v4748_v1, %v4575_v16  ;;  %v2470_v27 = vmul.f32 %v2438_v37, %v2406_v28  ;;  %v2411_v44 = vmul.f32 %v4748_v1, %v4582_v24  ;;  %v2412_v54 = vmul.f32 %v4748_v1, %v4589_v46  ;;  %v2444_v24 = vld [vmem:[%s5085_s5 + $0x50] sm:$0xff]  ;;  %v2503_v46 = vld [vmem:[%s5086_s6 + $0x28] sm:$0xff]  ;;  %v2506_v28 = vld [vmem:[%s5086_s6 + $0x40] sm:$0xff] }
 0x84e   : > { %v2471_v16 = vmul.f32 %v2439_v5, %v2407_v41  ;;  %v2472_v2 = vmul.f32 %v2440_v36, %v2408_v14  ;;  %v2530_v62 = vadd.f32 %v2498_v25, %v2466_v15  ;;  %v2531_v47 = vadd.f32 %v2499_v8, %v2467_v48  ;;  %v2447_v41 = vld [vmem:[%s5085_s5 + $0x68] sm:$0xff]  ;;  %v2955_v14 = vld [vmem:[%s3127_s14] sm:$0xff]  ;;  %v2957_v48 = vld [vmem:[%s3127_s14 + $0x10] sm:$0xff] }
 0x84f   : > { %v2532_v55 = vadd.f32 %v2500_v18, %v2468_v10  ;;  %v2413_v38 = vmul.f32 %v4748_v1, %v4596_v32  ;;  %v2473_v30 = vmul.f32 %v2441_v50, %v2409_v33  ;;  %v2533_v22 = vadd.f32 %v2501_v9, %v2469_v19  ;;  %v2505_v32 = vld [vmem:[%s5086_s6 + $0x38] sm:$0xff]  ;;  %v2956_v36 = vld [vmem:[%s3127_s14 + $0x8] sm:$0xff]  ;;  %v2448_v19 = vld [vmem:[%s5085_s5 + $0x70] sm:$0xff] }
 0x850   : > { %v2414_v51 = vmul.f32 %v4748_v1, %v4603_v40  ;;  %v2415_v34 = vmul.f32 %v4748_v1, %v4610_v60  ;;  %v2474_v58 = vmul.f32 %v2442_v49, %v2410_v17  ;;  %v2534_v7 = vadd.f32 %v2502_v43, %v2470_v27  ;;  %v2446_v60 = vld [vmem:[%s5085_s5 + $0x60] sm:$0xff]  ;;  %v2508_v8 = vld [vmem:[%s5086_s6 + $0x50] sm:$0xff]  ;;  %v2958_v17 = vld [vmem:[%s3127_s14 + $0x18] sm:$0xff] }
 0x851   : > { %v2416_v40 = vmul.f32 %v4748_v1, %v4617_v35  ;;  %v2475_v11 = vmul.f32 %v2443_v45, %v2411_v44  ;;  %v2476_v52 = vmul.f32 %v2444_v24, %v2412_v54  ;;  %v2535_v57 = vadd.f32 %v2503_v46, %v2471_v16  ;;  %v2507_v35 = vld [vmem:[%s5086_s6 + $0x48] sm:$0xff]  ;;  %v2509_v44 = vld [vmem:[%s5086_s6 + $0x58] sm:$0xff]  ;;  %v2959_v49 = vld [vmem:[%s3127_s14 + $0x20] sm:$0xff] }
 0x852   : > { %v2536_v37 = vadd.f32 %v2504_v20, %v2472_v2  ;;  %v2562_v5 = vadd.f32 %v2955_v14, %v2530_v62  ;;  %v2563_v15 = vadd.f32 %v2956_v36, %v2531_v47  ;;  %v2564_v10 = vadd.f32 %v2957_v48, %v2532_v55  ;;  %v2510_v24 = vld [vmem:[%s5086_s6 + $0x60] sm:$0xff]  ;;  %v2960_v46 = vld [vmem:[%s3127_s14 + $0x28] sm:$0xff]  ;;  %v2961_v20 = vld [vmem:[%s3127_s14 + $0x30] sm:$0xff] }
 0x853   : > { %v2417_v33 = vmul.f32 %v4748_v1, %v4624_v63  ;;  %v2477_v25 = vmul.f32 %v2445_v26, %v2413_v38  ;;  %v2537_v18 = vadd.f32 %v2505_v32, %v2473_v30  ;;  %v2565_v50 = vadd.f32 %v2958_v17, %v2533_v22  ;;  %v2449_v63 = vld [vmem:[%s5085_s5 + $0x78] sm:$0xff]  ;;  %v2511_v38 = vld [vmem:[%s5086_s6 + $0x68] sm:$0xff]  ;;  %v2512_v26 = vld [vmem:[%s5086_s6 + $0x70] sm:$0xff] }
 0x854   : > { %v2418_v27 = vmul.f32 %v4748_v1, %v4631_v0  ;;  %v2478_v9 = vmul.f32 %v2446_v60, %v2414_v51  ;;  %v2538_v54 = vadd.f32 %v2506_v28, %v2474_v58  ;;  %v2566_v16 = vadd.f32 %v2959_v49, %v2534_v7  ;;  %2594 = vst [vmem:[%s4843_s25] sm:$0xff] %v2562_v5  ;;  %v2450_v0 = vld [vmem:[%s5085_s5 + $0x80] sm:$0xff]  ;;  %v2962_v32 = vld [vmem:[%s3127_s14 + $0x38] sm:$0xff]  ;;  %v2964_v5 = vld [vmem:[%s3127_s14 + $0x48] sm:$0xff] }
 0x855   : > { %v2419_v43 = vmul.f32 %v4748_v1, %v4638_v29  ;;  %v2479_v45 = vmul.f32 %v2447_v41, %v2415_v34  ;;  %v2539_v2 = vadd.f32 %v2507_v35, %v2475_v11  ;;  %v2567_v62 = vadd.f32 %v2960_v46, %v2535_v57  ;;  %2595 = vst [vmem:[%s4843_s25 + $0x8] sm:$0xff] %v2563_v15  ;;  %v2451_v29 = vld [vmem:[%s5085_s5 + $0x88] sm:$0xff]  ;;  %v2513_v11 = vld [vmem:[%s5086_s6 + $0x78] sm:$0xff]  ;;  %v2963_v28 = vld [vmem:[%s3127_s14 + $0x40] sm:$0xff] }
 0x856   : > { %v2420_v47 = vmul.f32 %v4748_v1, %v4645_v23  ;;  %v2480_v55 = vmul.f32 %v2448_v19, %v2416_v40  ;;  %v2540_v30 = vadd.f32 %v2508_v8, %v2476_v52  ;;  %v2568_v22 = vadd.f32 %v2961_v20, %v2536_v37  ;;  %2596 = vst [vmem:[%s4843_s25 + $0x10] sm:$0xff] %v2564_v10  ;;  %v2452_v23 = vld [vmem:[%s5085_s5 + $0x90] sm:$0xff]  ;;  %v2514_v37 = vld [vmem:[%s5086_s6 + $0x80] sm:$0xff]  ;;  %v2515_v10 = vld [vmem:[%s5086_s6 + $0x88] sm:$0xff] }
 0x857   : > { %v2421_v51 = vmul.f32 %v4748_v1, %v4652_v31  ;;  %v2481_v34 = vmul.f32 %v2449_v63, %v2417_v33  ;;  %v2541_v58 = vadd.f32 %v2509_v44, %v2477_v25  ;;  %v2569_v7 = vadd.f32 %v2962_v32, %v2537_v18  ;;  %2597 = vst [vmem:[%s4843_s25 + $0x18] sm:$0xff] %v2565_v50  ;;  %v2453_v31 = vld [vmem:[%s5085_s5 + $0x98] sm:$0xff]  ;;  %v2965_v19 = vld [vmem:[%s3127_s14 + $0x50] sm:$0xff]  ;;  %v2968_v46 = vld [vmem:[%s3127_s14 + $0x68] sm:$0xff] }
 0x858   : > { %v2422_v40 = vmul.f32 %v4748_v1, %v4659_v53  ;;  %v2482_v60 = vmul.f32 %v2450_v0, %v2418_v27  ;;  %v2542_v52 = vadd.f32 %v2510_v24, %v2478_v9  ;;  %v2570_v57 = vadd.f32 %v2963_v28, %v2538_v54  ;;  %2598 = vst [vmem:[%s4843_s25 + $0x20] sm:$0xff] %v2566_v16  ;;  %v2454_v53 = vld [vmem:[%s5085_s5 + $0xa0] sm:$0xff]  ;;  %v2516_v17 = vld [vmem:[%s5086_s6 + $0x90] sm:$0xff]  ;;  %v2966_v27 = vld [vmem:[%s3127_s14 + $0x58] sm:$0xff] }
 0x859   : > { %v2423_v41 = vmul.f32 %v4748_v1, %v4666_v6  ;;  %v2483_v35 = vmul.f32 %v2451_v29, %v2419_v43  ;;  %v2543_v14 = vadd.f32 %v2511_v38, %v2479_v45  ;;  %v2571_v36 = vadd.f32 %v2964_v5, %v2539_v2  ;;  %2599 = vst [vmem:[%s4843_s25 + $0x28] sm:$0xff] %v2567_v62  ;;  %v2455_v6 = vld [vmem:[%s5085_s5 + $0xa8] sm:$0xff]  ;;  %v2517_v54 = vld [vmem:[%s5086_s6 + $0x98] sm:$0xff]  ;;  %v2967_v16 = vld [vmem:[%s3127_s14 + $0x60] sm:$0xff] }
 0x85a   : > { %v2424_v15 = vmul.f32 %v4748_v1, %v4673_v42  ;;  %v2484_v48 = vmul.f32 %v2452_v23, %v2420_v47  ;;  %v2544_v33 = vadd.f32 %v2512_v26, %v2480_v55  ;;  %v2572_v25 = vadd.f32 %v2965_v19, %v2540_v30  ;;  %2600 = vst [vmem:[%s4843_s25 + $0x30] sm:$0xff] %v2568_v22  ;;  %v2456_v42 = vld [vmem:[%s5085_s5 + $0xb0] sm:$0xff]  ;;  %v2518_v24 = vld [vmem:[%s5086_s6 + $0xa0] sm:$0xff]  ;;  %v2519_v55 = vld [vmem:[%s5086_s6 + $0xa8] sm:$0xff] }
 0x85b   : > { %v2425_v8 = vmul.f32 %v4748_v1, %v4680_v39  ;;  %v2485_v18 = vmul.f32 %v2453_v31, %v2421_v51  ;;  %v2545_v50 = vadd.f32 %v2513_v11, %v2481_v34  ;;  %v2573_v63 = vadd.f32 %v2966_v27, %v2541_v58  ;;  %2601 = vst [vmem:[%s4843_s25 + $0x38] sm:$0xff] %v2569_v7  ;;  %v2457_v39 = vld [vmem:[%s5085_s5 + $0xb8] sm:$0xff]  ;;  %v2969_v30 = vld [vmem:[%s3127_s14 + $0x70] sm:$0xff]  ;;  %v2523_v5 = vld [vmem:[%s5086_s6 + $0xc8] sm:$0xff] }
 0x85c   : > { %v2426_v9 = vmul.f32 %v4748_v1, %v4687_v13  ;;  %v2486_v44 = vmul.f32 %v2454_v53, %v2422_v40  ;;  %v2546_v49 = vadd.f32 %v2514_v37, %v2482_v60  ;;  %v2574_v43 = vadd.f32 %v2967_v16, %v2542_v52  ;;  %2602 = vst [vmem:[%s4843_s25 + $0x40] sm:$0xff] %v2570_v57  ;;  %v2458_v13 = vld [vmem:[%s5085_s5 + $0xc0] sm:$0xff]  ;;  %v2520_v23 = vld [vmem:[%s5086_s6 + $0xb0] sm:$0xff]  ;;  %v2970_v26 = vld [vmem:[%s3127_s14 + $0x78] sm:$0xff] }
 0x85d   : > { %v2427_v0 = vmul.f32 %v4748_v1, %v4694_v59  ;;  %v2487_v45 = vmul.f32 %v2455_v6, %v2423_v41  ;;  %v2547_v2 = vadd.f32 %v2515_v10, %v2483_v35  ;;  %v2575_v62 = vadd.f32 %v2968_v46, %v2543_v14  ;;  %2603 = vst [vmem:[%s4843_s25 + $0x48] sm:$0xff] %v2571_v36  ;;  %v2459_v59 = vld [vmem:[%s5085_s5 + $0xc8] sm:$0xff]  ;;  %v2521_v40 = vld [vmem:[%s5086_s6 + $0xb8] sm:$0xff]  ;;  %v2971_v60 = vld [vmem:[%s3127_s14 + $0x80] sm:$0xff] }
 0x85e   : > { %v2428_v47 = vmul.f32 %v4748_v1, %v4701_v3  ;;  %v2488_v29 = vmul.f32 %v2456_v42, %v2424_v15  ;;  %v2548_v38 = vadd.f32 %v2516_v17, %v2484_v48  ;;  %v2576_v20 = vadd.f32 %v2969_v30, %v2544_v33  ;;  %2604 = vst [vmem:[%s4843_s25 + $0x50] sm:$0xff] %v2572_v25  ;;  %v2460_v3 = vld [vmem:[%s5085_s5 + $0xd0] sm:$0xff]  ;;  %v2522_v57 = vld [vmem:[%s5086_s6 + $0xc0] sm:$0xff]  ;;  %v2972_v53 = vld [vmem:[%s3127_s14 + $0x88] sm:$0xff] }
 0x85f   : > { %v2429_v22 = vmul.f32 %v4748_v1, %v4708_v61  ;;  %v2489_v51 = vmul.f32 %v2457_v39, %v2425_v8  ;;  %v2549_v34 = vadd.f32 %v2517_v54, %v2485_v18  ;;  %v2577_v58 = vadd.f32 %v2970_v26, %v2545_v50  ;;  %2605 = vst [vmem:[%s4843_s25 + $0x58] sm:$0xff] %v2573_v63  ;;  %v2461_v61 = vld [vmem:[%s5085_s5 + $0xd8] sm:$0xff]  ;;  %v2973_v15 = vld [vmem:[%s3127_s14 + $0x90] sm:$0xff]  ;;  %v2975_v17 = vld [vmem:[%s3127_s14 + $0xa0] sm:$0xff] }
 0x860   : > { %v2430_v32 = vmul.f32 %v4748_v1, %v4715_v4  ;;  %v2490_v7 = vmul.f32 %v2458_v13, %v2426_v9  ;;  %v2550_v31 = vadd.f32 %v2518_v24, %v2486_v44  ;;  %v2578_v11 = vadd.f32 %v2971_v60, %v2546_v49  ;;  %2606 = vst [vmem:[%s4843_s25 + $0x60] sm:$0xff] %v2574_v43  ;;  %v2462_v4 = vld [vmem:[%s5085_s5 + $0xe0] sm:$0xff]  ;;  %v2524_v33 = vld [vmem:[%s5086_s6 + $0xd0] sm:$0xff]  ;;  %v2974_v25 = vld [vmem:[%s3127_s14 + $0x98] sm:$0xff] }
 0x861   : > { %v2431_v52 = vmul.f32 %v4748_v1, %v4722_v12  ;;  %v2491_v28 = vmul.f32 %v2459_v59, %v2427_v0  ;;  %v2551_v41 = vadd.f32 %v2519_v55, %v2487_v45  ;;  %v2579_v35 = vadd.f32 %v2972_v53, %v2547_v2  ;;  %2607 = vst [vmem:[%s4843_s25 + $0x68] sm:$0xff] %v2575_v62  ;;  %v2463_v12 = vld [vmem:[%s5085_s5 + $0xe8] sm:$0xff]  ;;  %v2465_v42 = vld [vmem:[%s5085_s5 + $0xf8] sm:$0xff]  ;;  %v2526_v63 = vld [vmem:[%s5086_s6 + $0xe0] sm:$0xff] }
 0x862   : > { %v2432_v37 = vmul.f32 %v4748_v1, %v4729_v21  ;;  %v2492_v14 = vmul.f32 %v2460_v3, %v2428_v47  ;;  %v2552_v36 = vadd.f32 %v2520_v23, %v2488_v29  ;;  %v2580_v6 = vadd.f32 %v2973_v15, %v2548_v38  ;;  %2608 = vst [vmem:[%s4843_s25 + $0x70] sm:$0xff] %v2576_v20  ;;  %v2464_v21 = vld [vmem:[%s5085_s5 + $0xf0] sm:$0xff]  ;;  %v2976_v39 = vld [vmem:[%s3127_s14 + $0xa8] sm:$0xff]  ;;  %v2978_v2 = vld [vmem:[%s3127_s14 + $0xb8] sm:$0xff] }
 0x863   : > { %v2433_v48 = vmul.f32 %v4748_v1, %v4736_v56  ;;  %v2493_v10 = vmul.f32 %v2461_v61, %v2429_v22  ;;  %v2553_v19 = vadd.f32 %v2521_v40, %v2489_v51  ;;  %v2581_v8 = vadd.f32 %v2974_v25, %v2549_v34  ;;  %2609 = vst [vmem:[%s4843_s25 + $0x78] sm:$0xff] %v2577_v58  ;;  %v2525_v1 = vld [vmem:[%s5086_s6 + $0xd8] sm:$0xff]  ;;  %v2527_v49 = vld [vmem:[%s5086_s6 + $0xe8] sm:$0xff]  ;;  %v2977_v43 = vld [vmem:[%s3127_s14 + $0xb0] sm:$0xff] }
 0x864   : > { %v2494_v56 = vmul.f32 %v2462_v4, %v2430_v32  ;;  %v2554_v18 = vadd.f32 %v2522_v57, %v2490_v7  ;;  %v2582_v50 = vadd.f32 %v2975_v17, %v2550_v31  ;;  %2610 = vst [vmem:[%s4843_s25 + $0x80] sm:$0xff] %v2578_v11  ;;  %v2495_v27 = vmul.f32 %v2463_v12, %v2431_v52  ;;  %v2528_v45 = vld [vmem:[%s5086_s6 + $0xf0] sm:$0xff]  ;;  %v2529_v62 = vld [vmem:[%s5086_s6 + $0xf8] sm:$0xff]  ;;  %v2979_v59 = vld [vmem:[%s3127_s14 + $0xc0] sm:$0xff] }
 0x865   : > { %v2555_v9 = vadd.f32 %v2523_v5, %v2491_v28  ;;  %v2583_v44 = vadd.f32 %v2976_v39, %v2551_v41  ;;  %2611 = vst [vmem:[%s4843_s25 + $0x88] sm:$0xff] %v2579_v35  ;;  %v2496_v54 = vmul.f32 %v2464_v21, %v2432_v37  ;;  %v2556_v16 = vadd.f32 %v2524_v33, %v2492_v14  ;;  %v2980_v38 = vld [vmem:[%s3127_s14 + $0xc8] sm:$0xff]  ;;  %v2981_v22 = vld [vmem:[%s3127_s14 + $0xd0] sm:$0xff]  ;;  %v2982_v23 = vld [vmem:[%s3127_s14 + $0xd8] sm:$0xff] }
 0x866   : > { %v2584_v0 = vadd.f32 %v2977_v43, %v2552_v36  ;;  %2612 = vst [vmem:[%s4843_s25 + $0x90] sm:$0xff] %v2580_v6  ;;  %v2497_v13 = vmul.f32 %v2465_v42, %v2433_v48  ;;  %v2557_v24 = vadd.f32 %v2525_v1, %v2493_v10  ;;  %v2585_v46 = vadd.f32 %v2978_v2, %v2553_v19  ;;  %v2983_v26 = vld [vmem:[%s3127_s14 + $0xe0] sm:$0xff]  ;;  %v2984_v32 = vld [vmem:[%s3127_s14 + $0xe8] sm:$0xff]  ;;  %v2985_v7 = vld [vmem:[%s3127_s14 + $0xf0] sm:$0xff] }
 0x867   : > { %2613 = vst [vmem:[%s4843_s25 + $0x98] sm:$0xff] %v2581_v8  ;;  %v2558_v47 = vadd.f32 %v2526_v63, %v2494_v56  ;;  %v2586_v29 = vadd.f32 %v2979_v59, %v2554_v18  ;;  %v2559_v55 = vadd.f32 %v2527_v49, %v2495_v27  ;;  %v2587_v30 = vadd.f32 %v2980_v38, %v2555_v9  ;;  %v2986_v31 = vld [vmem:[%s3127_s14 + $0xf8] sm:$0xff] }
 0x868   : > { %2614 = vst [vmem:[%s4843_s25 + $0xa0] sm:$0xff] %v2582_v50  ;;  %v2560_v20 = vadd.f32 %v2528_v45, %v2496_v54  ;;  %v2588_v3 = vadd.f32 %v2981_v22, %v2556_v16  ;;  %v2561_v51 = vadd.f32 %v2529_v62, %v2497_v13  ;;  %v2589_v34 = vadd.f32 %v2982_v23, %v2557_v24 }
 0x869   : > { %2615 = vst [vmem:[%s4843_s25 + $0xa8] sm:$0xff] %v2583_v44  ;;  %v2590_v58 = vadd.f32 %v2983_v26, %v2558_v47  ;;  %v2591_v61 = vadd.f32 %v2984_v32, %v2559_v55 }
 0x86a   : > { %2616 = vst [vmem:[%s4843_s25 + $0xb0] sm:$0xff] %v2584_v0  ;;  %v2592_v40 = vadd.f32 %v2985_v7, %v2560_v20  ;;  %v2593_v60 = vadd.f32 %v2986_v31, %v2561_v51 }
 0x86b   : > { %2617 = vst [vmem:[%s4843_s25 + $0xb8] sm:$0xff] %v2585_v46 }
 0x86c   : > { %2618 = vst [vmem:[%s4843_s25 + $0xc0] sm:$0xff] %v2586_v29 }
 0x86d   : > { %2619 = vst [vmem:[%s4843_s25 + $0xc8] sm:$0xff] %v2587_v30 }
 0x86e   : > { %2620 = vst [vmem:[%s4843_s25 + $0xd0] sm:$0xff] %v2588_v3 }
 0x86f   : > { %2621 = vst [vmem:[%s4843_s25 + $0xd8] sm:$0xff] %v2589_v34 }
 0x870   : > { %2622 = vst [vmem:[%s4843_s25 + $0xe0] sm:$0xff] %v2590_v58 }
 0x871   : > { %2623 = vst [vmem:[%s4843_s25 + $0xe8] sm:$0xff] %v2591_v61 }
 0x872   : > { %2624 = vst [vmem:[%s4843_s25 + $0xf0] sm:$0xff] %v2592_v40 }
 0x873   : > { %2625 = vst [vmem:[%s4843_s25 + $0xf8] sm:$0xff] %v2593_v60 }
 0x874 PF: > { %s17_s24 = sadd.s32 1, %s2993_s24  }
 0x875   : > { %p14_p4 = scmp.ge.s32.totalorder %s17_s24, 4  }
 0x877   :  { %16 = sbr.rel (!%p14_p4) target bundleno = 1 (0x1), region = 78 }

</bundles_post_ra>
